<compile_context>
chip_gen: v5e
topology: v5e:2x2
jax: 0.10.0
libtpu: 0.0.40
codegen_flags: <defaults>
</compile_context>

<pallas_src>
import jax
import jax.numpy as jnp
from jax import lax
from jax.experimental import pallas as pl
from jax.experimental.pallas import tpu as pltpu


def _round_up(x, m):
    return ((x + m - 1) // m) * m


# -----------------------------------------------------------------------------
# Kernel
# -----------------------------------------------------------------------------
def _encode_kernel(packed_ref, w1_ref, w2_ref, b2_ref, tcls_ref, wvs_ref,
                   bcomb_ref, out_ref):
    # packed_ref : (TM, PW)        f32  [coords(6) | 1.0 | id | state(S) | 1.0 | 0...]
    # w1_ref     : (PW, hidden)    f32  rows->lanes: w_c1/b_c1 -> cols 0:half,
    #                                    w_s/b_s -> cols half:hidden, id-lane row = 0
    # w2_ref     : (hidden, hidden)f32  [[w_c2, 0], [0, I_half]]
    # b2_ref     : (1, hidden)     f32  [b_c2 | 0]
    # tcls_ref   : (C_pad, hidden) f32  relu(emb) @ W_comb[:half]  (zero-padded rows)
    # wvs_ref    : (hidden, hidden)f32  W_comb[half:]  ( = [Wh_comb ; Ws_comb] )
    # bcomb_ref  : (1, hidden)     f32
    # out_ref    : (TM, hidden)    f32
    packed = packed_ref[...]                                       # (TM, PW)

    # stage 1: [coord layer-1 pre-act | state linear]; biases ride the 1.0 lanes.
    r1 = jnp.maximum(
        jnp.dot(packed, w1_ref[...], preferred_element_type=jnp.float32), 0.0)

    # stage 2: coord layer 2 on lanes [0:half]; state half passes through the exact
    # identity block.  The ReLU is the combine ReLU (idempotent on the state half).
    r2 = jnp.maximum(
        jnp.dot(r1, w2_ref[...], preferred_element_type=jnp.float32) + b2_ref[...],
        0.0)

    # class branch: one-hot (MXU gather) through the pre-combined relu(emb)@Wc table.
    ids = packed[:, 7:8].astype(jnp.int32)                         # exact for id < 2^24
    tm = packed.shape[0]
    c_pad = tcls_ref.shape[0]
    one_hot = (ids == lax.broadcasted_iota(jnp.int32, (tm, c_pad), 1)
               ).astype(jnp.float32)                               # (TM, C_pad)

    out_ref[...] = (jnp.dot(one_hot, tcls_ref[...], preferred_element_type=jnp.float32)
                    + jnp.dot(r2, wvs_ref[...], preferred_element_type=jnp.float32)
                    + bcomb_ref[...])


# -----------------------------------------------------------------------------
# Tile selection
# -----------------------------------------------------------------------------
def _pick_tile_m(m_pad, tile_m):
    """Multiple-of-128 tile: amortize ~0.35us/grid-step, avoid padded rows where
    possible, and keep >=2 grid steps (2-TensorCore chips) for bigger problems."""
    best_t, best_cost = 128, None
    for t in range(128, min(tile_m, m_pad) + 1, 128):
        steps = -(-m_pad // t)
        padded = steps * t - m_pad
        cost = steps * 256 + padded * 1.5          # step-overhead vs wasted-row proxy
        if steps == 1 and m_pad >= 256:
            cost += 256                            # prefer >=2 steps for megacore
        if best_cost is None or cost < best_cost:
            best_cost, best_t = cost, t
    return best_t


# -----------------------------------------------------------------------------
# Wrapper
# -----------------------------------------------------------------------------
def obj_name_coord_state_encode(class_ids, coords, state, params, *, tile_m=2048):
    """class_ids (B,N) int, coords (B,N,6) f32, state (B,N,S) f32 -> (B,N,hidden) f32."""
    emb = params["emb"]                                    # (C, half)
    w_c1, b_c1 = params["w_c1"], params["b_c1"]            # (6, half), (half,)
    w_c2, b_c2 = params["w_c2"], params["b_c2"]            # (half, half), (half,)
    w_s, b_s = params["w_s"], params["b_s"]                # (S, half), (half,)
    w_comb, b_comb = params["w_comb"], params["b_comb"]    # (3*half, hidden), (hidden,)

    B, N = class_ids.shape
    C, half = emb.shape
    S = w_s.shape[0]
    hidden = w_comb.shape[1]
    assert hidden == 2 * half

    f32 = jnp.float32
    M = B * N
    m_pad = _round_up(M, 128)
    tm = _pick_tile_m(m_pad, tile_m)
    m_alloc = _round_up(m_pad, tm)
    grid = (m_alloc // tm,)

    S_pad = _round_up(S + 1, 8)
    PW = 8 + S_pad                                         # packed-input lane width
    C_pad = _round_up(C, 128)

    # ---- packed row input: [coords(6) | 1.0 | class_id | state(S) | 1.0 | 0...] ----
    ones = jnp.ones((M, 1), f32)
    packed = jnp.concatenate(
        [coords.reshape(M, 6).astype(f32), ones,
         class_ids.reshape(M, 1).astype(f32),
         state.reshape(M, S).astype(f32), ones], axis=1)           # (M, 9+S)
    packed = jnp.pad(packed, ((0, m_alloc - M), (0, PW - (9 + S))))

    # ---- stage-1 weight (biases folded onto the two 1.0 lanes) ----
    w1 = jnp.zeros((PW, hidden), f32)
    w1 = w1.at[0:6, 0:half].set(w_c1.astype(f32))
    w1 = w1.at[6, 0:half].set(b_c1.astype(f32))            # coords 1.0 lane
    w1 = w1.at[8:8 + S, half:].set(w_s.astype(f32))
    w1 = w1.at[8 + S, half:].set(b_s.astype(f32))          # state 1.0 lane
    # row 7 (class-id lane) stays zero so the id never leaks into the matmul.

    # ---- stage-2 weight: coord layer 2 + identity pass-through of the state half ----
    w2 = jnp.zeros((hidden, hidden), f32)
    w2 = w2.at[0:half, 0:half].set(w_c2.astype(f32))
    w2 = w2.at[half:, half:].set(jnp.eye(half, dtype=f32))
    b2 = jnp.concatenate([b_c2.astype(f32), jnp.zeros((half,), f32)]).reshape(1, hidden)

    # ---- class branch folded through the combine layer (exact) ----
    t_cls = jnp.dot(jnp.maximum(emb.astype(f32), 0.0), w_comb[:half].astype(f32),
                    precision=lax.Precision.HIGHEST)               # (C, hidden)
    t_cls = jnp.pad(t_cls, ((0, C_pad - C), (0, 0)))

    w_vs = w_comb[half:].astype(f32)                        # (hidden, hidden)
    b_comb_2d = b_comb.reshape(1, hidden).astype(f32)

    out = pl.pallas_call(
        _encode_kernel,
        out_shape=jax.ShapeDtypeStruct((m_alloc, hidden), f32),
        grid_spec=pltpu.PrefetchScalarGridSpec(
            num_scalar_prefetch=0,
            grid=grid,
            in_specs=[
                pl.BlockSpec((tm, PW), lambda i: (i, 0)),           # packed rows
                pl.BlockSpec((PW, hidden), lambda i: (0, 0)),       # w1
                pl.BlockSpec((hidden, hidden), lambda i: (0, 0)),   # w2 (+identity)
                pl.BlockSpec((1, hidden), lambda i: (0, 0)),        # b2
                pl.BlockSpec((C_pad, hidden), lambda i: (0, 0)),    # relu(emb)@Wc table
                pl.BlockSpec((hidden, hidden), lambda i: (0, 0)),   # W_comb[half:]
                pl.BlockSpec((1, hidden), lambda i: (0, 0)),        # b_comb
            ],
            out_specs=pl.BlockSpec((tm, hidden), lambda i: (i, 0)),
        ),
        compiler_params=pltpu.CompilerParams(
            dimension_semantics=("parallel",)),
    )(packed, w1, w2, b2, t_cls, w_vs, b_comb_2d)

    if m_alloc != M:
        out = out[:M]        # only slice when row padding was needed (<=127 rows typical)
    return out.reshape(B, N, hidden)


def transformer_base_forward(inputs, params):
    """TransformerBase.forward; the Transformer body (self.main) is not in the spec."""
    class_ids = inputs["class_objects"].astype(jnp.int32)          # .long()
    node_emb = obj_name_coord_state_encode(
        class_ids, inputs["object_coords"], inputs["states_objects"], params)
    if node_emb.shape[1] == 1:                                     # torch .squeeze(1)
        node_emb = node_emb[:, 0]
    _ = inputs["mask_object"]  # consumed only by the missing Transformer
    # TODO(synk): `self.main` (Transformer) class body is not provided in the spec;
    # returning the fused ObjNameCoordStateEncode node embeddings directly.
    return node_emb


# -----------------------------------------------------------------------------
# Deterministic params + pure-JAX reference
# -----------------------------------------------------------------------------
def init_params(key, hidden=128, num_classes=100, num_states=4):
    half = hidden // 2
    k = jax.random.split(key, 9)
    return {
        "emb":    jax.random.normal(k[0], (num_classes, half), jnp.float32) * 0.02,
        "w_c1":   jax.random.normal(k[1], (6, half), jnp.float32) * 0.1,
        "b_c1":   jax.random.normal(k[2], (half,), jnp.float32) * 0.01,
        "w_c2":   jax.random.normal(k[3], (half, half), jnp.float32) * 0.1,
        "b_c2":   jax.random.normal(k[4], (half,), jnp.float32) * 0.01,
        "w_s":    jax.random.normal(k[5], (num_states, half), jnp.float32) * 0.1,
        "b_s":    jax.random.normal(k[6], (half,), jnp.float32) * 0.01,
        "w_comb": jax.random.normal(k[7], (3 * half, hidden), jnp.float32) * 0.05,
        "b_comb": jax.random.normal(k[8], (hidden,), jnp.float32) * 0.01,
    }


def reference_encode(class_ids, coords, state, params):
    ce = params["emb"][class_ids]                                          # (B,N,half)
    h = jnp.maximum(coords @ params["w_c1"] + params["b_c1"], 0.0)
    me = h @ params["w_c2"] + params["b_c2"]
    se = state @ params["w_s"] + params["b_s"]
    cat = jnp.concatenate([ce, me, se], axis=-1)
    return jnp.maximum(cat, 0.0) @ params["w_comb"] + params["b_comb"]


if __name__ == "__main__":
    jax.config.update("jax_default_matmul_precision", "highest")

    key = jax.random.PRNGKey(0)
    kp, ki, kc, ks = jax.random.split(key, 4)

    hidden, num_classes, num_states = 128, 100, 4
    B, N = 2, 8

    params = init_params(kp, hidden=hidden, num_classes=num_classes,
                         num_states=num_states)
    inputs = {
        "class_objects": jax.random.randint(ki, (B, N), 0, num_classes, dtype=jnp.int32),
        "object_coords": jax.random.normal(kc, (B, N, 6), jnp.float32),
        "states_objects": jax.random.normal(ks, (B, N, num_states), jnp.float32),
        "mask_object": jnp.ones((B, N), jnp.float32),
    }

    out = transformer_base_forward(inputs, params)
    out = jax.block_until_ready(out)

    ref = reference_encode(inputs["class_objects"], inputs["object_coords"],
                           inputs["states_objects"], params)
    assert out.shape == (B, N, hidden), out.shape
    max_err = float(jnp.max(jnp.abs(out - ref)))
    assert jnp.allclose(out, ref, atol=1e-4, rtol=1e-4), f"mismatch vs reference: {max_err}"

    print("KERNEL_OK")
</pallas_src>

<mosaic_0001>
module attributes {stable_mosaic.version = 11 : i64} {
  func.func @_encode_kernel(%arg0: i32, %arg1: memref<128x16xf32, #tpu.memory_space<vmem>>, %arg2: memref<16x128xf32, #tpu.memory_space<vmem>>, %arg3: memref<128x128xf32, #tpu.memory_space<vmem>>, %arg4: memref<1x128xf32, #tpu.memory_space<vmem>>, %arg5: memref<128x128xf32, #tpu.memory_space<vmem>>, %arg6: memref<128x128xf32, #tpu.memory_space<vmem>>, %arg7: memref<1x128xf32, #tpu.memory_space<vmem>>, %arg8: memref<128x128xf32, #tpu.memory_space<vmem>>) attributes {dimension_semantics = [#tpu.dimension_semantics<parallel>], iteration_bounds = array<i64: 1>, scalar_prefetch = 0 : i64, scratch_operands = 0 : i64, tpu.core_type = #tpu.core_type<tc>, window_params = [{transform_indices = @transform_0, window_bounds = array<i64: 128, 16>}, {pipeline_mode = #tpu.pipeline_mode<synchronous>, transform_indices = @transform_1, window_bounds = array<i64: 16, 128>}, {pipeline_mode = #tpu.pipeline_mode<synchronous>, transform_indices = @transform_2, window_bounds = array<i64: 128, 128>}, {pipeline_mode = #tpu.pipeline_mode<synchronous>, transform_indices = @transform_3, window_bounds = array<i64: 1, 128>}, {pipeline_mode = #tpu.pipeline_mode<synchronous>, transform_indices = @transform_4, window_bounds = array<i64: 128, 128>}, {pipeline_mode = #tpu.pipeline_mode<synchronous>, transform_indices = @transform_5, window_bounds = array<i64: 128, 128>}, {pipeline_mode = #tpu.pipeline_mode<synchronous>, transform_indices = @transform_6, window_bounds = array<i64: 1, 128>}, {transform_indices = @transform_7, window_bounds = array<i64: 128, 128>}]} {
    %c0 = arith.constant 0 : index
    %c0_0 = arith.constant 0 : index
    %0 = vector.load %arg1[%c0, %c0_0] : memref<128x16xf32, #tpu.memory_space<vmem>>, vector<128x16xf32>
    %c0_1 = arith.constant 0 : index
    %c0_2 = arith.constant 0 : index
    %1 = vector.load %arg2[%c0_1, %c0_2] : memref<16x128xf32, #tpu.memory_space<vmem>>, vector<16x128xf32>
    %cst = arith.constant dense<0.000000e+00> : vector<128x128xf32>
    %2 = tpu.matmul %0, %1, %cst {dimension_numbers = #tpu.dot_dimension_numbers<[1], [0], [0], [1], [0, 0, 1, 1], [], []>, precision = #tpu.contract_precision<fp32>} : vector<128x16xf32>, vector<16x128xf32>, vector<128x128xf32> -> vector<128x128xf32>
    %cst_3 = arith.constant 0.000000e+00 : f32
    %3 = vector.broadcast %cst_3 : f32 to vector<128x128xf32>
    %4 = arith.maximumf %2, %3 : vector<128x128xf32>
    %c0_4 = arith.constant 0 : index
    %c0_5 = arith.constant 0 : index
    %5 = vector.load %arg3[%c0_4, %c0_5] : memref<128x128xf32, #tpu.memory_space<vmem>>, vector<128x128xf32>
    %cst_6 = arith.constant dense<0.000000e+00> : vector<128x128xf32>
    %6 = tpu.matmul %4, %5, %cst_6 {dimension_numbers = #tpu.dot_dimension_numbers<[1], [0], [0], [1], [0, 0, 1, 1], [], []>, precision = #tpu.contract_precision<fp32>} : vector<128x128xf32>, vector<128x128xf32>, vector<128x128xf32> -> vector<128x128xf32>
    %c0_7 = arith.constant 0 : index
    %c0_8 = arith.constant 0 : index
    %7 = vector.load %arg4[%c0_7, %c0_8] : memref<1x128xf32, #tpu.memory_space<vmem>>, vector<1x128xf32>
    %8 = vector.broadcast %7 : vector<1x128xf32> to vector<128x128xf32>
    %9 = arith.addf %6, %8 : vector<128x128xf32>
    %cst_9 = arith.constant 0.000000e+00 : f32
    %10 = vector.broadcast %cst_9 : f32 to vector<128x128xf32>
    %11 = arith.maximumf %9, %10 : vector<128x128xf32>
    %12 = vector.extract_strided_slice %0 {offsets = [0, 7], sizes = [128, 1], strides = [1, 1]} : vector<128x16xf32> to vector<128x1xf32>
    %13 = arith.fptosi %12 : vector<128x1xf32> to vector<128x1xi32>
    %14 = tpu.iota {dimensions = array<i32: 1>} : vector<128x128xi32>
    %15 = vector.broadcast %13 : vector<128x1xi32> to vector<128x128xi32>
    %16 = arith.cmpi eq, %15, %14 : vector<128x128xi32>
    %17 = arith.extui %16 : vector<128x128xi1> to vector<128x128xi32>
    %18 = arith.sitofp %17 : vector<128x128xi32> to vector<128x128xf32>
    %c0_10 = arith.constant 0 : index
    %c0_11 = arith.constant 0 : index
    %19 = vector.load %arg5[%c0_10, %c0_11] : memref<128x128xf32, #tpu.memory_space<vmem>>, vector<128x128xf32>
    %cst_12 = arith.constant dense<0.000000e+00> : vector<128x128xf32>
    %20 = tpu.matmul %18, %19, %cst_12 {dimension_numbers = #tpu.dot_dimension_numbers<[1], [0], [0], [1], [0, 0, 1, 1], [], []>, precision = #tpu.contract_precision<fp32>} : vector<128x128xf32>, vector<128x128xf32>, vector<128x128xf32> -> vector<128x128xf32>
    %c0_13 = arith.constant 0 : index
    %c0_14 = arith.constant 0 : index
    %21 = vector.load %arg6[%c0_13, %c0_14] : memref<128x128xf32, #tpu.memory_space<vmem>>, vector<128x128xf32>
    %cst_15 = arith.constant dense<0.000000e+00> : vector<128x128xf32>
    %22 = tpu.matmul %11, %21, %cst_15 {dimension_numbers = #tpu.dot_dimension_numbers<[1], [0], [0], [1], [0, 0, 1, 1], [], []>, precision = #tpu.contract_precision<fp32>} : vector<128x128xf32>, vector<128x128xf32>, vector<128x128xf32> -> vector<128x128xf32>
    %23 = arith.addf %20, %22 : vector<128x128xf32>
    %c0_16 = arith.constant 0 : index
    %c0_17 = arith.constant 0 : index
    %24 = vector.load %arg7[%c0_16, %c0_17] : memref<1x128xf32, #tpu.memory_space<vmem>>, vector<1x128xf32>
    %25 = vector.broadcast %24 : vector<1x128xf32> to vector<128x128xf32>
    %26 = arith.addf %23, %25 : vector<128x128xf32>
    %c0_18 = arith.constant 0 : index
    %c0_19 = arith.constant 0 : index
    %27 = vector.load %arg8[%c0_18, %c0_19] : memref<128x128xf32, #tpu.memory_space<vmem>>, vector<128x128xf32>
    tpu.vector_store %arg8[%c0_18, %c0_19], %26 {strides = array<i32>} : memref<128x128xf32, #tpu.memory_space<vmem>>, vector<128x128xf32>,
    return
  }
  func.func @transform_0(%arg0: i32) -> (i32, i32) {
    %c0_i32 = arith.constant 0 : i32
    %c0_i32_0 = arith.constant 0 : i32
    return %arg0, %c0_i32 : i32, i32
  }
  func.func @transform_1(%arg0: i32) -> (i32, i32) {
    %c0_i32 = arith.constant 0 : i32
    %c0_i32_0 = arith.constant 0 : i32
    %c0_i32_1 = arith.constant 0 : i32
    return %c0_i32, %c0_i32_0 : i32, i32
  }
  func.func @transform_2(%arg0: i32) -> (i32, i32) {
    %c0_i32 = arith.constant 0 : i32
    %c0_i32_0 = arith.constant 0 : i32
    %c0_i32_1 = arith.constant 0 : i32
    return %c0_i32, %c0_i32_0 : i32, i32
  }
  func.func @transform_3(%arg0: i32) -> (i32, i32) {
    %c0_i32 = arith.constant 0 : i32
    %c0_i32_0 = arith.constant 0 : i32
    %c0_i32_1 = arith.constant 0 : i32
    return %c0_i32, %c0_i32_0 : i32, i32
  }
  func.func @transform_4(%arg0: i32) -> (i32, i32) {
    %c0_i32 = arith.constant 0 : i32
    %c0_i32_0 = arith.constant 0 : i32
    %c0_i32_1 = arith.constant 0 : i32
    return %c0_i32, %c0_i32_0 : i32, i32
  }
  func.func @transform_5(%arg0: i32) -> (i32, i32) {
    %c0_i32 = arith.constant 0 : i32
    %c0_i32_0 = arith.constant 0 : i32
    %c0_i32_1 = arith.constant 0 : i32
    return %c0_i32, %c0_i32_0 : i32, i32
  }
  func.func @transform_6(%arg0: i32) -> (i32, i32) {
    %c0_i32 = arith.constant 0 : i32
    %c0_i32_0 = arith.constant 0 : i32
    %c0_i32_1 = arith.constant 0 : i32
    return %c0_i32, %c0_i32_0 : i32, i32
  }
  func.func @transform_7(%arg0: i32) -> (i32, i32) {
    %c0_i32 = arith.constant 0 : i32
    %c0_i32_0 = arith.constant 0 : i32
    return %arg0, %c0_i32 : i32, i32
  }
}

</mosaic_0001>

<bundles_post_ra>
// kernel: tpu_custom_call.1
= control target key start
LH: loop header
LB: loop body
LE: loop exit
PB: predicated region body
PF: predicated region fallthrough
CT: control target
= control target key end

     0   :  { %12 = vsyncpa [#allocation3], 0  ;;  %s5740_s0 = inlined_call_operand.vmem [shape: f32[128,16], index: 0, kind: input, shape index: {}]   ;;  %s5741_s1 = inlined_call_operand.vmem [shape: f32[16,128], index: 1, kind: input, shape index: {}]   ;;  %s5742_s2 = inlined_call_operand.vmem [shape: f32[128,128], index: 2, kind: input, shape index: {}]   ;;  %s5743_s3 = inlined_call_operand.vmem [shape: f32[1,128], index: 3, kind: input, shape index: {}]   ;;  %s5744_s4 = inlined_call_operand.hbm [shape: f32[128,128], index: 4, kind: input, shape index: {}]   ;;  %s5745_s5 = inlined_call_operand.hbm [shape: f32[128,128], index: 5, kind: input, shape index: {}]   ;;  %s5746_s6 = inlined_call_operand.vmem [shape: f32[1,128], index: 6, kind: input, shape index: {}]   ;;  %s5747_s7 = inlined_call_operand.hbm [shape: f32[128,128], index: 7, kind: output, shape index: {}]  }
   0x1   :  { %13 = vsyncpa [#allocation6], 0 }
   0x2   :  { %14 = vsyncpa [#allocation4], 0  ;;  %s27_s26 = sshll.u32 %s5744_s4, 4  ;;  %s3674_s27 = smov [#allocation2]   ;;  %s28_s26 = int_to_ptr.hbm [resolvable:$true] %s27_s26 }
   0x3   :  { %s29_s28 = sshll.u32 %s3674_s27, 4  ;;  %s40_s8 = sshll.u32 %s5745_s5, 4  ;;  %s30_s28 = int_to_ptr.vmem [resolvable:$true] %s29_s28  ;;  %s41_s8 = int_to_ptr.hbm [resolvable:$true] %s40_s8 }
   0x4   :  { %s3675_s9 = smov 128   ;;  %s3676_s10 = smov 8  }
   0x5   :  { %35 = dma.hbm_to_vmem [thread:$0]  %s28_s26, 2048, %s30_s28, [#allocation3], %s3675_s9, %s3675_s9, %s3676_s10  }
   0x6   :  { %s3677_s11 = smov [#allocation5]  }
   0x7   :  { %s42_s12 = sshll.u32 %s3677_s11, 4  ;;  %s43_s12 = int_to_ptr.vmem [resolvable:$true] %s42_s12 }
   0x8   :  { %48 = dma.hbm_to_vmem [thread:$0]  %s41_s8, 2048, %s43_s12, [#allocation6], %s3675_s9, %s3675_s9, %s3676_s10  }
   0x9   :  { %3668 = dma.done.wait [#allocation3], 2048  }
   0xa   :  { %3669 = vsyncadd [#allocation3], 4294965248 }
   0xb   :  { %3670 = dma.done.wait [#allocation6], 2048  }
   0xc   :  { %3671 = vsyncadd [#allocation6], 4294965248  ;;  %vm77_vm0 = vcmask 130048   ;;  %v76_v0 = vld [vmem:[%s5741_s1 + $0x8] sm:$0xff]  ;;  %v75_v1 = vld [vmem:[%s5741_s1] sm:$0xff]  ;;  %s3408_s20 = sshll.u32 %s5747_s7, 4  ;;  %s3409_s20 = int_to_ptr.hbm [resolvable:$true] %s3408_s20 }
   0xd   :  { %v59_v2 = vld [vmem:[%s5740_s0] sm:$0xff]  ;;  %v140_v3 = vand.u32 4294901760, %v76_v0  ;;  %v142_v4 = vand.u32 4294901760, %v75_v1  ;;  %v60_v6 = vld [vmem:[%s5740_s0 + $0x8] sm:$0xff]  ;;  %v61_v9 = vld [vmem:[%s5740_s0 + $0x10] sm:$0xff] }
   0xe   :  { %v79_v5 = vsel %vm77_vm0, %v59_v2, 0  ;;  %v82_v8 = vsel %vm77_vm0, %v60_v6, 0  ;;  %v85_v17 = vsel %vm77_vm0, %v61_v9, 0  ;;  %v62_v27 = vld [vmem:[%s5740_s0 + $0x18] sm:$0xff]  ;;  %v63_v34 = vld [vmem:[%s5740_s0 + $0x20] sm:$0xff]  ;;  %v64_v41 = vld [vmem:[%s5740_s0 + $0x28] sm:$0xff] }
   0xf   :  { %v3747_v7 = vand.u32 4294901760, %v79_v5  ;;  %v288_v10 = vsub.f32 %v76_v0, %v140_v3  ;;  %141 = vmatpush.msra.mxu0 %v140_v3  ;;  %v294_v11 = vsub.f32 %v75_v1, %v142_v4  ;;  %480 = vmatpush.msra.mxu3 %v140_v3  ;;  %v3753_v12 = vand.u32 4294901760, %v82_v8  ;;  %v65_v48 = vld [vmem:[%s5740_s0 + $0x30] sm:$0xff]  ;;  %v66_v55 = vld [vmem:[%s5740_s0 + $0x38] sm:$0xff]  ;;  %v67_v62 = vld [vmem:[%s5740_s0 + $0x40] sm:$0xff] }
  0x10   :  { %v3758_v23 = vand.u32 4294901760, %v85_v17  ;;  %v88_v30 = vsel %vm77_vm0, %v62_v27, 0  ;;  %v91_v37 = vsel %vm77_vm0, %v63_v34, 0  ;;  %v94_v44 = vsel %vm77_vm0, %v64_v41, 0 }
  0x11   :  { %v145_v13 = vsub.f32 %v79_v5, %v3747_v7  ;;  %380 = vmatpush.msra.mxu2 %v288_v10  ;;  %143 = vmatpush.msra.mxu0 %v142_v4  ;;  %v289_v14 = vand.u32 4294901760, %v288_v10  ;;  %v295_v15 = vand.u32 4294901760, %v294_v11  ;;  %v153_v16 = vsub.f32 %v82_v8, %v3753_v12  ;;  %v68_v5 = vld [vmem:[%s5740_s0 + $0x48] sm:$0xff] }
  0x12   :  { %482 = vmatpush.msra.mxu3 %v142_v4  ;;  %v161_v29 = vsub.f32 %v85_v17, %v3758_v23  ;;  %v3766_v33 = vand.u32 4294901760, %v88_v30  ;;  %v3774_v40 = vand.u32 4294901760, %v91_v37  ;;  %v3782_v47 = vand.u32 4294901760, %v94_v44 }
  0x13   :  { %v146_v18 = vand.u32 4294901760, %v145_v13  ;;  %383 = vmatpush.msra.mxu2 %v294_v11  ;;  %v290_v19 = vsub.f32 %v288_v10, %v289_v14  ;;  %597 = vmatpush.msrb.mxu0 %v289_v14  ;;  %v296_v20 = vsub.f32 %v294_v11, %v295_v15  ;;  %v154_v22 = vand.u32 4294901760, %v153_v16  ;;  %v69_v14 = vld [vmem:[%s5740_s0 + $0x50] sm:$0xff] }
  0x14   :  { %386 = vmatmul.f32.vlgmr.msra.gmra.mxu2 %v145_v13  ;;  %v162_v32 = vand.u32 4294901760, %v161_v29  ;;  %v169_v36 = vsub.f32 %v88_v30, %v3766_v33  ;;  %v177_v43 = vsub.f32 %v91_v37, %v3774_v40  ;;  %v185_v50 = vsub.f32 %v94_v44, %v3782_v47  ;;  %v72_v37 = vld [vmem:[%s5740_s0 + $0x68] sm:$0xff] }
  0x15   :  { %v147_v21 = vsub.f32 %v145_v13, %v146_v18  ;;  %486 = vmatmul.f32.vlgmr.msra.gmra.mxu3 %v146_v18  ;;  %v291_v24 = vand.u32 4294901760, %v290_v19  ;;  %v297_v25 = vand.u32 4294901760, %v296_v20  ;;  %601 = vmatpush.msrb.mxu0 %v295_v15  ;;  %v155_v28 = vsub.f32 %v153_v16, %v154_v22 }
  0x16   :  { %v163_v35 = vsub.f32 %v161_v29, %v162_v32  ;;  %v170_v39 = vand.u32 4294901760, %v169_v36  ;;  %v178_v46 = vand.u32 4294901760, %v177_v43  ;;  %v97_v51 = vsel %vm77_vm0, %v65_v48, 0 }
  0x17   :  { %v148_v26 = vand.u32 4294901760, %v147_v21  ;;  %292 = vmatpush.msra.mxu1 %v291_v24  ;;  %v156_v31 = vand.u32 4294901760, %v155_v28  ;;  %v186_v53 = vand.u32 4294901760, %v185_v50  ;;  %v3790_v54 = vand.u32 4294901760, %v97_v51  ;;  %v70_v21 = vld [vmem:[%s5740_s0 + $0x58] sm:$0xff] }
  0x18   :  { %v164_v38 = vand.u32 4294901760, %v163_v35  ;;  %v171_v42 = vsub.f32 %v169_v36, %v170_v39  ;;  %v179_v49 = vsub.f32 %v177_v43, %v178_v46  ;;  %v100_v58 = vsel %vm77_vm0, %v66_v55, 0 }
  0x19   :  { %149 = vmatmul.f32.vlgmr.msra.gmra.mxu0 %v148_v26  ;;  %298 = vmatpush.msra.mxu1 %v297_v25  ;;  %v187_v56 = vsub.f32 %v185_v50, %v186_v53  ;;  %v193_v57 = vsub.f32 %v97_v51, %v3790_v54  ;;  %v3798_v61 = vand.u32 4294901760, %v100_v58  ;;  %v103_v1 = vsel %vm77_vm0, %v67_v62, 0 }
  0x1a   :  { %300 = vmatmul.f32.vlgmr.msra.gmra.mxu1 %v3747_v7  ;;  %v172_v45 = vand.u32 4294901760, %v171_v42  ;;  %v180_v52 = vand.u32 4294901760, %v179_v49  ;;  %v106_v9 = vsel %vm77_vm0, %v68_v5, 0  ;;  %v109_v17 = vsel %vm77_vm0, %v69_v14, 0 }
  0x1b   :  { %682 = vmatpush.msrb.mxu1 %v140_v3  ;;  %v188_v59 = vand.u32 4294901760, %v187_v56  ;;  %v194_v60 = vand.u32 4294901760, %v193_v57  ;;  %v201_v0 = vsub.f32 %v100_v58, %v3798_v61  ;;  %v3814_v13 = vand.u32 4294901760, %v106_v9 }
  0x1c   :  { %391 = vmatmul.f32.gmra.mxu2 %v153_v16  ;;  %v3822_v20 = vand.u32 4294901760, %v109_v17  ;;  %v112_v25 = vsel %vm77_vm0, %v70_v21, 0  ;;  %v118_v41 = vsel %vm77_vm0, %v72_v37, 0  ;;  %v779_v21 = vld [vmem:[%s5742_s2 + $0x68] sm:$0xff] }
  0x1d   :  { %492 = vmatmul.f32.gmra.mxu3 %v154_v22  ;;  %684 = vmatpush.msrb.mxu1 %v142_v4  ;;  %v195_v63 = vsub.f32 %v193_v57, %v194_v60  ;;  %v202_v3 = vand.u32 4294901760, %v201_v0  ;;  %v3806_v4 = vand.u32 4294901760, %v103_v1  ;;  %v217_v16 = vsub.f32 %v106_v9, %v3814_v13 }
  0x1e   :  { %v225_v24 = vsub.f32 %v109_v17, %v3822_v20  ;;  %v3830_v28 = vand.u32 4294901760, %v112_v25  ;;  %v3846_v44 = vand.u32 4294901760, %v118_v41 }
  0x1f   :  { %v196_v2 = vand.u32 4294901760, %v195_v63  ;;  %v203_v6 = vsub.f32 %v201_v0, %v202_v3  ;;  %v209_v8 = vsub.f32 %v103_v1, %v3806_v4  ;;  %v218_v19 = vand.u32 4294901760, %v217_v16 }
  0x20   :  { %v226_v27 = vand.u32 4294901760, %v225_v24  ;;  %v249_v48 = vsub.f32 %v118_v41, %v3846_v44  ;;  %v777_v41 = vld [vmem:[%s5742_s2 + $0x58] sm:$0xff] }
  0x21   :  { %157 = vmatmul.f32.gmra.mxu0 %v156_v31  ;;  %v204_v10 = vand.u32 4294901760, %v203_v6  ;;  %v210_v11 = vand.u32 4294901760, %v209_v8  ;;  %v219_v22 = vsub.f32 %v217_v16, %v218_v19  ;;  %v233_v31 = vsub.f32 %v112_v25, %v3830_v28 }
  0x22   :  { %304 = vmatmul.f32.gmra.mxu1 %v3753_v12  ;;  %v227_v30 = vsub.f32 %v225_v24, %v226_v27  ;;  %v250_v51 = vand.u32 4294901760, %v249_v48 }
  0x23   :  { %v211_v15 = vsub.f32 %v209_v8, %v210_v11  ;;  %v220_v26 = vand.u32 4294901760, %v219_v22  ;;  %v234_v35 = vand.u32 4294901760, %v233_v31 }
  0x24   :  { %396 = vmatmul.f32.gmra.mxu2 %v161_v29  ;;  %v71_v29 = vld [vmem:[%s5740_s0 + $0x60] sm:$0xff]  ;;  %v228_v34 = vand.u32 4294901760, %v227_v30  ;;  %v251_v55 = vsub.f32 %v249_v48, %v250_v51 }
  0x25   :  { %498 = vmatmul.f32.gmra.mxu3 %v162_v32  ;;  %v212_v18 = vand.u32 4294901760, %v211_v15  ;;  %v115_v32 = vsel %vm77_vm0, %v71_v29, 0 }
  0x26   :  { %v252_v58 = vand.u32 4294901760, %v251_v55 }
  0x29   :  { %165 = vmatmul.f32.gmra.mxu0 %v164_v38  ;;  %v235_v38 = vsub.f32 %v233_v31, %v234_v35 }
  0x2a   :  { %308 = vmatmul.f32.gmra.mxu1 %v3758_v23 }
  0x2b   :  { %v236_v42 = vand.u32 4294901760, %v235_v38 }
  0x2c   :  { %401 = vmatmul.f32.gmra.mxu2 %v169_v36  ;;  %v3838_v36 = vand.u32 4294901760, %v115_v32 }
  0x2d   :  { %504 = vmatmul.f32.gmra.mxu3 %v170_v39 }
  0x2e   :  { %v241_v39 = vsub.f32 %v115_v32, %v3838_v36 }
  0x31   :  { %173 = vmatmul.f32.gmra.mxu0 %v172_v45  ;;  %v73_v45 = vld [vmem:[%s5740_s0 + $0x70] sm:$0xff] }
  0x32   :  { %312 = vmatmul.f32.gmra.mxu1 %v3766_v33  ;;  %v121_v49 = vsel %vm77_vm0, %v73_v45, 0 }
  0x34   :  { %406 = vmatmul.f32.gmra.mxu2 %v177_v43  ;;  %v242_v43 = vand.u32 4294901760, %v241_v39 }
  0x35   :  { %510 = vmatmul.f32.gmra.mxu3 %v178_v46 }
  0x36   :  { %v243_v46 = vsub.f32 %v241_v39, %v242_v43 }
  0x39   :  { %181 = vmatmul.f32.gmra.mxu0 %v180_v52  ;;  %v3854_v52 = vand.u32 4294901760, %v121_v49 }
  0x3a   :  { %316 = vmatmul.f32.gmra.mxu1 %v3774_v40 }
  0x3b   :  { %v257_v56 = vsub.f32 %v121_v49, %v3854_v52 }
  0x3c   :  { %411 = vmatmul.f32.gmra.mxu2 %v185_v50  ;;  %v244_v50 = vand.u32 4294901760, %v243_v46 }
  0x3d   :  { %516 = vmatmul.f32.gmra.mxu3 %v186_v53  ;;  %v74_v53 = vld [vmem:[%s5740_s0 + $0x78] sm:$0xff] }
  0x41   :  { %189 = vmatmul.f32.gmra.mxu0 %v188_v59  ;;  %v258_v59 = vand.u32 4294901760, %v257_v56 }
  0x42   :  { %320 = vmatmul.f32.gmra.mxu1 %v3782_v47 }
  0x43   :  { %v259_v62 = vsub.f32 %v257_v56, %v258_v59 }
  0x44   :  { %416 = vmatmul.f32.gmra.mxu2 %v193_v57  ;;  %v124_v57 = vsel %vm77_vm0, %v74_v53, 0 }
  0x45   :  { %522 = vmatmul.f32.gmra.mxu3 %v194_v60  ;;  %v3862_v60 = vand.u32 4294901760, %v124_v57 }
  0x47   :  { %v265_v63 = vsub.f32 %v124_v57, %v3862_v60 }
  0x49   :  { %197 = vmatmul.f32.gmra.mxu0 %v196_v2  ;;  %v266_v1 = vand.u32 4294901760, %v265_v63  ;;  %v781_v2 = vld [vmem:[%s5742_s2 + $0x78] sm:$0xff] }
  0x4a   :  { %324 = vmatmul.f32.gmra.mxu1 %v3790_v54 }
  0x4b   :  { %v267_v5 = vsub.f32 %v265_v63, %v266_v1 }
  0x4c   :  { %421 = vmatmul.f32.gmra.mxu2 %v201_v0  ;;  %v260_v0 = vand.u32 4294901760, %v259_v62 }
  0x4d   :  { %528 = vmatmul.f32.gmra.mxu3 %v202_v3  ;;  %v3869_v3 = vand.u32 4294901760, %v781_v2  ;;  %v268_v9 = vand.u32 4294901760, %v267_v5 }
  0x4f   :  { %787 = vmatpush.msrb.mxu2 %v3869_v3  ;;  %v3873_v6 = vsub.f32 %v781_v2, %v3869_v3  ;;  %1238 = vmatpush.msra.mxu1 %v3869_v3 }
  0x51   :  { %205 = vmatmul.f32.gmra.mxu0 %v204_v10 }
  0x52   :  { %328 = vmatmul.f32.gmra.mxu1 %v3798_v61  ;;  %1110 = vmatpush.msra.mxu0 %v3873_v6 }
  0x54   :  { %426 = vmatmul.f32.gmra.mxu2 %v209_v8  ;;  %v5760_v8 = vand.u32 4294901760, %v3873_v6 }
  0x55   :  { %534 = vmatmul.f32.gmra.mxu3 %v210_v11  ;;  %v780_v11 = vld [vmem:[%s5742_s2 + $0x70] sm:$0xff] }
  0x56   :  { %v950_v10 = vsub.f32 %v3873_v6, %v5760_v8  ;;  %v3885_v15 = vand.u32 4294901760, %v780_v11 }
  0x58   :  { %v951_v14 = vand.u32 4294901760, %v950_v10  ;;  %789 = vmatpush.msrb.mxu2 %v3885_v15  ;;  %1240 = vmatpush.msra.mxu1 %v3885_v15 }
  0x59   :  { %213 = vmatmul.f32.gmra.mxu0 %v212_v18 }
  0x5a   :  { %332 = vmatmul.f32.gmra.mxu1 %v3806_v4  ;;  %952 = vmatpush.msrb.mxu3 %v951_v14 }
  0x5c   :  { %431 = vmatmul.f32.gmra.mxu2 %v217_v16  ;;  %v3888_v16 = vsub.f32 %v780_v11, %v3885_v15 }
  0x5d   :  { %540 = vmatmul.f32.gmra.mxu3 %v218_v19 }
  0x5e   :  { %v5759_v17 = vand.u32 4294901760, %v3888_v16  ;;  %1113 = vmatpush.msra.mxu0 %v3888_v16 }
  0x60   :  { %v956_v18 = vsub.f32 %v3888_v16, %v5759_v17 }
  0x61   :  { %221 = vmatmul.f32.gmra.mxu0 %v220_v26 }
  0x62   :  { %336 = vmatmul.f32.gmra.mxu1 %v3814_v13  ;;  %v957_v22 = vand.u32 4294901760, %v956_v18 }
  0x64   :  { %436 = vmatmul.f32.gmra.mxu2 %v225_v24  ;;  %v3903_v24 = vand.u32 4294901760, %v779_v21  ;;  %958 = vmatpush.msrb.mxu3 %v957_v22 }
  0x65   :  { %546 = vmatmul.f32.gmra.mxu3 %v226_v27 }
  0x66   :  { %v3909_v26 = vsub.f32 %v779_v21, %v3903_v24  ;;  %791 = vmatpush.msrb.mxu2 %v3903_v24  ;;  %1242 = vmatpush.msra.mxu1 %v3903_v24 }
  0x68   :  { %v5757_v27 = vand.u32 4294901760, %v3909_v26  ;;  %1116 = vmatpush.msra.mxu0 %v3909_v26 }
  0x69   :  { %229 = vmatmul.f32.gmra.mxu0 %v228_v34 }
  0x6a   :  { %340 = vmatmul.f32.gmra.mxu1 %v3822_v20  ;;  %v962_v29 = vsub.f32 %v3909_v26, %v5757_v27 }
  0x6c   :  { %441 = vmatmul.f32.gmra.mxu2 %v233_v31  ;;  %v778_v31 = vld [vmem:[%s5742_s2 + $0x60] sm:$0xff]  ;;  %v963_v32 = vand.u32 4294901760, %v962_v29  ;;  %v773_v29 = vld [vmem:[%s5742_s2 + $0x38] sm:$0xff] }
  0x6d   :  { %552 = vmatmul.f32.gmra.mxu3 %v234_v35  ;;  %v3924_v34 = vand.u32 4294901760, %v778_v31 }
  0x6e   :  { %964 = vmatpush.msrb.mxu3 %v963_v32  ;;  %v4029_v32 = vand.u32 4294901760, %v773_v29 }
  0x6f   :  { %793 = vmatpush.msrb.mxu2 %v3924_v34  ;;  %1244 = vmatpush.msra.mxu1 %v3924_v34 }
  0x71   :  { %237 = vmatmul.f32.gmra.mxu0 %v236_v42 }
  0x72   :  { %344 = vmatmul.f32.gmra.mxu1 %v3830_v28 }
  0x74   :  { %446 = vmatmul.f32.gmra.mxu2 %v241_v39 }
  0x75   :  { %558 = vmatmul.f32.gmra.mxu3 %v242_v43  ;;  %v3945_v43 = vand.u32 4294901760, %v777_v41 }
  0x77   :  { %795 = vmatpush.msrb.mxu2 %v3945_v43  ;;  %1246 = vmatpush.msra.mxu1 %v3945_v43 }
  0x79   :  { %245 = vmatmul.f32.gmra.mxu0 %v244_v50  ;;  %v776_v50 = vld [vmem:[%s5742_s2 + $0x50] sm:$0xff] }
  0x7a   :  { %348 = vmatmul.f32.gmra.mxu1 %v3838_v36  ;;  %v3966_v53 = vand.u32 4294901760, %v776_v50 }
  0x7c   :  { %451 = vmatmul.f32.gmra.mxu2 %v249_v48  ;;  %1248 = vmatpush.msra.mxu1 %v3966_v53 }
  0x7d   :  { %564 = vmatmul.f32.gmra.mxu3 %v250_v51  ;;  %797 = vmatpush.msrb.mxu2 %v3966_v53 }
  0x81   :  { %253 = vmatmul.f32.gmra.mxu0 %v252_v58 }
  0x82   :  { %352 = vmatmul.f32.gmra.mxu1 %v3846_v44 }
  0x84   :  { %456 = vmatmul.f32.gmra.mxu2 %v257_v56 }
  0x85   :  { %570 = vmatmul.f32.gmra.mxu3 %v258_v59  ;;  %v775_v59 = vld [vmem:[%s5742_s2 + $0x48] sm:$0xff] }
  0x89   :  { %261 = vmatmul.f32.gmra.mxu0 %v260_v0 }
  0x8a   :  { %356 = vmatmul.f32.gmra.mxu1 %v3854_v52 }
  0x8c   :  { %461 = vmatmul.f32.gmra.mxu2 %v265_v63  ;;  %v3987_v63 = vand.u32 4294901760, %v775_v59 }
  0x8d   :  { %576 = vmatmul.f32.gmra.mxu3 %v266_v1 }
  0x8e   :  { %799 = vmatpush.msrb.mxu2 %v3987_v63  ;;  %1250 = vmatpush.msra.mxu1 %v3987_v63 }
  0x91   :  { %269 = vmatmul.f32.gmra.mxu0 %v268_v9  ;;  %v774_v9 = vld [vmem:[%s5742_s2 + $0x40] sm:$0xff] }
  0x92   :  { %360 = vmatmul.f32.gmra.mxu1 %v3862_v60  ;;  %v4008_v11 = vand.u32 4294901760, %v774_v9 }
  0x94   :  { %801 = vmatpush.msrb.mxu2 %v4008_v11  ;;  %1252 = vmatpush.msra.mxu1 %v4008_v11 }
  0x96   :  { %v3898_v19 = vpop.f32.mrf.mxu0  ;;  %803 = vmatpush.msrb.mxu2 %v4029_v32  ;;  %1254 = vmatpush.msra.mxu1 %v4029_v32 }
  0x97   :  { %v3905_v25 = vpop.f32.mrf.mxu1 }
  0x99   :  { %603 = vmatmul.f32.vlgmr.msrb.gmra.mxu0 %v3747_v7 }
  0x9a   :  { %686 = vmatmul.f32.vlgmr.msrb.gmra.mxu1 %v3747_v7  ;;  %v3930_v7 = vsub.f32 %v778_v31, %v3924_v34 }
  0x9c   :  { %v5756_v37 = vand.u32 4294901760, %v3930_v7  ;;  %1119 = vmatpush.msra.mxu0 %v3930_v7 }
  0x9e   :  { %v3919_v30 = vpop.f32.mrf.mxu0  ;;  %v968_v38 = vsub.f32 %v3930_v7, %v5756_v37  ;;  %v4136_v37 = vpop.f32.mrf.mxu2 }
  0x9f   :  { %v3926_v35 = vpop.f32.mrf.mxu1 }
  0xa0   :  { %v969_v42 = vand.u32 4294901760, %v968_v38 }
  0xa1   :  { %607 = vmatmul.f32.gmra.mxu0 %v3753_v12 }
  0xa2   :  { %690 = vmatmul.f32.gmra.mxu1 %v3753_v12  ;;  %970 = vmatpush.msrb.mxu3 %v969_v42  ;;  %v3951_v12 = vsub.f32 %v777_v41, %v3945_v43 }
  0xa4   :  { %v5755_v46 = vand.u32 4294901760, %v3951_v12  ;;  %1122 = vmatpush.msra.mxu0 %v3951_v12 }
  0xa6   :  { %v3940_v39 = vpop.f32.mrf.mxu0  ;;  %v974_v48 = vsub.f32 %v3951_v12, %v5755_v46 }
  0xa7   :  { %v3947_v45 = vpop.f32.mrf.mxu1 }
  0xa8   :  { %v975_v51 = vand.u32 4294901760, %v974_v48 }
  0xa9   :  { %611 = vmatmul.f32.gmra.mxu0 %v3758_v23 }
  0xaa   :  { %694 = vmatmul.f32.gmra.mxu1 %v3758_v23  ;;  %976 = vmatpush.msrb.mxu3 %v975_v51  ;;  %v3972_v23 = vsub.f32 %v776_v50, %v3966_v53  ;;  %v772_v50 = vld [vmem:[%s5742_s2 + $0x30] sm:$0xff] }
  0xac   :  { %v5754_v56 = vand.u32 4294901760, %v3972_v23  ;;  %1125 = vmatpush.msra.mxu0 %v3972_v23 }
  0xae   :  { %v3961_v49 = vpop.f32.mrf.mxu0  ;;  %v980_v57 = vsub.f32 %v3972_v23, %v5754_v56 }
  0xaf   :  { %v3968_v55 = vpop.f32.mrf.mxu1 }
  0xb0   :  { %v981_v62 = vand.u32 4294901760, %v980_v57  ;;  %v4050_v57 = vand.u32 4294901760, %v772_v50 }
  0xb1   :  { %615 = vmatmul.f32.gmra.mxu0 %v3766_v33 }
  0xb2   :  { %698 = vmatmul.f32.gmra.mxu1 %v3766_v33  ;;  %982 = vmatpush.msrb.mxu3 %v981_v62  ;;  %v3993_v33 = vsub.f32 %v775_v59, %v3987_v63 }
  0xb3   :  { %805 = vmatpush.msrb.mxu2 %v4050_v57  ;;  %1256 = vmatpush.msra.mxu1 %v4050_v57 }
  0xb4   :  { %v5752_v1 = vand.u32 4294901760, %v3993_v33  ;;  %1128 = vmatpush.msra.mxu0 %v3993_v33 }
  0xb6   :  { %v3982_v58 = vpop.f32.mrf.mxu0  ;;  %v986_v2 = vsub.f32 %v3993_v33, %v5752_v1 }
  0xb7   :  { %v3989_v0 = vpop.f32.mrf.mxu1 }
  0xb8   :  { %v987_v10 = vand.u32 4294901760, %v986_v2 }
  0xb9   :  { %619 = vmatmul.f32.gmra.mxu0 %v3774_v40 }
  0xba   :  { %702 = vmatmul.f32.gmra.mxu1 %v3774_v40  ;;  %988 = vmatpush.msrb.mxu3 %v987_v10  ;;  %v4014_v40 = vsub.f32 %v774_v9, %v4008_v11  ;;  %v771_v10 = vld [vmem:[%s5742_s2 + $0x28] sm:$0xff] }
  0xbc   :  { %v5751_v18 = vand.u32 4294901760, %v4014_v40  ;;  %1131 = vmatpush.msra.mxu0 %v4014_v40 }
  0xbe   :  { %v4003_v5 = vpop.f32.mrf.mxu0  ;;  %v992_v21 = vsub.f32 %v4014_v40, %v5751_v18 }
  0xbf   :  { %v4010_v14 = vpop.f32.mrf.mxu1 }
  0xc0   :  { %v993_v31 = vand.u32 4294901760, %v992_v21 }
  0xc1   :  { %623 = vmatmul.f32.gmra.mxu0 %v3782_v47 }
  0xc2   :  { %706 = vmatmul.f32.gmra.mxu1 %v3782_v47  ;;  %994 = vmatpush.msrb.mxu3 %v993_v31  ;;  %v4035_v47 = vsub.f32 %v773_v29, %v4029_v32  ;;  %v4071_v29 = vand.u32 4294901760, %v771_v10 }
  0xc4   :  { %v5750_v41 = vand.u32 4294901760, %v4035_v47  ;;  %1134 = vmatpush.msra.mxu0 %v4035_v47  ;;  %807 = vmatpush.msrb.mxu2 %v4071_v29 }
  0xc5   :  { %1258 = vmatpush.msra.mxu1 %v4071_v29 }
  0xc6   :  { %v4024_v22 = vpop.f32.mrf.mxu0  ;;  %v998_v42 = vsub.f32 %v4035_v47, %v5750_v41 }
  0xc7   :  { %v4031_v38 = vpop.f32.mrf.mxu1 }
  0xc8   :  { %v999_v51 = vand.u32 4294901760, %v998_v42 }
  0xc9   :  { %627 = vmatmul.f32.gmra.mxu0 %v3790_v54 }
  0xca   :  { %710 = vmatmul.f32.gmra.mxu1 %v3790_v54  ;;  %1000 = vmatpush.msrb.mxu3 %v999_v51  ;;  %v4056_v54 = vsub.f32 %v772_v50, %v4050_v57 }
  0xcc   :  { %v5748_v62 = vand.u32 4294901760, %v4056_v54  ;;  %1137 = vmatpush.msra.mxu0 %v4056_v54 }
  0xce   :  { %v4045_v48 = vpop.f32.mrf.mxu0  ;;  %v1004_v2 = vsub.f32 %v4056_v54, %v5748_v62 }
  0xcf   :  { %v4052_v59 = vpop.f32.mrf.mxu1 }
  0xd0   :  { %v1005_v21 = vand.u32 4294901760, %v1004_v2  ;;  %v770_v2 = vld [vmem:[%s5742_s2 + $0x20] sm:$0xff] }
  0xd1   :  { %631 = vmatmul.f32.gmra.mxu0 %v3798_v61 }
  0xd2   :  { %714 = vmatmul.f32.gmra.mxu1 %v3798_v61  ;;  %1006 = vmatpush.msrb.mxu3 %v1005_v21  ;;  %v4077_v61 = vsub.f32 %v771_v10, %v4071_v29  ;;  %v4092_v21 = vand.u32 4294901760, %v770_v2 }
  0xd4   :  { %v5749_v42 = vand.u32 4294901760, %v4077_v61  ;;  %1140 = vmatpush.msra.mxu0 %v4077_v61  ;;  %809 = vmatpush.msrb.mxu2 %v4092_v21 }
  0xd5   :  { %1260 = vmatpush.msra.mxu1 %v4092_v21 }
  0xd6   :  { %v4066_v9 = vpop.f32.mrf.mxu0  ;;  %v1010_v50 = vsub.f32 %v4077_v61, %v5749_v42 }
  0xd7   :  { %5812 = vst [vmem:[#allocation11_spill] sm:$0xff] %v4066_v9  ;;  %v4073_v31 = vpop.f32.mrf.mxu1  ;;  %v5823_v9 = vand.u32 4294901760, %v3888_v16  ;;  %v5826_v16 = vand.u32 4294901760, %v3951_v12  ;;  %v5829_v12 = vand.u32 4294901760, %v4014_v40 }
  0xd8   :  { %5813 = vst [vmem:[#allocation12_spill] sm:$0xff] %v4073_v31  ;;  %v1011_v10 = vand.u32 4294901760, %v1010_v50 }
  0xd9   :  { %635 = vmatmul.f32.gmra.mxu0 %v3806_v4 }
  0xda   :  { %718 = vmatmul.f32.gmra.mxu1 %v3806_v4  ;;  %1012 = vmatpush.msrb.mxu3 %v1011_v10  ;;  %v4098_v4 = vsub.f32 %v770_v2, %v4092_v21  ;;  %v769_v2 = vld [vmem:[%s5742_s2 + $0x18] sm:$0xff] }
  0xdb   :  { %v4113_v18 = vand.u32 4294901760, %v769_v2 }
  0xdc   :  { %v5753_v42 = vand.u32 4294901760, %v4098_v4  ;;  %1143 = vmatpush.msra.mxu0 %v4098_v4 }
  0xdd   :  { %811 = vmatpush.msrb.mxu2 %v4113_v18  ;;  %1262 = vmatpush.msra.mxu1 %v4113_v18 }
  0xde   :  { %v4087_v51 = vpop.f32.mrf.mxu0  ;;  %v1016_v50 = vsub.f32 %v4098_v4, %v5753_v42 }
  0xdf   :  { %5814 = vst [vmem:[#allocation13_spill] sm:$0xff] %v4087_v51  ;;  %v4094_v62 = vpop.f32.mrf.mxu1 }
  0xe0   :  { %5815 = vst [vmem:[#allocation14_spill] sm:$0xff] %v4094_v62  ;;  %v1017_v10 = vand.u32 4294901760, %v1016_v50  ;;  %v5821_v62 = vand.u32 4294901760, %v3873_v6 }
  0xe1   :  { %639 = vmatmul.f32.gmra.mxu0 %v3814_v13 }
  0xe2   :  { %722 = vmatmul.f32.gmra.mxu1 %v3814_v13  ;;  %1018 = vmatpush.msrb.mxu3 %v1017_v10  ;;  %v4119_v13 = vsub.f32 %v769_v2, %v4113_v18  ;;  %v768_v2 = vld [vmem:[%s5742_s2 + $0x10] sm:$0xff] }
  0xe3   :  { %v4134_v46 = vand.u32 4294901760, %v768_v2 }
  0xe4   :  { %v5758_v42 = vand.u32 4294901760, %v4119_v13  ;;  %1146 = vmatpush.msra.mxu0 %v4119_v13 }
  0xe5   :  { %v4142_v27 = vsub.f32 %v768_v2, %v4134_v46  ;;  %813 = vmatpush.msrb.mxu2 %v4134_v46  ;;  %1264 = vmatpush.msra.mxu1 %v4134_v46  ;;  %v766_v2 = vld [vmem:[%s5742_s2] sm:$0xff] }
  0xe6   :  { %v4108_v41 = vpop.f32.mrf.mxu0  ;;  %v1022_v50 = vsub.f32 %v4119_v13, %v5758_v42  ;;  %v767_v42 = vld [vmem:[%s5742_s2 + $0x8] sm:$0xff] }
  0xe7   :  { %5816 = vst [vmem:[#allocation15_spill] sm:$0xff] %v4108_v41  ;;  %v4115_v1 = vpop.f32.mrf.mxu1  ;;  %v4148_v17 = vand.u32 4294901760, %v767_v42  ;;  %1149 = vmatpush.msra.mxu0 %v4142_v27 }
  0xe8   :  { %5817 = vst [vmem:[#allocation16_spill] sm:$0xff] %v4115_v1  ;;  %v1023_v10 = vand.u32 4294901760, %v1022_v50  ;;  %v5761_v50 = vand.u32 4294901760, %v4142_v27 }
  0xe9   :  { %643 = vmatmul.f32.gmra.mxu0 %v3822_v20  ;;  %815 = vmatpush.msrb.mxu2 %v4148_v17  ;;  %v4161_v8 = vsub.f32 %v767_v42, %v4148_v17 }
  0xea   :  { %726 = vmatmul.f32.gmra.mxu1 %v3822_v20  ;;  %1024 = vmatpush.msrb.mxu3 %v1023_v10  ;;  %v4157_v10 = vpop.f32.mrf.mxu3 }
  0xeb   :  { %1266 = vmatpush.msra.mxu1 %v4148_v17  ;;  %v1033_v1 = vand.u32 4294901760, %v4161_v8  ;;  %1152 = vmatpush.msra.mxu0 %v4161_v8 }
  0xee   :  { %v4129_v56 = vpop.f32.mrf.mxu0 }
  0xef   :  { %5818 = vst [vmem:[#allocation17_spill] sm:$0xff] %v4129_v56  ;;  %v4138_v20 = vpop.f32.mrf.mxu1 }
  0xf0   :  { %5819 = vst [vmem:[#allocation18_spill] sm:$0xff] %v4138_v20  ;;  %v4163_v20 = vand.u32 4294901760, %v766_v2 }
  0xf1   :  { %647 = vmatmul.f32.gmra.mxu0 %v3830_v28 }
  0xf2   :  { %730 = vmatmul.f32.gmra.mxu1 %v3830_v28  ;;  %v1028_v28 = vsub.f32 %v4142_v27, %v5761_v50  ;;  %v4173_v41 = vsub.f32 %v766_v2, %v4163_v20  ;;  %817 = vmatpush.msrb.mxu2 %v4163_v20  ;;  %v1034_v50 = vsub.f32 %v4161_v8, %v1033_v1  ;;  %v392_v2 = vpop.f32.mrf.mxu2  ;;  %v5824_v8 = vand.u32 4294901760, %v3909_v26 }
  0xf3   :  { %1268 = vmatpush.msra.mxu1 %v4163_v20 }
  0xf4   :  { %v1029_v42 = vand.u32 4294901760, %v1028_v28  ;;  %1369 = vmatpush.msra.mxu2 %v5821_v62  ;;  %1155 = vmatpush.msra.mxu0 %v4173_v41  ;;  %v1035_v31 = vand.u32 4294901760, %v1034_v50  ;;  %v493_v62 = vpop.f32.mrf.mxu3 }
  0xf6   :  { %v4169_v56 = vpop.f32.mrf.mxu0  ;;  %1030 = vmatpush.msrb.mxu3 %v1029_v42  ;;  %1373 = vmatpush.msra.mxu2 %v5823_v9  ;;  %v5825_v42 = vand.u32 4294901760, %v3930_v7  ;;  %v5828_v7 = vand.u32 4294901760, %v3993_v33 }
  0xf7   :  { %5820 = vst [vmem:[#allocation19_spill] sm:$0xff] %v4169_v56  ;;  %v4180_v51 = vpop.f32.mrf.mxu1  ;;  %v1039_v56 = vand.u32 4294901760, %v4173_v41 }
  0xf8   :  { %5822 = vst [vmem:[#allocation20_spill] sm:$0xff] %v4180_v51  ;;  %1036 = vmatpush.msrb.mxu3 %v1035_v31  ;;  %1377 = vmatpush.msra.mxu2 %v5824_v8 }
  0xf9   :  { %651 = vmatmul.f32.gmra.mxu0 %v3838_v36  ;;  %v1040_v28 = vsub.f32 %v4173_v41, %v1039_v56 }
  0xfa   :  { %734 = vmatmul.f32.gmra.mxu1 %v3838_v36  ;;  %1381 = vmatpush.msra.mxu2 %v5825_v42  ;;  %v5827_v36 = vand.u32 4294901760, %v3972_v23  ;;  %v397_v26 = vpop.f32.mrf.mxu2 }
  0xfb   :  { %v1041_v6 = vand.u32 4294901760, %v1040_v28 }
  0xfc   :  { %1385 = vmatpush.msra.mxu2 %v5826_v16 }
  0xfd   :  { %1042 = vmatpush.msrb.mxu3 %v1041_v6 }
  0xfe   :  { %v4192_v51 = vpop.f32.mrf.mxu0  ;;  %1389 = vmatpush.msra.mxu2 %v5827_v36 }
  0xff   :  { %1496 = vmatpush.msra.mxu3 %v3869_v3  ;;  %v4197_v41 = vpop.f32.mrf.mxu1 }
 0x100   :  { %1393 = vmatpush.msra.mxu2 %v5828_v7 }
 0x101   :  { %655 = vmatmul.f32.gmra.mxu0 %v3846_v44  ;;  %1498 = vmatpush.msra.mxu3 %v3885_v15  ;;  %v499_v15 = vpop.f32.mrf.mxu3 }
 0x102   :  { %738 = vmatmul.f32.gmra.mxu1 %v3846_v44  ;;  %1397 = vmatpush.msra.mxu2 %v5829_v12  ;;  %v5830_v44 = vand.u32 4294901760, %v4035_v47  ;;  %v402_v33 = vpop.f32.mrf.mxu2 }
 0x103   :  { %1500 = vmatpush.msra.mxu3 %v3903_v24  ;;  %v5831_v24 = vand.u32 4294901760, %v4056_v54 }
 0x104   :  { %1401 = vmatpush.msra.mxu2 %v5830_v44 }
 0x105   :  { %1502 = vmatpush.msra.mxu3 %v3924_v34  ;;  %v5832_v34 = vand.u32 4294901760, %v4077_v61 }
 0x106   :  { %v4210_v3 = vpop.f32.mrf.mxu0  ;;  %1405 = vmatpush.msra.mxu2 %v5831_v24 }
 0x107   :  { %1504 = vmatpush.msra.mxu3 %v3945_v43  ;;  %v4215_v23 = vpop.f32.mrf.mxu1  ;;  %v302_v43 = vadd.f32 %v3905_v25, %v3898_v19  ;;  %v5835_v25 = vand.u32 4294901760, %v4142_v27 }
 0x108   :  { %1409 = vmatpush.msra.mxu2 %v5832_v34 }
 0x109   :  { %659 = vmatmul.f32.gmra.mxu0 %v3854_v52  ;;  %1506 = vmatpush.msra.mxu3 %v3966_v53  ;;  %v5833_v53 = vand.u32 4294901760, %v4098_v4  ;;  %v505_v19 = vpop.f32.mrf.mxu3 }
 0x10a   :  { %742 = vmatmul.f32.gmra.mxu1 %v3854_v52  ;;  %v5834_v52 = vand.u32 4294901760, %v4119_v13 }
 0x10b   :  { %1508 = vmatpush.msra.mxu3 %v3987_v63  ;;  %1413 = vmatpush.msra.mxu2 %v5833_v53  ;;  %v388_v63 = vadd.f32 %v4136_v37, %v302_v43 }
 0x10d   :  { %1510 = vmatpush.msra.mxu3 %v4008_v11  ;;  %1417 = vmatpush.msra.mxu2 %v5834_v52  ;;  %v488_v11 = vadd.f32 %v4157_v10, %v388_v63 }
 0x10e   :  { %v4230_v40 = vpop.f32.mrf.mxu0 }
 0x10f   :  { %1512 = vmatpush.msra.mxu3 %v4029_v32  ;;  %v4235_v47 = vpop.f32.mrf.mxu1  ;;  %1421 = vmatpush.msra.mxu2 %v5835_v25  ;;  %v306_v32 = vadd.f32 %v3926_v35, %v3919_v30  ;;  %v310_v30 = vadd.f32 %v3947_v45, %v3940_v39  ;;  %v314_v45 = vadd.f32 %v3968_v55, %v3961_v49 }
 0x111   :  { %663 = vmatmul.f32.gmra.mxu0 %v3862_v60  ;;  %1514 = vmatpush.msra.mxu3 %v4050_v57  ;;  %v407_v57 = vpop.f32.mrf.mxu2  ;;  %v393_v9 = vadd.f32 %v392_v2, %v306_v32  ;;  %v403_v16 = vadd.f32 %v402_v33, %v314_v45 }
 0x112   :  { %746 = vmatmul.f32.gmra.mxu1 %v3862_v60  ;;  %1425 = vmatpush.msra.mxu2 %v1033_v1  ;;  %v511_v1 = vpop.f32.mrf.mxu3 }
 0x113   :  { %1516 = vmatpush.msra.mxu3 %v4071_v29  ;;  %v494_v29 = vadd.f32 %v493_v62, %v393_v9  ;;  %v506_v55 = vadd.f32 %v505_v19, %v403_v16 }
 0x114   :  { %1429 = vmatpush.msra.mxu2 %v1039_v56 }
 0x115   :  { %1518 = vmatpush.msra.mxu3 %v4092_v21 }
 0x116   :  { %v604_v37 = vpop.f32.mrf.mxu0 }
 0x117   :  { %v605_v54 = vadd.f32 %v604_v37, %v488_v11  ;;  %1520 = vmatpush.msra.mxu3 %v4113_v18  ;;  %v687_v27 = vpop.f32.mrf.mxu1 }
 0x119   :  { %v688_v31 = vadd.f32 %v687_v27, %v605_v54  ;;  %1522 = vmatpush.msra.mxu3 %v4134_v46  ;;  %v398_v46 = vadd.f32 %v397_v26, %v310_v30 }
 0x11a   :  { %v517_v28 = vpop.f32.mrf.mxu3 }
 0x11b   :  { %v750_v60 = vmax.f32 %v688_v31, 0.0  ;;  %1524 = vmatpush.msra.mxu3 %v4148_v17  ;;  %v412_v17 = vpop.f32.mrf.mxu2  ;;  %v500_v39 = vadd.f32 %v499_v15, %v398_v46  ;;  %v318_v15 = vadd.f32 %v3989_v0, %v3982_v58  ;;  %v322_v0 = vadd.f32 %v4010_v14, %v4003_v5 }
 0x11d   :  { %v4255_v35 = vand.u32 4294901760, %v750_v60  ;;  %1526 = vmatpush.msra.mxu3 %v4163_v20  ;;  %v408_v63 = vadd.f32 %v407_v57, %v318_v15 }
 0x11e   :  { %v608_v56 = vpop.f32.mrf.mxu0 }
 0x11f   :  { %v819_v18 = vsub.f32 %v750_v60, %v4255_v35  ;;  %v609_v61 = vadd.f32 %v608_v56, %v494_v29  ;;  %1044 = vmatmul.f32.vlgmr.msrb.gmra.mxu3 %v4255_v35  ;;  %v691_v21 = vpop.f32.mrf.mxu1  ;;  %v512_v58 = vadd.f32 %v511_v1, %v408_v63  ;;  %v413_v29 = vadd.f32 %v412_v17, %v322_v0 }
 0x121   :  { %v820_v4 = vand.u32 4294901760, %v819_v18  ;;  %v692_v13 = vadd.f32 %v691_v21, %v609_v61  ;;  %1158 = vmatmul.f32.vlgmr.msra.gmra.mxu0 %v819_v18  ;;  %v518_v14 = vadd.f32 %v517_v28, %v413_v29  ;;  %v326_v61 = vadd.f32 %v4031_v38, %v4024_v22  ;;  %v5839_v29 = vld [vmem:[#allocation14_spill] sm:$0xff] }
 0x122   :  { %v523_v53 = vpop.f32.mrf.mxu3 }
 0x123   :  { %v751_v50 = vmax.f32 %v692_v13, 0.0  ;;  %1272 = vmatmul.f32.vlgmr.msra.gmra.mxu1 %v820_v4  ;;  %v821_v10 = vsub.f32 %v819_v18, %v820_v4  ;;  %v417_v49 = vpop.f32.mrf.mxu2 }
 0x125   :  { %v4262_v20 = vand.u32 4294901760, %v751_v50  ;;  %v822_v2 = vand.u32 4294901760, %v821_v10 }
 0x126   :  { %v612_v6 = vpop.f32.mrf.mxu0 }
 0x127   :  { %v613_v8 = vadd.f32 %v612_v6, %v500_v39  ;;  %823 = vmatmul.f32.vlgmr.msrb.gmra.mxu2 %v822_v2  ;;  %1048 = vmatmul.f32.gmra.mxu3 %v4262_v20  ;;  %v827_v62 = vsub.f32 %v751_v50, %v4262_v20  ;;  %v695_v42 = vpop.f32.mrf.mxu1  ;;  %v418_v39 = vadd.f32 %v417_v49, %v326_v61 }
 0x129   :  { %v696_v36 = vadd.f32 %v695_v42, %v613_v8  ;;  %1163 = vmatmul.f32.gmra.mxu0 %v827_v62  ;;  %v828_v26 = vand.u32 4294901760, %v827_v62  ;;  %v524_v38 = vadd.f32 %v523_v53, %v418_v39  ;;  %v330_v8 = vadd.f32 %v4052_v59, %v4045_v48  ;;  %v5836_v59 = vld [vmem:[#allocation11_spill] sm:$0xff] }
 0x12a   :  { %v529_v1 = vpop.f32.mrf.mxu3 }
 0x12b   :  { %v752_v7 = vmax.f32 %v696_v36, 0.0  ;;  %1278 = vmatmul.f32.gmra.mxu1 %v828_v26  ;;  %v829_v12 = vsub.f32 %v827_v62, %v828_v26  ;;  %v422_v27 = vpop.f32.mrf.mxu2 }
 0x12d   :  { %v4268_v44 = vand.u32 4294901760, %v752_v7  ;;  %v830_v24 = vand.u32 4294901760, %v829_v12  ;;  %v423_v12 = vadd.f32 %v422_v27, %v330_v8 }
 0x12e   :  { %v616_v34 = vpop.f32.mrf.mxu0 }
 0x12f   :  { %v617_v43 = vadd.f32 %v616_v34, %v506_v55  ;;  %831 = vmatmul.f32.gmra.mxu2 %v830_v24  ;;  %1052 = vmatmul.f32.gmra.mxu3 %v4268_v44  ;;  %v835_v33 = vsub.f32 %v752_v7, %v4268_v44  ;;  %v699_v52 = vpop.f32.mrf.mxu1  ;;  %v530_v48 = vadd.f32 %v529_v1, %v423_v12 }
 0x131   :  { %v700_v25 = vadd.f32 %v699_v52, %v617_v43  ;;  %1168 = vmatmul.f32.gmra.mxu0 %v835_v33  ;;  %v836_v11 = vand.u32 4294901760, %v835_v33  ;;  %v5837_v43 = vld [vmem:[#allocation12_spill] sm:$0xff] }
 0x132   :  { %v535_v22 = vpop.f32.mrf.mxu3 }
 0x133   :  { %v753_v19 = vmax.f32 %v700_v25, 0.0  ;;  %1284 = vmatmul.f32.gmra.mxu1 %v836_v11  ;;  %v837_v32 = vsub.f32 %v835_v33, %v836_v11  ;;  %v427_v50 = vpop.f32.mrf.mxu2  ;;  %v334_v33 = vadd.f32 %v5837_v43, %v5836_v59 }
 0x135   :  { %v4274_v37 = vand.u32 4294901760, %v753_v19  ;;  %v838_v54 = vand.u32 4294901760, %v837_v32 }
 0x136   :  { %v620_v9 = vpop.f32.mrf.mxu0 }
 0x137   :  { %v621_v31 = vadd.f32 %v620_v9, %v512_v58  ;;  %839 = vmatmul.f32.gmra.mxu2 %v838_v54  ;;  %1056 = vmatmul.f32.gmra.mxu3 %v4274_v37  ;;  %v843_v57 = vsub.f32 %v753_v19, %v4274_v37  ;;  %v703_v60 = vpop.f32.mrf.mxu1  ;;  %v428_v58 = vadd.f32 %v427_v50, %v334_v33 }
 0x139   :  { %v704_v30 = vadd.f32 %v703_v60, %v621_v31  ;;  %1173 = vmatmul.f32.gmra.mxu0 %v843_v57  ;;  %v844_v56 = vand.u32 4294901760, %v843_v57  ;;  %v5838_v60 = vld [vmem:[#allocation13_spill] sm:$0xff] }
 0x13a   :  { %v541_v63 = vpop.f32.mrf.mxu3 }
 0x13b   :  { %v754_v18 = vmax.f32 %v704_v30, 0.0  ;;  %1290 = vmatmul.f32.gmra.mxu1 %v844_v56  ;;  %v845_v5 = vsub.f32 %v843_v57, %v844_v56  ;;  %v432_v15 = vpop.f32.mrf.mxu2  ;;  %v536_v57 = vadd.f32 %v535_v22, %v428_v58  ;;  %v338_v30 = vadd.f32 %v5839_v29, %v5838_v60  ;;  %v5845_v60 = vld [vmem:[#allocation20_spill] sm:$0xff] }
 0x13d   :  { %v4280_v21 = vand.u32 4294901760, %v754_v18  ;;  %v846_v46 = vand.u32 4294901760, %v845_v5 }
 0x13e   :  { %v624_v4 = vpop.f32.mrf.mxu0 }
 0x13f   :  { %v625_v13 = vadd.f32 %v624_v4, %v518_v14  ;;  %847 = vmatmul.f32.gmra.mxu2 %v846_v46  ;;  %1060 = vmatmul.f32.gmra.mxu3 %v4280_v21  ;;  %v851_v17 = vsub.f32 %v754_v18, %v4280_v21  ;;  %v707_v10 = vpop.f32.mrf.mxu1  ;;  %v433_v4 = vadd.f32 %v432_v15, %v338_v30 }
 0x141   :  { %v708_v45 = vadd.f32 %v707_v10, %v625_v13  ;;  %1178 = vmatmul.f32.gmra.mxu0 %v851_v17  ;;  %v852_v2 = vand.u32 4294901760, %v851_v17  ;;  %v542_v39 = vadd.f32 %v541_v63, %v433_v4 }
 0x142   :  { %v547_v61 = vpop.f32.mrf.mxu3 }
 0x143   :  { %v755_v28 = vmax.f32 %v708_v45, 0.0  ;;  %1296 = vmatmul.f32.gmra.mxu1 %v852_v2  ;;  %v853_v6 = vsub.f32 %v851_v17, %v852_v2  ;;  %v437_v31 = vpop.f32.mrf.mxu2  ;;  %v5840_v45 = vld [vmem:[#allocation15_spill] sm:$0xff]  ;;  %v5841_v2 = vld [vmem:[#allocation16_spill] sm:$0xff] }
 0x145   :  { %v4286_v62 = vand.u32 4294901760, %v755_v28  ;;  %v854_v42 = vand.u32 4294901760, %v853_v6 }
 0x146   :  { %v628_v16 = vpop.f32.mrf.mxu0 }
 0x147   :  { %v629_v36 = vadd.f32 %v628_v16, %v524_v38  ;;  %855 = vmatmul.f32.gmra.mxu2 %v854_v42  ;;  %1064 = vmatmul.f32.gmra.mxu3 %v4286_v62  ;;  %v859_v26 = vsub.f32 %v755_v28, %v4286_v62  ;;  %v711_v7 = vpop.f32.mrf.mxu1  ;;  %v342_v28 = vadd.f32 %v5841_v2, %v5840_v45 }
 0x148   :  { %v354_v45 = vadd.f32 %v4197_v41, %v4192_v51 }
 0x149   :  { %v712_v49 = vadd.f32 %v711_v7, %v629_v36  ;;  %1183 = vmatmul.f32.gmra.mxu0 %v859_v26  ;;  %v860_v55 = vand.u32 4294901760, %v859_v26 }
 0x14b   :  { %v756_v24 = vmax.f32 %v712_v49, 0.0  ;;  %1302 = vmatmul.f32.gmra.mxu1 %v860_v55  ;;  %v861_v34 = vsub.f32 %v859_v26, %v860_v55  ;;  %v442_v38 = vpop.f32.mrf.mxu2  ;;  %v438_v26 = vadd.f32 %v437_v31, %v342_v28  ;;  %v553_v49 = vpop.f32.mrf.mxu3 }
 0x14d   :  { %v4292_v53 = vand.u32 4294901760, %v756_v24  ;;  %v862_v52 = vand.u32 4294901760, %v861_v34  ;;  %v5842_v34 = vld [vmem:[#allocation17_spill] sm:$0xff] }
 0x14e   :  { %v632_v25 = vpop.f32.mrf.mxu0 }
 0x14f   :  { %v633_v11 = vadd.f32 %v632_v25, %v530_v48  ;;  %863 = vmatmul.f32.gmra.mxu2 %v862_v52  ;;  %1068 = vmatmul.f32.gmra.mxu3 %v4292_v53  ;;  %v867_v19 = vsub.f32 %v756_v24, %v4292_v53  ;;  %v715_v32 = vpop.f32.mrf.mxu1  ;;  %v548_v24 = vadd.f32 %v547_v61, %v438_v26  ;;  %v5843_v48 = vld [vmem:[#allocation18_spill] sm:$0xff] }
 0x150   :  { %v346_v59 = vadd.f32 %v5843_v48, %v5842_v34 }
 0x151   :  { %v716_v0 = vadd.f32 %v715_v32, %v633_v11  ;;  %1188 = vmatmul.f32.gmra.mxu0 %v867_v19  ;;  %v868_v54 = vand.u32 4294901760, %v867_v19 }
 0x152   :  { %v443_v32 = vadd.f32 %v442_v38, %v346_v59 }
 0x153   :  { %v757_v27 = vmax.f32 %v716_v0, 0.0  ;;  %1308 = vmatmul.f32.gmra.mxu1 %v868_v54  ;;  %v869_v9 = vsub.f32 %v867_v19, %v868_v54  ;;  %v447_v11 = vpop.f32.mrf.mxu2 }
 0x154   :  { %v554_v31 = vadd.f32 %v553_v49, %v443_v32 }
 0x155   :  { %v4298_v56 = vand.u32 4294901760, %v757_v27  ;;  %v870_v1 = vand.u32 4294901760, %v869_v9  ;;  %v559_v9 = vpop.f32.mrf.mxu3 }
 0x156   :  { %v636_v18 = vpop.f32.mrf.mxu0 }
 0x157   :  { %v637_v5 = vadd.f32 %v636_v18, %v536_v57  ;;  %871 = vmatmul.f32.gmra.mxu2 %v870_v1  ;;  %1072 = vmatmul.f32.gmra.mxu3 %v4298_v56  ;;  %v875_v14 = vsub.f32 %v757_v27, %v4298_v56  ;;  %v719_v46 = vpop.f32.mrf.mxu1  ;;  %v5844_v57 = vld [vmem:[#allocation19_spill] sm:$0xff] }
 0x158   :  { %v350_v29 = vadd.f32 %v5845_v60, %v5844_v57 }
 0x159   :  { %v720_v13 = vadd.f32 %v719_v46, %v637_v5  ;;  %1193 = vmatmul.f32.gmra.mxu0 %v875_v14  ;;  %v876_v17 = vand.u32 4294901760, %v875_v14 }
 0x15a   :  { %v448_v46 = vadd.f32 %v447_v11, %v350_v29 }
 0x15b   :  { %v758_v50 = vmax.f32 %v720_v13, 0.0  ;;  %1314 = vmatmul.f32.gmra.mxu1 %v876_v17  ;;  %v877_v10 = vsub.f32 %v875_v14, %v876_v17  ;;  %v452_v17 = vpop.f32.mrf.mxu2 }
 0x15d   :  { %v4304_v6 = vand.u32 4294901760, %v758_v50  ;;  %v878_v22 = vand.u32 4294901760, %v877_v10 }
 0x15e   :  { %v640_v8 = vpop.f32.mrf.mxu0 }
 0x15f   :  { %v641_v42 = vadd.f32 %v640_v8, %v542_v39  ;;  %879 = vmatmul.f32.gmra.mxu2 %v878_v22  ;;  %1076 = vmatmul.f32.gmra.mxu3 %v4304_v6  ;;  %v883_v16 = vsub.f32 %v758_v50, %v4304_v6  ;;  %v723_v36 = vpop.f32.mrf.mxu1  ;;  %v560_v39 = vadd.f32 %v559_v9, %v448_v46  ;;  %v565_v22 = vpop.f32.mrf.mxu3 }
 0x161   :  { %v724_v7 = vadd.f32 %v723_v36, %v641_v42  ;;  %1198 = vmatmul.f32.gmra.mxu0 %v883_v16  ;;  %v884_v12 = vand.u32 4294901760, %v883_v16  ;;  %v453_v36 = vadd.f32 %v452_v17, %v354_v45 }
 0x163   :  { %v759_v55 = vmax.f32 %v724_v7, 0.0  ;;  %1320 = vmatmul.f32.gmra.mxu1 %v884_v12  ;;  %v885_v15 = vsub.f32 %v883_v16, %v884_v12  ;;  %v457_v51 = vpop.f32.mrf.mxu2  ;;  %v566_v41 = vadd.f32 %v565_v22, %v453_v36 }
 0x165   :  { %v4310_v43 = vand.u32 4294901760, %v759_v55  ;;  %v886_v33 = vand.u32 4294901760, %v885_v15 }
 0x166   :  { %v644_v52 = vpop.f32.mrf.mxu0 }
 0x167   :  { %v645_v63 = vadd.f32 %v644_v52, %v548_v24  ;;  %887 = vmatmul.f32.gmra.mxu2 %v886_v33  ;;  %1080 = vmatmul.f32.gmra.mxu3 %v4310_v43  ;;  %v891_v25 = vsub.f32 %v759_v55, %v4310_v43  ;;  %v727_v19 = vpop.f32.mrf.mxu1  ;;  %v358_v55 = vadd.f32 %v4215_v23, %v4210_v3  ;;  %v571_v33 = vpop.f32.mrf.mxu3 }
 0x168   :  { %v362_v23 = vadd.f32 %v4235_v47, %v4230_v40 }
 0x169   :  { %v728_v58 = vadd.f32 %v727_v19, %v645_v63  ;;  %1203 = vmatmul.f32.gmra.mxu0 %v891_v25  ;;  %v892_v0 = vand.u32 4294901760, %v891_v25  ;;  %v458_v63 = vadd.f32 %v457_v51, %v358_v55  ;;  %v1752_v51 = vld [vmem:[#allocation5 + $0x70] sm:$0xff] }
 0x16a   :  { %v4359_v55 = vand.u32 4294901760, %v1752_v51 }
 0x16b   :  { %v760_v54 = vmax.f32 %v728_v58, 0.0  ;;  %1326 = vmatmul.f32.gmra.mxu1 %v892_v0  ;;  %v893_v27 = vsub.f32 %v891_v25, %v892_v0  ;;  %v572_v3 = vadd.f32 %v571_v33, %v458_v63 }
 0x16d   :  { %v4316_v30 = vand.u32 4294901760, %v760_v54  ;;  %v894_v1 = vand.u32 4294901760, %v893_v27 }
 0x16e   :  { %v648_v18 = vpop.f32.mrf.mxu0 }
 0x16f   :  { %v649_v5 = vadd.f32 %v648_v18, %v554_v31  ;;  %895 = vmatmul.f32.gmra.mxu2 %v894_v1  ;;  %1084 = vmatmul.f32.gmra.mxu3 %v4316_v30  ;;  %v899_v14 = vsub.f32 %v760_v54, %v4316_v30  ;;  %v731_v61 = vpop.f32.mrf.mxu1  ;;  %v462_v54 = vpop.f32.mrf.mxu2 }
 0x170   :  { %v463_v60 = vadd.f32 %v462_v54, %v362_v23  ;;  %v577_v18 = vpop.f32.mrf.mxu3  ;;  %v1750_v54 = vld [vmem:[#allocation5 + $0x60] sm:$0xff] }
 0x171   :  { %v732_v4 = vadd.f32 %v731_v61, %v649_v5  ;;  %1208 = vmatmul.f32.gmra.mxu0 %v899_v14  ;;  %v900_v13 = vand.u32 4294901760, %v899_v14 }
 0x172   :  { %v578_v47 = vadd.f32 %v577_v18, %v463_v60 }
 0x173   :  { %v761_v50 = vmax.f32 %v732_v4, 0.0  ;;  %1332 = vmatmul.f32.gmra.mxu1 %v900_v13  ;;  %v901_v10 = vsub.f32 %v899_v14, %v900_v13 }
 0x175   :  { %v4322_v2 = vand.u32 4294901760, %v761_v50  ;;  %v902_v28 = vand.u32 4294901760, %v901_v10 }
 0x176   :  { %v652_v38 = vpop.f32.mrf.mxu0 }
 0x177   :  { %v653_v8 = vadd.f32 %v652_v38, %v560_v39  ;;  %903 = vmatmul.f32.gmra.mxu2 %v902_v28  ;;  %1088 = vmatmul.f32.gmra.mxu3 %v4322_v2  ;;  %v907_v42 = vsub.f32 %v761_v50, %v4322_v2  ;;  %v735_v16 = vpop.f32.mrf.mxu1 }
 0x179   :  { %v736_v26 = vadd.f32 %v735_v16, %v653_v8  ;;  %1213 = vmatmul.f32.gmra.mxu0 %v907_v42  ;;  %v908_v7 = vand.u32 4294901760, %v907_v42  ;;  %v1753_v8 = vld [vmem:[#allocation5 + $0x78] sm:$0xff] }
 0x17a   :  { %v4346_v16 = vand.u32 4294901760, %v1753_v8 }
 0x17b   :  { %v762_v12 = vmax.f32 %v736_v26, 0.0  ;;  %1338 = vmatmul.f32.gmra.mxu1 %v908_v7  ;;  %v909_v49 = vsub.f32 %v907_v42, %v908_v7 }
 0x17c   :  { %v4349_v26 = vsub.f32 %v1753_v8, %v4346_v16  ;;  %1755 = vmatpush.msrb.mxu0 %v4346_v16  ;;  %2206 = vmatpush.msrb.mxu3 %v4346_v16 }
 0x17d   :  { %v4328_v15 = vand.u32 4294901760, %v762_v12  ;;  %v910_v24 = vand.u32 4294901760, %v909_v49 }
 0x17e   :  { %v656_v34 = vpop.f32.mrf.mxu0  ;;  %2078 = vmatpush.msrb.mxu2 %v4349_v26  ;;  %1757 = vmatpush.msrb.mxu0 %v4359_v55 }
 0x17f   :  { %v657_v48 = vadd.f32 %v656_v34, %v566_v41  ;;  %911 = vmatmul.f32.gmra.mxu2 %v910_v24  ;;  %1092 = vmatmul.f32.gmra.mxu3 %v4328_v15  ;;  %v915_v59 = vsub.f32 %v762_v12, %v4328_v15  ;;  %v739_v52 = vpop.f32.mrf.mxu1  ;;  %v5774_v12 = vand.u32 4294901760, %v4349_v26  ;;  %v4362_v34 = vsub.f32 %v1752_v51, %v4359_v55 }
 0x180   :  { %2208 = vmatpush.msrb.mxu3 %v4359_v55 }
 0x181   :  { %v740_v25 = vadd.f32 %v739_v52, %v657_v48  ;;  %1218 = vmatmul.f32.gmra.mxu0 %v915_v59  ;;  %v916_v11 = vand.u32 4294901760, %v915_v59  ;;  %v1918_v49 = vsub.f32 %v4349_v26, %v5774_v12  ;;  %2081 = vmatpush.msrb.mxu2 %v4362_v34  ;;  %v5773_v48 = vand.u32 4294901760, %v4362_v34  ;;  %v1751_v52 = vld [vmem:[#allocation5 + $0x68] sm:$0xff] }
 0x183   :  { %v763_v19 = vmax.f32 %v740_v25, 0.0  ;;  %1344 = vmatmul.f32.gmra.mxu1 %v916_v11  ;;  %v917_v32 = vsub.f32 %v915_v59, %v916_v11  ;;  %v1919_v41 = vand.u32 4294901760, %v1918_v49  ;;  %v4373_v59 = vld [vmem:[%s5743_s3] ss:$0 sm:$0xff]  ;;  %v1924_v33 = vsub.f32 %v4362_v34, %v5773_v48  ;;  %v1747_v49 = vld [vmem:[#allocation5 + $0x48] sm:$0xff] }
 0x184   :  { %v4378_v25 = vand.u32 4294901760, %v1751_v52 }
 0x185   :  { %v4334_v58 = vand.u32 4294901760, %v763_v19  ;;  %v918_v0 = vand.u32 4294901760, %v917_v32  ;;  %1920 = vmatpush.msrb.mxu1 %v1919_v41  ;;  %v1925_v63 = vand.u32 4294901760, %v1924_v33  ;;  %v4446_v41 = vand.u32 4294901760, %v1747_v49 }
 0x186   :  { %v660_v27 = vpop.f32.mrf.mxu0  ;;  %1759 = vmatpush.msrb.mxu0 %v4378_v25  ;;  %2210 = vmatpush.msrb.mxu3 %v4378_v25 }
 0x187   :  { %v661_v9 = vadd.f32 %v660_v27, %v572_v3  ;;  %919 = vmatmul.f32.gmra.mxu2 %v918_v0  ;;  %1096 = vmatmul.f32.gmra.mxu3 %v4334_v58  ;;  %v923_v31 = vsub.f32 %v763_v19, %v4334_v58  ;;  %v743_v57 = vpop.f32.mrf.mxu1 }
 0x188   :  { %1926 = vmatpush.msrb.mxu1 %v1925_v63  ;;  %v4450_v63 = vsub.f32 %v1747_v49, %v4446_v41 }
 0x189   :  { %v744_v29 = vadd.f32 %v743_v57, %v661_v9  ;;  %1223 = vmatmul.f32.gmra.mxu0 %v923_v31  ;;  %v924_v1 = vand.u32 4294901760, %v923_v31  ;;  %v4395_v9 = vand.u32 4294901760, %v1750_v54 }
 0x18b   :  { %v764_v5 = vmax.f32 %v744_v29, 0.0  ;;  %1350 = vmatmul.f32.gmra.mxu1 %v924_v1  ;;  %v925_v40 = vsub.f32 %v923_v31, %v924_v1  ;;  %v4399_v29 = vsub.f32 %v1750_v54, %v4395_v9  ;;  %1761 = vmatpush.msrb.mxu0 %v4395_v9 }
 0x18c   :  { %2212 = vmatpush.msrb.mxu3 %v4395_v9 }
 0x18d   :  { %v4338_v14 = vand.u32 4294901760, %v764_v5  ;;  %v926_v61 = vand.u32 4294901760, %v925_v40  ;;  %v5771_v1 = vand.u32 4294901760, %v4399_v29 }
 0x18e   :  { %v664_v46 = vpop.f32.mrf.mxu0 }
 0x18f   :  { %v665_v4 = vadd.f32 %v664_v46, %v578_v47  ;;  %927 = vmatmul.f32.gmra.mxu2 %v926_v61  ;;  %1100 = vmatmul.f32.gmra.mxu3 %v4338_v14  ;;  %v931_v13 = vsub.f32 %v764_v5, %v4338_v14  ;;  %v747_v17 = vpop.f32.mrf.mxu1  ;;  %v1936_v18 = vsub.f32 %v4399_v29, %v5771_v1  ;;  %v1749_v5 = vld [vmem:[#allocation5 + $0x58] sm:$0xff]  ;;  %v1738_v1 = vld [vmem:[#allocation5] sm:$0xff] }
 0x190   :  { %v4412_v47 = vand.u32 4294901760, %v1749_v5  ;;  %v4612_v48 = vand.u32 4294901760, %v1738_v1 }
 0x191   :  { %v748_v50 = vadd.f32 %v747_v17, %v665_v4  ;;  %1228 = vmatmul.f32.gmra.mxu0 %v931_v13  ;;  %v932_v10 = vand.u32 4294901760, %v931_v13  ;;  %v1937_v40 = vand.u32 4294901760, %v1936_v18 }
 0x192   :  { %1763 = vmatpush.msrb.mxu0 %v4412_v47  ;;  %2214 = vmatpush.msrb.mxu3 %v4412_v47 }
 0x193   :  { %v765_v39 = vmax.f32 %v748_v50, 0.0  ;;  %1356 = vmatmul.f32.gmra.mxu1 %v932_v10  ;;  %v933_v45 = vsub.f32 %v931_v13, %v932_v10  ;;  %v4416_v13 = vsub.f32 %v1749_v5, %v4412_v47  ;;  %v1748_v10 = vld [vmem:[#allocation5 + $0x50] sm:$0xff] }
 0x195   :  { %v4342_v28 = vand.u32 4294901760, %v765_v39  ;;  %v934_v22 = vand.u32 4294901760, %v933_v45  ;;  %v5770_v17 = vand.u32 4294901760, %v4416_v13  ;;  %v4429_v45 = vand.u32 4294901760, %v1748_v10 }
 0x197   :  { %935 = vmatmul.f32.gmra.mxu2 %v934_v22  ;;  %1104 = vmatmul.f32.gmra.mxu3 %v4342_v28  ;;  %v939_v38 = vsub.f32 %v765_v39, %v4342_v28  ;;  %v1942_v50 = vsub.f32 %v4416_v13, %v5770_v17 }
 0x198   :  { %1765 = vmatpush.msrb.mxu0 %v4429_v45  ;;  %2216 = vmatpush.msrb.mxu3 %v4429_v45 }
 0x199   :  { %1233 = vmatmul.f32.gmra.mxu0 %v939_v38  ;;  %v940_v42 = vand.u32 4294901760, %v939_v38  ;;  %v1943_v39 = vand.u32 4294901760, %v1942_v50 }
 0x19a   :  { %1767 = vmatpush.msrb.mxu0 %v4446_v41  ;;  %2218 = vmatpush.msrb.mxu3 %v4446_v41 }
 0x19b   :  { %1362 = vmatmul.f32.gmra.mxu1 %v940_v42  ;;  %v941_v36 = vsub.f32 %v939_v38, %v940_v42  ;;  %v4433_v42 = vsub.f32 %v1748_v10, %v4429_v45 }
 0x19d   :  { %v942_v7 = vand.u32 4294901760, %v941_v36  ;;  %v5769_v36 = vand.u32 4294901760, %v4433_v42 }
 0x19f   :  { %943 = vmatmul.f32.gmra.mxu2 %v942_v7  ;;  %1528 = vmatmul.f32.vlgmr.msra.gmra.mxu3 %v4255_v35  ;;  %v1948_v7 = vsub.f32 %v4433_v42, %v5769_v36 }
 0x1a0   :  { %v4614_v12 = vpop.f32.mrf.mxu1 }
 0x1a1   :  { %v1949_v51 = vand.u32 4294901760, %v1948_v7 }
 0x1a2   :  { %v1045_v24 = vpop.f32.mrf.mxu3 }
 0x1a7   :  { %1431 = vmatmul.f32.vlgmr.msra.gmra.mxu2 %v4255_v35  ;;  %1532 = vmatmul.f32.gmra.mxu3 %v4262_v20  ;;  %v4382_v35 = vsub.f32 %v1751_v52, %v4378_v25 }
 0x1a9   :  { %2084 = vmatpush.msrb.mxu2 %v4382_v35  ;;  %v5772_v23 = vand.u32 4294901760, %v4382_v35 }
 0x1aa   :  { %v824_v11 = vpop.f32.mrf.mxu2  ;;  %v1049_v19 = vpop.f32.mrf.mxu3 }
 0x1ab   :  { %v825_v32 = vadd.f32 %v4373_v59, %v824_v11  ;;  %v1930_v0 = vsub.f32 %v4382_v35, %v5772_v23  ;;  %2087 = vmatpush.msrb.mxu2 %v4399_v29  ;;  %v5767_v11 = vand.u32 4294901760, %v4450_v63 }
 0x1ad   :  { %v4386_v3 = vadd.f32 %v1045_v24, %v825_v32  ;;  %v1931_v27 = vand.u32 4294901760, %v1930_v0  ;;  %2090 = vmatpush.msrb.mxu2 %v4416_v13  ;;  %v1746_v32 = vld [vmem:[#allocation5 + $0x40] sm:$0xff] }
 0x1ae   :  { %v4463_v54 = vand.u32 4294901760, %v1746_v32 }
 0x1af   :  { %1435 = vmatmul.f32.gmra.mxu2 %v4262_v20  ;;  %1536 = vmatmul.f32.gmra.mxu3 %v4268_v44 }
 0x1b0   :  { %1932 = vmatpush.msrb.mxu1 %v1931_v27  ;;  %2093 = vmatpush.msrb.mxu2 %v4433_v42 }
 0x1b1   :  { %1769 = vmatpush.msrb.mxu0 %v4463_v54  ;;  %2220 = vmatpush.msrb.mxu3 %v4463_v54 }
 0x1b2   :  { %v832_v31 = vpop.f32.mrf.mxu2  ;;  %v1053_v57 = vpop.f32.mrf.mxu3  ;;  %1938 = vmatpush.msrb.mxu1 %v1937_v40  ;;  %2096 = vmatpush.msrb.mxu2 %v4450_v63  ;;  %v1745_v40 = vld [vmem:[#allocation5 + $0x38] sm:$0xff] }
 0x1b3   :  { %v833_v60 = vadd.f32 %v4373_v59, %v832_v31 }
 0x1b4   :  { %1944 = vmatpush.msrb.mxu1 %v1943_v39 }
 0x1b5   :  { %v4403_v20 = vadd.f32 %v1049_v19, %v833_v60  ;;  %v1954_v19 = vsub.f32 %v4450_v63, %v5767_v11  ;;  %v4467_v60 = vsub.f32 %v1746_v32, %v4463_v54  ;;  %v1743_v32 = vld [vmem:[#allocation5 + $0x28] sm:$0xff] }
 0x1b6   :  { %1950 = vmatpush.msrb.mxu1 %v1949_v51 }
 0x1b7   :  { %1439 = vmatmul.f32.gmra.mxu2 %v4268_v44  ;;  %1540 = vmatmul.f32.gmra.mxu3 %v4274_v37  ;;  %v1955_v0 = vand.u32 4294901760, %v1954_v19  ;;  %v5766_v18 = vand.u32 4294901760, %v4467_v60 }
 0x1b8   :  { %2099 = vmatpush.msrb.mxu2 %v4467_v60 }
 0x1b9   :  { %1956 = vmatpush.msrb.mxu1 %v1955_v0  ;;  %v1960_v5 = vsub.f32 %v4467_v60, %v5766_v18 }
 0x1ba   :  { %v840_v61 = vpop.f32.mrf.mxu2  ;;  %v1057_v46 = vpop.f32.mrf.mxu3 }
 0x1bb   :  { %v841_v4 = vadd.f32 %v4373_v59, %v840_v61  ;;  %v1961_v61 = vand.u32 4294901760, %v1960_v5 }
 0x1bd   :  { %v4420_v44 = vadd.f32 %v1053_v57, %v841_v4  ;;  %1962 = vmatpush.msrb.mxu1 %v1961_v61 }
 0x1bf   :  { %1443 = vmatmul.f32.gmra.mxu2 %v4274_v37  ;;  %1544 = vmatmul.f32.gmra.mxu3 %v4280_v21 }
 0x1c2   :  { %v848_v22 = vpop.f32.mrf.mxu2  ;;  %v1061_v38 = vpop.f32.mrf.mxu3 }
 0x1c3   :  { %v849_v8 = vadd.f32 %v4373_v59, %v848_v22 }
 0x1c5   :  { %v4437_v37 = vadd.f32 %v1057_v46, %v849_v8  ;;  %v4480_v46 = vand.u32 4294901760, %v1745_v40  ;;  %v1744_v8 = vld [vmem:[#allocation5 + $0x30] sm:$0xff] }
 0x1c6   :  { %v4497_v49 = vand.u32 4294901760, %v1744_v8 }
 0x1c7   :  { %1447 = vmatmul.f32.gmra.mxu2 %v4280_v21  ;;  %1548 = vmatmul.f32.gmra.mxu3 %v4286_v62  ;;  %v4484_v39 = vsub.f32 %v1745_v40, %v4480_v46  ;;  %v3579_v40 = vld [vmem:[%s5740_s0] sm:$0xff] }
 0x1c8   :  { %1771 = vmatpush.msrb.mxu0 %v4480_v46  ;;  %2222 = vmatpush.msrb.mxu3 %v4480_v46  ;;  %v3487_v61 = vceil.f32 %v3579_v40  ;;  %vm3486_vm1 = vcmp.lt.s32.totalorder %v3579_v40, 0 }
 0x1c9   :  { %2102 = vmatpush.msrb.mxu2 %v4484_v39  ;;  %v5765_v22 = vand.u32 4294901760, %v4484_v39 }
 0x1ca   :  { %v856_v24 = vpop.f32.mrf.mxu2  ;;  %v1065_v33 = vpop.f32.mrf.mxu3  ;;  %1773 = vmatpush.msrb.mxu0 %v4497_v49  ;;  %2224 = vmatpush.msrb.mxu3 %v4497_v49 }
 0x1cb   :  { %v857_v52 = vadd.f32 %v4373_v59, %v856_v24 }
 0x1cd   :  { %v4454_v21 = vadd.f32 %v1061_v38, %v857_v52  ;;  %v1966_v38 = vsub.f32 %v4484_v39, %v5765_v22  ;;  %v4503_v52 = vsub.f32 %v1744_v8, %v4497_v49 }
 0x1cf   :  { %1451 = vmatmul.f32.gmra.mxu2 %v4286_v62  ;;  %1552 = vmatmul.f32.gmra.mxu3 %v4292_v53  ;;  %v1967_v7 = vand.u32 4294901760, %v1966_v38  ;;  %v5763_v19 = vand.u32 4294901760, %v4503_v52  ;;  %v1742_v38 = vld [vmem:[#allocation5 + $0x20] sm:$0xff] }
 0x1d0   :  { %2105 = vmatpush.msrb.mxu2 %v4503_v52 }
 0x1d1   :  { %1968 = vmatpush.msrb.mxu1 %v1967_v7 }
 0x1d2   :  { %v864_v27 = vpop.f32.mrf.mxu2  ;;  %v1069_v31 = vpop.f32.mrf.mxu3 }
 0x1d3   :  { %v865_v57 = vadd.f32 %v4373_v59, %v864_v27  ;;  %v4516_v27 = vand.u32 4294901760, %v1743_v32 }
 0x1d5   :  { %v4471_v62 = vadd.f32 %v1065_v33, %v865_v57  ;;  %v4523_v5 = vsub.f32 %v1743_v32, %v4516_v27  ;;  %1775 = vmatpush.msrb.mxu0 %v4516_v27  ;;  %2226 = vmatpush.msrb.mxu3 %v4516_v27 }
 0x1d7   :  { %1455 = vmatmul.f32.gmra.mxu2 %v4292_v53  ;;  %1556 = vmatmul.f32.gmra.mxu3 %v4298_v56 }
 0x1d8   :  { %2108 = vmatpush.msrb.mxu2 %v4523_v5 }
 0x1da   :  { %v872_v4 = vpop.f32.mrf.mxu2  ;;  %v1073_v50 = vpop.f32.mrf.mxu3 }
 0x1db   :  { %v873_v10 = vadd.f32 %v4373_v59, %v872_v4  ;;  %v3488_v4 = vfloor.f32 %v3579_v40  ;;  %v3580_v40 = vld [vmem:[%s5740_s0 + $0x8] sm:$0xff] }
 0x1dc   :  { %vm3491_vm2 = vcmp.lt.s32.totalorder %v3580_v40, 0 }
 0x1dd   :  { %v4488_v53 = vadd.f32 %v1069_v31, %v873_v10  ;;  %v3489_v10 = vsel %vm3486_vm1, %v3487_v61, %v3488_v4  ;;  %v3492_v61 = vceil.f32 %v3580_v40  ;;  %v3493_v4 = vfloor.f32 %v3580_v40 }
 0x1de   :  { %v3490_v8 = vcvt.f32.s32 %v3489_v10 }
 0x1df   :  { %1459 = vmatmul.f32.gmra.mxu2 %v4298_v56  ;;  %1560 = vmatmul.f32.gmra.mxu3 %v4304_v6  ;;  %v3494_v10 = vsel %vm3491_vm2, %v3492_v61, %v3493_v4  ;;  %v3581_v61 = vld [vmem:[%s5740_s0 + $0x30] sm:$0xff] }
 0x1e0   :  { %v3517_v4 = vceil.f32 %v3581_v61  ;;  %vm3516_vm3 = vcmp.lt.s32.totalorder %v3581_v61, 0 }
 0x1e2   :  { %v880_v51 = vpop.f32.mrf.mxu2  ;;  %v4499_v24 = vpop.f32.mrf.mxu3 }
 0x1e3   :  { %v881_v33 = vadd.f32 %v4373_v59, %v880_v51  ;;  %v1972_v59 = vsub.f32 %v4503_v52, %v5763_v19  ;;  %v3678_v51 = vmov 7  }
 0x1e4   :  { %3574 = vset.pattern.permute.xlu0 %v3678_v51  ;;  %3575 = vset.pattern.permute.xlu1 %v3678_v51 }
 0x1e5   :  { %v4507_v56 = vadd.f32 %v1073_v50, %v881_v33  ;;  %v1973_v0 = vand.u32 4294901760, %v1972_v59  ;;  %v4537_v33 = vand.u32 4294901760, %v1742_v38  ;;  %1627 = vperm.xlu0 %3574, %v3490_v8   ;;  %3576 = vset.pattern.permute.xlu2 %v3678_v51  ;;  %v3495_v8 = vcvt.f32.s32 %v3494_v10 }
 0x1e7   :  { %1463 = vmatmul.f32.gmra.mxu2 %v4304_v6  ;;  %1564 = vmatmul.f32.gmra.mxu3 %v4310_v43  ;;  %v5762_v6 = vand.u32 4294901760, %v4523_v5 }
 0x1e8   :  { %1974 = vmatpush.msrb.mxu1 %v1973_v0  ;;  %1777 = vmatpush.msrb.mxu0 %v4537_v33 }
 0x1e9   :  { %v1978_v50 = vsub.f32 %v4523_v5, %v5762_v6  ;;  %2228 = vmatpush.msrb.mxu3 %v4537_v33 }
 0x1ea   :  { %v4518_v31 = vpop.f32.mrf.mxu2  ;;  %v4520_v57 = vpop.f32.mrf.mxu3 }
 0x1eb   :  { %v1979_v7 = vand.u32 4294901760, %v1978_v50 }
 0x1ed   :  { %1980 = vmatpush.msrb.mxu1 %v1979_v7  ;;  %1630 = vperm.xlu0 %3574, %v3495_v8  }
 0x1ef   :  { %1467 = vmatmul.f32.gmra.mxu2 %v4310_v43  ;;  %1568 = vmatmul.f32.gmra.mxu3 %v4316_v30  ;;  %v4544_v43 = vsub.f32 %v1742_v38, %v4537_v33  ;;  %v1741_v38 = vld [vmem:[#allocation5 + $0x18] sm:$0xff] }
 0x1f0   :  { %v4558_v51 = vand.u32 4294901760, %v1741_v38 }
 0x1f1   :  { %2111 = vmatpush.msrb.mxu2 %v4544_v43  ;;  %v5764_v0 = vand.u32 4294901760, %v4544_v43 }
 0x1f2   :  { %v4539_v59 = vpop.f32.mrf.mxu2  ;;  %v4541_v32 = vpop.f32.mrf.mxu3  ;;  %1779 = vmatpush.msrb.mxu0 %v4558_v51  ;;  %2230 = vmatpush.msrb.mxu3 %v4558_v51 }
 0x1f3   :  { %5846 = vst [vmem:[#allocation11_spill] sm:$0xff] %v4541_v32  ;;  %v1984_v50 = vsub.f32 %v4544_v43, %v5764_v0 }
 0x1f5   :  { %v1985_v7 = vand.u32 4294901760, %v1984_v50  ;;  %v3518_v50 = vfloor.f32 %v3581_v61 }
 0x1f7   :  { %1471 = vmatmul.f32.gmra.mxu2 %v4316_v30  ;;  %1572 = vmatmul.f32.gmra.mxu3 %v4322_v2  ;;  %v4565_v30 = vsub.f32 %v1741_v38, %v4558_v51  ;;  %v1740_v38 = vld [vmem:[#allocation5 + $0x10] sm:$0xff]  ;;  %v3519_v8 = vsel %vm3516_vm3, %v3517_v4, %v3518_v50  ;;  %v1739_v50 = vld [vmem:[#allocation5 + $0x8] sm:$0xff] }
 0x1f8   :  { %1986 = vmatpush.msrb.mxu1 %v1985_v7  ;;  %v4579_v7 = vand.u32 4294901760, %v1740_v38  ;;  %v3520_v0 = vcvt.f32.s32 %v3519_v8  ;;  %v4597_v8 = vand.u32 4294901760, %v1739_v50 }
 0x1f9   :  { %2114 = vmatpush.msrb.mxu2 %v4565_v30  ;;  %v5768_v40 = vand.u32 4294901760, %v4565_v30 }
 0x1fa   :  { %v4560_v6 = vpop.f32.mrf.mxu2  ;;  %v4562_v19 = vpop.f32.mrf.mxu3  ;;  %v4586_v61 = vsub.f32 %v1740_v38, %v4579_v7  ;;  %1645 = vperm.xlu0 %3574, %v3520_v0   ;;  %1781 = vmatpush.msrb.mxu0 %v4579_v7  ;;  %v4608_v23 = vsub.f32 %v1739_v50, %v4597_v8 }
 0x1fb   :  { %5847 = vst [vmem:[#allocation12_spill] sm:$0xff] %v4560_v6  ;;  %v1990_v10 = vsub.f32 %v4565_v30, %v5768_v40  ;;  %2232 = vmatpush.msrb.mxu3 %v4579_v7 }
 0x1fc   :  { %5848 = vst [vmem:[#allocation13_spill] sm:$0xff] %v4562_v19  ;;  %2117 = vmatpush.msrb.mxu2 %v4586_v61  ;;  %v5775_v4 = vand.u32 4294901760, %v4586_v61  ;;  %1783 = vmatpush.msrb.mxu0 %v4597_v8 }
 0x1fd   :  { %v1991_v22 = vand.u32 4294901760, %v1990_v10  ;;  %v3582_v10 = vld [vmem:[%s5740_s0 + $0x10] sm:$0xff]  ;;  %2234 = vmatpush.msrb.mxu3 %v4597_v8 }
 0x1fe   :  { %vm3496_vm4 = vcmp.lt.s32.totalorder %v3582_v10, 0  ;;  %v3497_v38 = vceil.f32 %v3582_v10  ;;  %v3498_v0 = vfloor.f32 %v3582_v10  ;;  %v1996_v36 = vsub.f32 %v4586_v61, %v5775_v4  ;;  %2120 = vmatpush.msrb.mxu2 %v4608_v23  ;;  %1785 = vmatpush.msrb.mxu0 %v4612_v48 }
 0x1ff   :  { %1475 = vmatmul.f32.gmra.mxu2 %v4322_v2  ;;  %1576 = vmatmul.f32.gmra.mxu3 %v4328_v15  ;;  %v4591_v2 = vpop.f32.mrf.mxu0 }
 0x200   :  { %1992 = vmatpush.msrb.mxu1 %v1991_v22  ;;  %v3583_v22 = vld [vmem:[%s5740_s0 + $0x48] sm:$0xff]  ;;  %v3499_v10 = vsel %vm3496_vm4, %v3497_v38, %v3498_v0  ;;  %v5776_v38 = vand.u32 4294901760, %v4608_v23  ;;  %v4623_v0 = vsub.f32 %v1738_v1, %v4612_v48  ;;  %2236 = vmatpush.msrb.mxu3 %v4612_v48 }
 0x201   :  { %vm3531_vm5 = vcmp.lt.s32.totalorder %v3583_v22, 0  ;;  %v3532_v40 = vceil.f32 %v3583_v22  ;;  %v3533_v17 = vfloor.f32 %v3583_v22  ;;  %v3585_v22 = vld [vmem:[%s5740_s0 + $0x60] sm:$0xff] }
 0x202   :  { %v4581_v18 = vpop.f32.mrf.mxu2  ;;  %v4583_v11 = vpop.f32.mrf.mxu3  ;;  %2123 = vmatpush.msrb.mxu2 %v4623_v0  ;;  %vm3546_vm7 = vcmp.lt.s32.totalorder %v3585_v22, 0 }
 0x203   :  { %5849 = vst [vmem:[#allocation14_spill] sm:$0xff] %v4581_v18  ;;  %v3534_v19 = vsel %vm3531_vm5, %v3532_v40, %v3533_v17  ;;  %v2002_v17 = vsub.f32 %v4608_v23, %v5776_v38 }
 0x204   :  { %5850 = vst [vmem:[#allocation15_spill] sm:$0xff] %v4583_v11  ;;  %v3500_v11 = vcvt.f32.s32 %v3499_v10  ;;  %v3535_v50 = vcvt.f32.s32 %v3534_v19  ;;  %v3584_v19 = vld [vmem:[%s5740_s0 + $0x18] sm:$0xff]  ;;  %v5853_v10 = vand.u32 4294901760, %v4349_v26  ;;  %v5855_v26 = vand.u32 4294901760, %v4362_v34 }
 0x205   :  { %v3502_v40 = vceil.f32 %v3584_v19  ;;  %v3503_v1 = vfloor.f32 %v3584_v19  ;;  %vm3501_vm6 = vcmp.lt.s32.totalorder %v3584_v19, 0  ;;  %v3586_v34 = vld [vmem:[%s5740_s0 + $0x38] sm:$0xff] }
 0x206   :  { %1633 = vperm.xlu1 %3575, %v3500_v11   ;;  %1654 = vperm.xlu0 %3574, %v3535_v50   ;;  %v3547_v11 = vceil.f32 %v3585_v22  ;;  %v3548_v50 = vfloor.f32 %v3585_v22  ;;  %vm3521_vm8 = vcmp.lt.s32.totalorder %v3586_v34, 0 }
 0x207   :  { %1479 = vmatmul.f32.gmra.mxu2 %v4328_v15  ;;  %1580 = vmatmul.f32.gmra.mxu3 %v4334_v58  ;;  %v1997_v15 = vand.u32 4294901760, %v1996_v36  ;;  %v4640_v38 = vpop.f32.mrf.mxu0  ;;  %v3504_v36 = vsel %vm3501_vm6, %v3502_v40, %v3503_v1  ;;  %v4655_v40 = vpop.f32.mrf.mxu1 }
 0x208   :  { %2337 = vmatpush.msra.mxu0 %v5853_v10  ;;  %v3505_v32 = vcvt.f32.s32 %v3504_v36  ;;  %v3549_v6 = vsel %vm3546_vm7, %v3547_v11, %v3548_v50 }
 0x209   :  { %1998 = vmatpush.msrb.mxu1 %v1997_v15  ;;  %v2003_v15 = vand.u32 4294901760, %v2002_v17  ;;  %v3550_v17 = vcvt.f32.s32 %v3549_v6  ;;  %v3522_v6 = vceil.f32 %v3586_v34 }
 0x20a   :  { %v4616_v18 = vpop.f32.mrf.mxu2  ;;  %v4618_v4 = vpop.f32.mrf.mxu3  ;;  %2341 = vmatpush.msra.mxu0 %v5855_v26 }
 0x20b   :  { %5851 = vst [vmem:[#allocation16_spill] sm:$0xff] %v4616_v18  ;;  %2004 = vmatpush.msrb.mxu1 %v2003_v15  ;;  %v5858_v15 = vand.u32 4294901760, %v4416_v13 }
 0x20c   :  { %5852 = vst [vmem:[#allocation17_spill] sm:$0xff] %v4618_v4  ;;  %v5854_v4 = vand.u32 4294901760, %v4623_v0 }
 0x20e   :  { %v2008_v18 = vsub.f32 %v4623_v0, %v5854_v4  ;;  %1636 = vperm.xlu1 %3575, %v3505_v32   ;;  %1663 = vperm.xlu0 %3574, %v3550_v17   ;;  %v3587_v4 = vld [vmem:[%s5740_s0 + $0x78] sm:$0xff] }
 0x20f   :  { %1483 = vmatmul.f32.gmra.mxu2 %v4334_v58  ;;  %1584 = vmatmul.f32.gmra.mxu3 %v4338_v14  ;;  %v5856_v58 = vand.u32 4294901760, %v4382_v35  ;;  %v3562_v36 = vceil.f32 %v3587_v4  ;;  %v5857_v35 = vand.u32 4294901760, %v4399_v29  ;;  %vm3561_vm9 = vcmp.lt.s32.totalorder %v3587_v4, 0  ;;  %v4672_v50 = vpop.f32.mrf.mxu0  ;;  %v1737_v29 = vld [vmem:[#allocation2 + $0x78] sm:$0xff] }
 0x210   :  { %v2009_v19 = vand.u32 4294901760, %v2008_v18  ;;  %v3523_v18 = vfloor.f32 %v3586_v34  ;;  %v3563_v32 = vfloor.f32 %v3587_v4  ;;  %v5861_v4 = vand.u32 4294901760, %v4467_v60 }
 0x211   :  { %2345 = vmatpush.msra.mxu0 %v5856_v58  ;;  %v3588_v58 = vld [vmem:[%s5740_s0 + $0x50] sm:$0xff]  ;;  %v1160_v60 = vadd.f32 %v4591_v2, %v4386_v3  ;;  %v5865_v2 = vand.u32 4294901760, %v4544_v43 }
 0x212   :  { %v4649_v22 = vpop.f32.mrf.mxu2  ;;  %v4651_v10 = vpop.f32.mrf.mxu3  ;;  %2010 = vmatpush.msrb.mxu1 %v2009_v19  ;;  %v3564_v11 = vsel %vm3561_vm9, %v3562_v36, %v3563_v32  ;;  %v3537_v34 = vceil.f32 %v3588_v58  ;;  %vm3536_vm10 = vcmp.lt.s32.totalorder %v3588_v58, 0 }
 0x213   :  { %2349 = vmatpush.msra.mxu0 %v5857_v35  ;;  %v3565_v26 = vcvt.f32.s32 %v3564_v11  ;;  %v1736_v35 = vld [vmem:[#allocation2 + $0x70] sm:$0xff] }
 0x214   :  { %2464 = vmatpush.msra.mxu1 %v4346_v16  ;;  %v3524_v16 = vsel %vm3521_vm8, %v3522_v6, %v3523_v18  ;;  %v3538_v6 = vfloor.f32 %v3588_v58 }
 0x215   :  { %v3525_v1 = vcvt.f32.s32 %v3524_v16  ;;  %2353 = vmatpush.msra.mxu0 %v5858_v15  ;;  %v5862_v16 = vand.u32 4294901760, %v4484_v39  ;;  %v3589_v39 = vld [vmem:[%s5740_s0 + $0x68] sm:$0xff] }
 0x216   :  { %2466 = vmatpush.msra.mxu1 %v4359_v55  ;;  %v4678_v55 = vand.u32 4294901760, %v1737_v29  ;;  %1672 = vperm.xlu0 %3574, %v3565_v26   ;;  %v3552_v11 = vceil.f32 %v3589_v39  ;;  %v3553_v15 = vfloor.f32 %v3589_v39  ;;  %vm3551_vm11 = vcmp.lt.s32.totalorder %v3589_v39, 0 }
 0x217   :  { %1487 = vmatmul.f32.gmra.mxu2 %v4338_v14  ;;  %1588 = vmatmul.f32.gmra.mxu3 %v4342_v28  ;;  %v5859_v14 = vand.u32 4294901760, %v4433_v42  ;;  %v3539_v42 = vsel %vm3536_vm10, %v3537_v34, %v3538_v6  ;;  %v1274_v26 = vadd.f32 %v4614_v12, %v1160_v60  ;;  %v5866_v6 = vand.u32 4294901760, %v4565_v30 }
 0x218   :  { %2468 = vmatpush.msra.mxu1 %v4378_v25  ;;  %1648 = vperm.xlu1 %3575, %v3525_v1   ;;  %v4684_v25 = vpop.f32.mrf.mxu1  ;;  %v4687_v13 = vsub.f32 %v1737_v29, %v4678_v55  ;;  %v3540_v18 = vcvt.f32.s32 %v3539_v42  ;;  %v1165_v12 = vadd.f32 %v4640_v38, %v4403_v20  ;;  %v5868_v20 = vand.u32 4294901760, %v4608_v23  ;;  %v1734_v23 = vld [vmem:[#allocation2 + $0x60] sm:$0xff] }
 0x219   :  { %2357 = vmatpush.msra.mxu0 %v5859_v14  ;;  %2561 = vmatpush.msra.mxu2 %v4678_v55 }
 0x21a   :  { %v4674_v17 = vpop.f32.mrf.mxu2  ;;  %v4676_v19 = vpop.f32.mrf.mxu3  ;;  %2470 = vmatpush.msra.mxu1 %v4395_v9  ;;  %v5860_v9 = vand.u32 4294901760, %v4450_v63  ;;  %v5788_v36 = vand.u32 4294901760, %v4687_v13  ;;  %v4703_v63 = vand.u32 4294901760, %v1736_v35  ;;  %v1280_v60 = vadd.f32 %v4655_v40, %v1165_v12 }
 0x21b   :  { %v1170_v40 = vadd.f32 %v4672_v50, %v4420_v44 }
 0x21c   :  { %2472 = vmatpush.msra.mxu1 %v4412_v47  ;;  %2361 = vmatpush.msra.mxu0 %v5860_v9  ;;  %v4731_v14 = vsub.f32 %v1736_v35, %v4703_v63 }
 0x21d   :  { %2563 = vmatpush.msra.mxu2 %v4703_v63 }
 0x21e   :  { %2474 = vmatpush.msra.mxu1 %v4429_v45  ;;  %2365 = vmatpush.msra.mxu0 %v5861_v4  ;;  %v2724_v45 = vsub.f32 %v4687_v13, %v5788_v36  ;;  %v5786_v9 = vand.u32 4294901760, %v4731_v14 }
 0x21f   :  { %1491 = vmatmul.f32.gmra.mxu2 %v4342_v28  ;;  %v4707_v28 = vpop.f32.mrf.mxu0 }
 0x220   :  { %2476 = vmatpush.msra.mxu1 %v4446_v41  ;;  %2369 = vmatpush.msra.mxu0 %v5862_v16  ;;  %v5863_v41 = vand.u32 4294901760, %v4503_v52  ;;  %v2725_v1 = vand.u32 4294901760, %v2724_v45  ;;  %v4724_v29 = vpop.f32.mrf.mxu1  ;;  %v3554_v52 = vsel %vm3551_vm11, %v3552_v11, %v3553_v15  ;;  %v2730_v30 = vsub.f32 %v4731_v14, %v5786_v9 }
 0x221   :  { %1657 = vperm.xlu1 %3575, %v3540_v18   ;;  %v3555_v3 = vcvt.f32.s32 %v3554_v52  ;;  %v3590_v18 = vld [vmem:[%s5740_s0 + $0x20] sm:$0xff]  ;;  %v5869_v16 = vand.u32 4294901760, %v4623_v0 }
 0x222   :  { %v4701_v32 = vpop.f32.mrf.mxu2  ;;  %v1529_v47 = vpop.f32.mrf.mxu3  ;;  %2478 = vmatpush.msra.mxu1 %v4463_v54  ;;  %2373 = vmatpush.msra.mxu0 %v5863_v41  ;;  %v5864_v54 = vand.u32 4294901760, %v4523_v5  ;;  %v3508_v4 = vfloor.f32 %v3590_v18  ;;  %vm3506_vm12 = vcmp.lt.s32.totalorder %v3590_v18, 0  ;;  %v2731_v38 = vand.u32 4294901760, %v2730_v30 }
 0x223   :  { %2726 = vmatpush.msra.mxu3 %v2725_v1 }
 0x224   :  { %2480 = vmatpush.msra.mxu1 %v4480_v46  ;;  %2377 = vmatpush.msra.mxu0 %v5864_v54  ;;  %v1735_v46 = vld [vmem:[#allocation2 + $0x68] sm:$0xff] }
 0x225   :  { %v4734_v34 = vand.u32 4294901760, %v1735_v46  ;;  %2732 = vmatpush.msra.mxu3 %v2731_v38  ;;  %v1175_v38 = vadd.f32 %v4707_v28, %v4437_v37 }
 0x226   :  { %2482 = vmatpush.msra.mxu1 %v4497_v49  ;;  %2381 = vmatpush.msra.mxu0 %v5865_v2 }
 0x227   :  { %2565 = vmatpush.msra.mxu2 %v4734_v34  ;;  %v4745_v43 = vpop.f32.mrf.mxu0 }
 0x228   :  { %2484 = vmatpush.msra.mxu1 %v4516_v27  ;;  %2385 = vmatpush.msra.mxu0 %v5866_v6  ;;  %v5867_v27 = vand.u32 4294901760, %v4586_v61  ;;  %v4759_v45 = vpop.f32.mrf.mxu1 }
 0x229   :  { %1666 = vperm.xlu1 %3575, %v3555_v3   ;;  %v3591_v3 = vld [vmem:[%s5740_s0 + $0x28] sm:$0xff] }
 0x22a   :  { %v1432_v5 = vpop.f32.mrf.mxu2  ;;  %v1533_v58 = vpop.f32.mrf.mxu3  ;;  %2486 = vmatpush.msra.mxu1 %v4537_v33  ;;  %2389 = vmatpush.msra.mxu0 %v5867_v27  ;;  %v3507_v33 = vceil.f32 %v3590_v18  ;;  %v3512_v2 = vceil.f32 %v3591_v3  ;;  %vm3511_vm13 = vcmp.lt.s32.totalorder %v3591_v3, 0  ;;  %v3513_v44 = vfloor.f32 %v3591_v3  ;;  %v1733_v27 = vld [vmem:[#allocation2 + $0x58] sm:$0xff]  ;;  %v1732_v3 = vld [vmem:[#allocation2 + $0x50] sm:$0xff] }
 0x22b   :  { %v1433_v49 = vadd.f32 %v1432_v5, %v1274_v26  ;;  %v1286_v5 = vadd.f32 %v4684_v25, %v1170_v40 }
 0x22c   :  { %2488 = vmatpush.msra.mxu1 %v4558_v51  ;;  %2393 = vmatpush.msra.mxu0 %v5868_v20  ;;  %v3509_v35 = vsel %vm3506_vm12, %v3507_v33, %v3508_v4  ;;  %v4765_v51 = vsub.f32 %v1735_v46, %v4734_v34  ;;  %v4794_v33 = vand.u32 4294901760, %v1733_v27 }
 0x22d   :  { %v1530_v42 = vadd.f32 %v1529_v47, %v1433_v49  ;;  %v3510_v47 = vcvt.f32.s32 %v3509_v35 }
 0x22e   :  { %2490 = vmatpush.msra.mxu1 %v4579_v7  ;;  %2397 = vmatpush.msra.mxu0 %v5869_v16  ;;  %v4768_v7 = vand.u32 4294901760, %v1734_v23  ;;  %v5785_v15 = vand.u32 4294901760, %v4765_v51 }
 0x22f   :  { %v1592_v61 = vmax.f32 %v1530_v42, 0.0  ;;  %1639 = vperm.xlu2 %3576, %v3510_v47   ;;  %v4784_v50 = vpop.f32.mrf.mxu0 }
 0x230   :  { %2492 = vmatpush.msra.mxu1 %v4597_v8  ;;  %2567 = vmatpush.msra.mxu2 %v4768_v7  ;;  %v2736_v52 = vsub.f32 %v4765_v51, %v5785_v15  ;;  %v4791_v12 = vsub.f32 %v1734_v23, %v4768_v7  ;;  %v4796_v4 = vpop.f32.mrf.mxu1 }
 0x231   :  { %v4761_v41 = vand.u32 4294901760, %v1592_v61 }
 0x232   :  { %v1436_v1 = vpop.f32.mrf.mxu2  ;;  %v1537_v39 = vpop.f32.mrf.mxu3  ;;  %2494 = vmatpush.msra.mxu1 %v4612_v48  ;;  %v2737_v46 = vand.u32 4294901760, %v2736_v52  ;;  %2569 = vmatpush.msra.mxu2 %v4794_v33  ;;  %v4820_v52 = vsub.f32 %v1733_v27, %v4794_v33 }
 0x233   :  { %v1787_v0 = vsub.f32 %v1592_v61, %v4761_v41  ;;  %v1437_v11 = vadd.f32 %v1436_v1, %v1280_v60  ;;  %2012 = vmatmul.f32.vlgmr.msrb.gmra.mxu1 %v4761_v41  ;;  %v5783_v61 = vand.u32 4294901760, %v4791_v12  ;;  %v3592_v60 = vld [vmem:[%s5740_s0 + $0x40] sm:$0xff] }
 0x234   :  { %3012 = vmatpush.msrb.mxu1 %v4678_v55  ;;  %2738 = vmatpush.msra.mxu3 %v2737_v46  ;;  %v3527_v23 = vceil.f32 %v3592_v60  ;;  %vm3526_vm14 = vcmp.lt.s32.totalorder %v3592_v60, 0  ;;  %v3528_v1 = vfloor.f32 %v3592_v60 }
 0x235   :  { %v1788_v8 = vand.u32 4294901760, %v1787_v0  ;;  %v1534_v54 = vadd.f32 %v1533_v58, %v1437_v11  ;;  %2126 = vmatmul.f32.vlgmr.msrb.gmra.mxu2 %v1787_v0  ;;  %v3514_v58 = vsel %vm3511_vm13, %v3512_v2, %v3513_v44  ;;  %v2742_v16 = vsub.f32 %v4791_v12, %v5783_v61 }
 0x236   :  { %3014 = vmatpush.msrb.mxu1 %v4703_v63  ;;  %v3515_v42 = vcvt.f32.s32 %v3514_v58  ;;  %v3529_v11 = vsel %vm3526_vm14, %v3527_v23, %v3528_v1  ;;  %v1180_v58 = vadd.f32 %v4745_v43, %v4454_v21  ;;  %v1731_v1 = vld [vmem:[#allocation2 + $0x48] sm:$0xff] }
 0x237   :  { %v1789_v26 = vsub.f32 %v1787_v0, %v1788_v8  ;;  %v1593_v48 = vmax.f32 %v1534_v54, 0.0  ;;  %2240 = vmatmul.f32.vlgmr.msrb.gmra.mxu3 %v1788_v8  ;;  %v1292_v0 = vadd.f32 %v4724_v29, %v1175_v38  ;;  %v4815_v40 = vpop.f32.mrf.mxu0  ;;  %v3530_v2 = vcvt.f32.s32 %v3529_v11 }
 0x238   :  { %3016 = vmatpush.msrb.mxu1 %v4734_v34  ;;  %1642 = vperm.xlu2 %3576, %v3515_v42  }
 0x239   :  { %v1790_v6 = vand.u32 4294901760, %v1789_v26  ;;  %v4788_v49 = vand.u32 4294901760, %v1593_v48 }
 0x23a   :  { %v1440_v30 = vpop.f32.mrf.mxu2  ;;  %v1541_v18 = vpop.f32.mrf.mxu3  ;;  %3018 = vmatpush.msrb.mxu1 %v4768_v7 }
 0x23b   :  { %v1441_v20 = vadd.f32 %v1440_v30, %v1286_v5  ;;  %1791 = vmatmul.f32.vlgmr.msrb.gmra.mxu0 %v1790_v6  ;;  %2016 = vmatmul.f32.gmra.mxu1 %v4788_v49  ;;  %v1795_v25 = vsub.f32 %v1593_v48, %v4788_v49  ;;  %v4823_v48 = vand.u32 4294901760, %v1732_v3  ;;  %v5782_v5 = vand.u32 4294901760, %v4820_v52  ;;  %v4831_v6 = vpop.f32.mrf.mxu1 }
 0x23c   :  { %2884 = vmatpush.msrb.mxu0 %v4687_v13  ;;  %3020 = vmatpush.msrb.mxu1 %v4794_v33 }
 0x23d   :  { %v1538_v35 = vadd.f32 %v1537_v39, %v1441_v20  ;;  %2131 = vmatmul.f32.gmra.mxu2 %v1795_v25  ;;  %v1796_v47 = vand.u32 4294901760, %v1795_v25  ;;  %v2743_v39 = vand.u32 4294901760, %v2742_v16  ;;  %v2748_v30 = vsub.f32 %v4820_v52, %v5782_v5  ;;  %v3593_v20 = vld [vmem:[%s5740_s0 + $0x58] sm:$0xff] }
 0x23e   :  { %2887 = vmatpush.msrb.mxu0 %v4731_v14  ;;  %2571 = vmatpush.msra.mxu2 %v4823_v48  ;;  %vm3541_vm15 = vcmp.lt.s32.totalorder %v3593_v20, 0  ;;  %v3543_v21 = vfloor.f32 %v3593_v20  ;;  %v4846_v23 = vsub.f32 %v1732_v3, %v4823_v48  ;;  %v1185_v3 = vadd.f32 %v4784_v50, %v4471_v62 }
 0x23f   :  { %v1594_v37 = vmax.f32 %v1538_v35, 0.0  ;;  %2246 = vmatmul.f32.gmra.mxu3 %v1796_v47  ;;  %v1797_v28 = vsub.f32 %v1795_v25, %v1796_v47  ;;  %v3542_v25 = vceil.f32 %v3593_v20  ;;  %3022 = vmatpush.msrb.mxu1 %v4823_v48  ;;  %v2749_v38 = vand.u32 4294901760, %v2748_v30  ;;  %v4850_v11 = vpop.f32.mrf.mxu0 }
 0x240   :  { %2744 = vmatpush.msra.mxu3 %v2743_v39  ;;  %2890 = vmatpush.msrb.mxu0 %v4765_v51  ;;  %v1298_v35 = vadd.f32 %v4759_v45, %v1180_v58  ;;  %v3594_v58 = vld [vmem:[%s5740_s0 + $0x70] sm:$0xff]  ;;  %v1304_v20 = vadd.f32 %v4796_v4, %v1185_v3 }
 0x241   :  { %v4817_v8 = vand.u32 4294901760, %v1594_v37  ;;  %v1798_v54 = vand.u32 4294901760, %v1797_v28  ;;  %1651 = vperm.xlu2 %3576, %v3530_v2   ;;  %v3544_v47 = vsel %vm3541_vm15, %v3542_v25, %v3543_v21  ;;  %v5781_v2 = vand.u32 4294901760, %v4846_v23 }
 0x242   :  { %v1444_v44 = vpop.f32.mrf.mxu2  ;;  %v1545_v26 = vpop.f32.mrf.mxu3  ;;  %2893 = vmatpush.msrb.mxu0 %v4791_v12  ;;  %2750 = vmatpush.msra.mxu3 %v2749_v38  ;;  %vm3556_vm0 = vcmp.lt.s32.totalorder %v3594_v58, 0  ;;  %v1730_v38 = vld [vmem:[#allocation2 + $0x40] sm:$0xff] }
 0x243   :  { %v1445_v29 = vadd.f32 %v1444_v44, %v1292_v0  ;;  %1799 = vmatmul.f32.gmra.mxu0 %v1798_v54  ;;  %2020 = vmatmul.f32.gmra.mxu1 %v4817_v8  ;;  %v1803_v46 = vsub.f32 %v1594_v37, %v4817_v8  ;;  %v3545_v37 = vcvt.f32.s32 %v3544_v47  ;;  %v4848_v0 = vand.u32 4294901760, %v1731_v1  ;;  %v4866_v62 = vpop.f32.mrf.mxu1 }
 0x244   :  { %2896 = vmatpush.msrb.mxu0 %v4820_v52 }
 0x245   :  { %v1542_v27 = vadd.f32 %v1541_v18, %v1445_v29  ;;  %2136 = vmatmul.f32.gmra.mxu2 %v1803_v46  ;;  %v1804_v42 = vand.u32 4294901760, %v1803_v46  ;;  %3024 = vmatpush.msrb.mxu1 %v4848_v0 }
 0x246   :  { %2573 = vmatpush.msra.mxu2 %v4848_v0  ;;  %2899 = vmatpush.msrb.mxu0 %v4846_v23 }
 0x247   :  { %v1595_v43 = vmax.f32 %v1542_v27, 0.0  ;;  %2252 = vmatmul.f32.gmra.mxu3 %v1804_v42  ;;  %v1805_v18 = vsub.f32 %v1803_v46, %v1804_v42  ;;  %v2754_v46 = vsub.f32 %v4846_v23, %v5781_v2  ;;  %v3557_v27 = vceil.f32 %v3594_v58 }
 0x248   :  { %v3558_v42 = vfloor.f32 %v3594_v58 }
 0x249   :  { %v4843_v16 = vand.u32 4294901760, %v1595_v43  ;;  %v1806_v60 = vand.u32 4294901760, %v1805_v18  ;;  %1660 = vperm.xlu2 %3576, %v3545_v37   ;;  %v2755_v30 = vand.u32 4294901760, %v2754_v46  ;;  %v4872_v18 = vsub.f32 %v1731_v1, %v4848_v0 }
 0x24a   :  { %v1448_v28 = vpop.f32.mrf.mxu2  ;;  %v1549_v39 = vpop.f32.mrf.mxu3  ;;  %v3559_v25 = vsel %vm3556_vm0, %v3557_v27, %v3558_v42  ;;  %v4874_v37 = vand.u32 4294901760, %v1730_v38 }
 0x24b   :  { %v1449_v54 = vadd.f32 %v1448_v28, %v1298_v35  ;;  %1807 = vmatmul.f32.gmra.mxu0 %v1806_v60  ;;  %2024 = vmatmul.f32.gmra.mxu1 %v4843_v16  ;;  %v1811_v45 = vsub.f32 %v1595_v43, %v4843_v16  ;;  %v3560_v35 = vcvt.f32.s32 %v3559_v25  ;;  %v1321_v42 = vpop.f32.mrf.mxu1 }
 0x24c   :  { %2756 = vmatpush.msra.mxu3 %v2755_v30  ;;  %2575 = vmatpush.msra.mxu2 %v4874_v37 }
 0x24d   :  { %v1546_v44 = vadd.f32 %v1545_v26, %v1449_v54  ;;  %2141 = vmatmul.f32.gmra.mxu2 %v1811_v45  ;;  %v1812_v29 = vand.u32 4294901760, %v1811_v45  ;;  %v5779_v54 = vand.u32 4294901760, %v4872_v18  ;;  %2902 = vmatpush.msrb.mxu0 %v4872_v18 }
 0x24e   :  { %3026 = vmatpush.msrb.mxu1 %v4874_v37 }
 0x24f   :  { %v1596_v50 = vmax.f32 %v1546_v44, 0.0  ;;  %2258 = vmatmul.f32.gmra.mxu3 %v1812_v29  ;;  %v1813_v26 = vsub.f32 %v1811_v45, %v1812_v29  ;;  %v4880_v45 = vpop.f32.mrf.mxu0  ;;  %v1190_v44 = vadd.f32 %v4815_v40, %v4488_v53  ;;  %v2760_v29 = vsub.f32 %v4872_v18, %v5779_v54  ;;  %v1729_v40 = vld [vmem:[#allocation2 + $0x38] sm:$0xff] }
 0x250   :  { %v4893_v53 = vsub.f32 %v1730_v38, %v4874_v37  ;;  %v4895_v25 = vand.u32 4294901760, %v1729_v40  ;;  %v4907_v38 = vld [vmem:[%s5743_s3] ss:$0 sm:$0xff] }
 0x251   :  { %v4869_v21 = vand.u32 4294901760, %v1596_v50  ;;  %v1814_v43 = vand.u32 4294901760, %v1813_v26  ;;  %1669 = vperm.xlu2 %3576, %v3560_v35   ;;  %v2761_v27 = vand.u32 4294901760, %v2760_v29 }
 0x252   :  { %v1452_v47 = vpop.f32.mrf.mxu2  ;;  %v1553_v60 = vpop.f32.mrf.mxu3  ;;  %2577 = vmatpush.msra.mxu2 %v4895_v25  ;;  %2905 = vmatpush.msrb.mxu0 %v4893_v53 }
 0x253   :  { %v1453_v28 = vadd.f32 %v1452_v47, %v1304_v20  ;;  %1815 = vmatmul.f32.gmra.mxu0 %v1814_v43  ;;  %2028 = vmatmul.f32.gmra.mxu1 %v4869_v21  ;;  %v1819_v4 = vsub.f32 %v1596_v50, %v4869_v21  ;;  %v5778_v47 = vand.u32 4294901760, %v4893_v53 }
 0x254   :  { %2762 = vmatpush.msra.mxu3 %v2761_v27  ;;  %3028 = vmatpush.msrb.mxu1 %v4895_v25 }
 0x255   :  { %v1550_v1 = vadd.f32 %v1549_v39, %v1453_v28  ;;  %2146 = vmatmul.f32.gmra.mxu2 %v1819_v4  ;;  %v1820_v3 = vand.u32 4294901760, %v1819_v4  ;;  %v1310_v39 = vadd.f32 %v4831_v6, %v1190_v44  ;;  %v1195_v6 = vadd.f32 %v4850_v11, %v4507_v56 }
 0x256   :  { %v889_v28 = vadd.f32 %v4907_v38, %v4518_v31 }
 0x257   :  { %v1597_v46 = vmax.f32 %v1550_v1, 0.0  ;;  %2264 = vmatmul.f32.gmra.mxu3 %v1820_v3  ;;  %v1821_v58 = vsub.f32 %v1819_v4, %v1820_v3  ;;  %v2766_v3 = vsub.f32 %v4893_v53, %v5778_v47  ;;  %v1204_v56 = vpop.f32.mrf.mxu0 }
 0x259   :  { %v4889_v50 = vand.u32 4294901760, %v1597_v46  ;;  %v1822_v26 = vand.u32 4294901760, %v1821_v58  ;;  %v2767_v29 = vand.u32 4294901760, %v2766_v3  ;;  %v1078_v58 = vadd.f32 %v4499_v24, %v889_v28 }
 0x25a   :  { %v1456_v30 = vpop.f32.mrf.mxu2  ;;  %v1557_v20 = vpop.f32.mrf.mxu3 }
 0x25b   :  { %v1457_v43 = vadd.f32 %v1456_v30, %v1310_v39  ;;  %1823 = vmatmul.f32.gmra.mxu0 %v1822_v26  ;;  %2032 = vmatmul.f32.gmra.mxu1 %v4889_v50  ;;  %v1827_v35 = vsub.f32 %v1597_v46, %v4889_v50  ;;  %v1316_v46 = vadd.f32 %v4866_v62, %v1195_v6  ;;  %v1728_v39 = vld [vmem:[#allocation2 + $0x30] sm:$0xff] }
 0x25c   :  { %2768 = vmatpush.msra.mxu3 %v2767_v29  ;;  %v897_v6 = vadd.f32 %v4907_v38, %v4539_v59 }
 0x25d   :  { %v1554_v4 = vadd.f32 %v1553_v60, %v1457_v43  ;;  %2151 = vmatmul.f32.gmra.mxu2 %v1827_v35  ;;  %v1828_v1 = vand.u32 4294901760, %v1827_v35  ;;  %v4920_v60 = vsub.f32 %v1729_v40, %v4895_v25  ;;  %v4922_v43 = vand.u32 4294901760, %v1728_v39 }
 0x25e   :  { %v1082_v59 = vadd.f32 %v4520_v57, %v897_v6 }
 0x25f   :  { %v1598_v11 = vmax.f32 %v1554_v4, 0.0  ;;  %2270 = vmatmul.f32.gmra.mxu3 %v1828_v1  ;;  %v1829_v44 = vsub.f32 %v1827_v35, %v1828_v1  ;;  %v5777_v24 = vand.u32 4294901760, %v4920_v60  ;;  %v1327_v35 = vpop.f32.mrf.mxu1  ;;  %2579 = vmatpush.msra.mxu2 %v4922_v43  ;;  %v1200_v1 = vadd.f32 %v4880_v45, %v1078_v58  ;;  %v1727_v58 = vld [vmem:[#allocation2 + $0x28] sm:$0xff] }
 0x260   :  { %2908 = vmatpush.msrb.mxu0 %v4920_v60  ;;  %3030 = vmatpush.msrb.mxu1 %v4922_v43  ;;  %v4940_v45 = vsub.f32 %v1728_v39, %v4922_v43  ;;  %v4942_v47 = vand.u32 4294901760, %v1727_v58  ;;  %v1205_v6 = vadd.f32 %v1204_v56, %v1082_v59 }
 0x261   :  { %v4917_v27 = vand.u32 4294901760, %v1598_v11  ;;  %v1830_v31 = vand.u32 4294901760, %v1829_v44  ;;  %v2772_v3 = vsub.f32 %v4920_v60, %v5777_v24 }
 0x262   :  { %v1460_v26 = vpop.f32.mrf.mxu2  ;;  %v1561_v30 = vpop.f32.mrf.mxu3  ;;  %2581 = vmatpush.msra.mxu2 %v4942_v47  ;;  %2911 = vmatpush.msrb.mxu0 %v4940_v45  ;;  %v1328_v59 = vadd.f32 %v1327_v35, %v1205_v6 }
 0x263   :  { %v1461_v4 = vadd.f32 %v1460_v26, %v1316_v46  ;;  %1831 = vmatmul.f32.gmra.mxu0 %v1830_v31  ;;  %2036 = vmatmul.f32.gmra.mxu1 %v4917_v27  ;;  %v1835_v62 = vsub.f32 %v1598_v11, %v4917_v27  ;;  %v2773_v29 = vand.u32 4294901760, %v2772_v3  ;;  %v1209_v46 = vpop.f32.mrf.mxu0 }
 0x264   :  { %3032 = vmatpush.msrb.mxu1 %v4942_v47 }
 0x265   :  { %v1558_v40 = vadd.f32 %v1557_v20, %v1461_v4  ;;  %2156 = vmatmul.f32.gmra.mxu2 %v1835_v62  ;;  %v1836_v28 = vand.u32 4294901760, %v1835_v62  ;;  %v1322_v20 = vadd.f32 %v1321_v42, %v1200_v1  ;;  %2774 = vmatpush.msra.mxu3 %v2773_v29  ;;  %v5870_v42 = vld [vmem:[#allocation12_spill] sm:$0xff] }
 0x266   :  { %v905_v39 = vadd.f32 %v4907_v38, %v5870_v42 }
 0x267   :  { %v1599_v11 = vmax.f32 %v1558_v40, 0.0  ;;  %2276 = vmatmul.f32.gmra.mxu3 %v1836_v28  ;;  %v1837_v44 = vsub.f32 %v1835_v62, %v1836_v28  ;;  %v5780_v62 = vand.u32 4294901760, %v4940_v45 }
 0x269   :  { %v4937_v31 = vand.u32 4294901760, %v1599_v11  ;;  %v1838_v26 = vand.u32 4294901760, %v1837_v44  ;;  %v2778_v3 = vsub.f32 %v4940_v45, %v5780_v62 }
 0x26a   :  { %v1464_v4 = vpop.f32.mrf.mxu2  ;;  %v1565_v24 = vpop.f32.mrf.mxu3 }
 0x26b   :  { %v1465_v40 = vadd.f32 %v1464_v4, %v1322_v20  ;;  %1839 = vmatmul.f32.gmra.mxu0 %v1838_v26  ;;  %2040 = vmatmul.f32.gmra.mxu1 %v4937_v31  ;;  %v1843_v57 = vsub.f32 %v1599_v11, %v4937_v31  ;;  %v1333_v11 = vpop.f32.mrf.mxu1  ;;  %v2779_v29 = vand.u32 4294901760, %v2778_v3  ;;  %v5871_v20 = vld [vmem:[#allocation11_spill] sm:$0xff]  ;;  %v1214_v6 = vpop.f32.mrf.mxu0 }
 0x26c   :  { %v1086_v26 = vadd.f32 %v5871_v20, %v905_v39  ;;  %v5872_v39 = vld [vmem:[#allocation14_spill] sm:$0xff]  ;;  %v5873_v20 = vld [vmem:[#allocation13_spill] sm:$0xff] }
 0x26d   :  { %v1562_v28 = vadd.f32 %v1561_v30, %v1465_v40  ;;  %2161 = vmatmul.f32.gmra.mxu2 %v1843_v57  ;;  %v1844_v1 = vand.u32 4294901760, %v1843_v57  ;;  %2780 = vmatpush.msra.mxu3 %v2779_v29  ;;  %v4959_v30 = vsub.f32 %v1727_v58, %v4942_v47  ;;  %v1726_v40 = vld [vmem:[#allocation2 + $0x20] sm:$0xff] }
 0x26e   :  { %v4961_v2 = vand.u32 4294901760, %v1726_v40  ;;  %v1210_v3 = vadd.f32 %v1209_v46, %v1086_v26  ;;  %v1725_v46 = vld [vmem:[#allocation2 + $0x18] sm:$0xff] }
 0x26f   :  { %v1600_v44 = vmax.f32 %v1562_v28, 0.0  ;;  %2282 = vmatmul.f32.gmra.mxu3 %v1844_v1  ;;  %v1845_v56 = vsub.f32 %v1843_v57, %v1844_v1  ;;  %v5784_v57 = vand.u32 4294901760, %v4959_v30  ;;  %v913_v28 = vadd.f32 %v4907_v38, %v5872_v39  ;;  %2914 = vmatpush.msrb.mxu0 %v4959_v30 }
 0x270   :  { %2583 = vmatpush.msra.mxu2 %v4961_v2  ;;  %3034 = vmatpush.msrb.mxu1 %v4961_v2  ;;  %v1334_v61 = vadd.f32 %v1333_v11, %v1210_v3  ;;  %v5875_v11 = vld [vmem:[#allocation16_spill] sm:$0xff] }
 0x271   :  { %v4956_v4 = vand.u32 4294901760, %v1600_v44  ;;  %v1846_v42 = vand.u32 4294901760, %v1845_v56 }
 0x272   :  { %v1468_v54 = vpop.f32.mrf.mxu2  ;;  %v1569_v62 = vpop.f32.mrf.mxu3 }
 0x273   :  { %v1469_v5 = vadd.f32 %v1468_v54, %v1328_v59  ;;  %1847 = vmatmul.f32.gmra.mxu0 %v1846_v42  ;;  %2044 = vmatmul.f32.gmra.mxu1 %v4956_v4  ;;  %v1851_v35 = vsub.f32 %v1600_v44, %v4956_v4  ;;  %v2784_v54 = vsub.f32 %v4959_v30, %v5784_v57  ;;  %v1339_v59 = vpop.f32.mrf.mxu1  ;;  %v4980_v57 = vand.u32 4294901760, %v1725_v46 }
 0x274   :  { %v1090_v42 = vadd.f32 %v5873_v20, %v913_v28 }
 0x275   :  { %v1566_v58 = vadd.f32 %v1565_v24, %v1469_v5  ;;  %2166 = vmatmul.f32.gmra.mxu2 %v1851_v35  ;;  %v1852_v1 = vand.u32 4294901760, %v1851_v35  ;;  %v2785_v29 = vand.u32 4294901760, %v2784_v54  ;;  %v4978_v24 = vsub.f32 %v1726_v40, %v4961_v2  ;;  %3036 = vmatpush.msrb.mxu1 %v4980_v57 }
 0x276   :  { %2585 = vmatpush.msra.mxu2 %v4980_v57  ;;  %v921_v40 = vadd.f32 %v4907_v38, %v5875_v11 }
 0x277   :  { %v1601_v44 = vmax.f32 %v1566_v58, 0.0  ;;  %2288 = vmatmul.f32.gmra.mxu3 %v1852_v1  ;;  %v1853_v56 = vsub.f32 %v1851_v35, %v1852_v1  ;;  %v5787_v28 = vand.u32 4294901760, %v4978_v24  ;;  %v1215_v1 = vadd.f32 %v1214_v6, %v1090_v42  ;;  %2917 = vmatpush.msrb.mxu0 %v4978_v24  ;;  %v5876_v42 = vld [vmem:[#allocation15_spill] sm:$0xff] }
 0x278   :  { %2786 = vmatpush.msra.mxu3 %v2785_v29 }
 0x279   :  { %v4975_v39 = vand.u32 4294901760, %v1601_v44  ;;  %v1854_v5 = vand.u32 4294901760, %v1853_v56  ;;  %v1340_v20 = vadd.f32 %v1339_v59, %v1215_v1  ;;  %v929_v1 = vadd.f32 %v4907_v38, %v4649_v22 }
 0x27a   :  { %v1472_v26 = vpop.f32.mrf.mxu2  ;;  %v1573_v58 = vpop.f32.mrf.mxu3 }
 0x27b   :  { %5874 = vst [vmem:[#allocation18_spill] sm:$0xff] %v4975_v39  ;;  %v1473_v15 = vadd.f32 %v1472_v26, %v1334_v61  ;;  %1855 = vmatmul.f32.gmra.mxu0 %v1854_v5  ;;  %2048 = vmatmul.f32.gmra.mxu1 %v4975_v39  ;;  %v1859_v35 = vsub.f32 %v1601_v44, %v4975_v39  ;;  %v1219_v44 = vpop.f32.mrf.mxu0  ;;  %v1345_v9 = vpop.f32.mrf.mxu1 }
 0x27c   :  { %v2790_v61 = vsub.f32 %v4978_v24, %v5787_v28  ;;  %v1094_v5 = vadd.f32 %v5876_v42, %v921_v40 }
 0x27d   :  { %v1570_v3 = vadd.f32 %v1569_v62, %v1473_v15  ;;  %2171 = vmatmul.f32.gmra.mxu2 %v1859_v35  ;;  %v1860_v54 = vand.u32 4294901760, %v1859_v35  ;;  %v4997_v15 = vsub.f32 %v1725_v46, %v4980_v57  ;;  %v1724_v62 = vld [vmem:[#allocation2 + $0x10] sm:$0xff] }
 0x27e   :  { %v2791_v29 = vand.u32 4294901760, %v2790_v61  ;;  %v4999_v36 = vand.u32 4294901760, %v1724_v62 }
 0x27f   :  { %v1602_v56 = vmax.f32 %v1570_v3, 0.0  ;;  %2294 = vmatmul.f32.gmra.mxu3 %v1860_v54  ;;  %v1861_v6 = vsub.f32 %v1859_v35, %v1860_v54  ;;  %v5791_v35 = vand.u32 4294901760, %v4997_v15  ;;  %2920 = vmatpush.msrb.mxu0 %v4997_v15  ;;  %v1220_v3 = vadd.f32 %v1219_v44, %v1094_v5  ;;  %v1723_v5 = vld [vmem:[#allocation2 + $0x8] sm:$0xff] }
 0x280   :  { %2792 = vmatpush.msra.mxu3 %v2791_v29  ;;  %2587 = vmatpush.msra.mxu2 %v4999_v36  ;;  %v5878_v29 = vld [vmem:[#allocation17_spill] sm:$0xff]  ;;  %v5016_v44 = vsub.f32 %v1724_v62, %v4999_v36 }
 0x281   :  { %v4994_v26 = vand.u32 4294901760, %v1602_v56  ;;  %v1862_v11 = vand.u32 4294901760, %v1861_v6  ;;  %3038 = vmatpush.msrb.mxu1 %v4999_v36 }
 0x282   :  { %v1476_v28 = vpop.f32.mrf.mxu2  ;;  %v1577_v54 = vpop.f32.mrf.mxu3  ;;  %2923 = vmatpush.msrb.mxu0 %v5016_v44 }
 0x283   :  { %5877 = vst [vmem:[#allocation19_spill] sm:$0xff] %v4994_v26  ;;  %v1477_v39 = vadd.f32 %v1476_v28, %v1340_v20  ;;  %1863 = vmatmul.f32.gmra.mxu0 %v1862_v11  ;;  %2052 = vmatmul.f32.gmra.mxu1 %v4994_v26  ;;  %v1867_v59 = vsub.f32 %v1602_v56, %v4994_v26  ;;  %v1224_v22 = vpop.f32.mrf.mxu0 }
 0x284   :  { %v2796_v28 = vsub.f32 %v4997_v15, %v5791_v35  ;;  %v1098_v20 = vadd.f32 %v5878_v29, %v929_v1  ;;  %v5018_v35 = vand.u32 4294901760, %v1723_v5  ;;  %v5795_v1 = vand.u32 4294901760, %v5016_v44 }
 0x285   :  { %v1574_v46 = vadd.f32 %v1573_v58, %v1477_v39  ;;  %2176 = vmatmul.f32.gmra.mxu2 %v1867_v59  ;;  %v1868_v40 = vand.u32 4294901760, %v1867_v59  ;;  %v1346_v39 = vadd.f32 %v1345_v9, %v1220_v3 }
 0x286   :  { %v2797_v6 = vand.u32 4294901760, %v2796_v28  ;;  %v1225_v9 = vadd.f32 %v1224_v22, %v1098_v20  ;;  %2589 = vmatpush.msra.mxu2 %v5018_v35  ;;  %v5025_v62 = vsub.f32 %v1723_v5, %v5018_v35  ;;  %v937_v28 = vadd.f32 %v4907_v38, %v4674_v17  ;;  %3040 = vmatpush.msrb.mxu1 %v5018_v35 }
 0x287   :  { %v1603_v61 = vmax.f32 %v1574_v46, 0.0  ;;  %2300 = vmatmul.f32.gmra.mxu3 %v1868_v40  ;;  %v1869_v56 = vsub.f32 %v1867_v59, %v1868_v40  ;;  %v1722_v46 = vld [vmem:[#allocation2] sm:$0xff]  ;;  %v1351_v40 = vpop.f32.mrf.mxu1 }
 0x288   :  { %2798 = vmatpush.msra.mxu3 %v2797_v6  ;;  %v5027_v3 = vand.u32 4294901760, %v1722_v46  ;;  %v2802_v6 = vsub.f32 %v5016_v44, %v5795_v1  ;;  %v5794_v22 = vand.u32 4294901760, %v5025_v62  ;;  %2926 = vmatpush.msrb.mxu0 %v5025_v62  ;;  %v1102_v5 = vadd.f32 %v4651_v10, %v937_v28 }
 0x289   :  { %v5013_v42 = vand.u32 4294901760, %v1603_v61  ;;  %v1870_v58 = vand.u32 4294901760, %v1869_v56 }
 0x28a   :  { %v1480_v11 = vpop.f32.mrf.mxu2  ;;  %2591 = vmatpush.msra.mxu2 %v5027_v3  ;;  %v5039_v29 = vsub.f32 %v1722_v46, %v5027_v3  ;;  %3042 = vmatpush.msrb.mxu1 %v5027_v3  ;;  %v1352_v46 = vadd.f32 %v1351_v40, %v1225_v9  ;;  %v5881_v40 = vand.u32 4294901760, %v4765_v51  ;;  %v5883_v51 = vand.u32 4294901760, %v4820_v52 }
 0x28b   :  { %v1481_v26 = vadd.f32 %v1480_v11, %v1346_v39  ;;  %1871 = vmatmul.f32.gmra.mxu0 %v1870_v58  ;;  %2056 = vmatmul.f32.gmra.mxu1 %v5013_v42  ;;  %v1875_v59 = vsub.f32 %v1603_v61, %v5013_v42  ;;  %v1581_v39 = vpop.f32.mrf.mxu3  ;;  %v2808_v58 = vsub.f32 %v5025_v62, %v5794_v22 }
 0x28c   :  { %2929 = vmatpush.msrb.mxu0 %v5039_v29 }
 0x28d   :  { %v1578_v56 = vadd.f32 %v1577_v54, %v1481_v26  ;;  %2181 = vmatmul.f32.gmra.mxu2 %v1875_v59  ;;  %v1876_v61 = vand.u32 4294901760, %v1875_v59  ;;  %v2803_v26 = vand.u32 4294901760, %v2802_v6  ;;  %v5879_v54 = vand.u32 4294901760, %v4687_v13  ;;  %v1229_v13 = vpop.f32.mrf.mxu0 }
 0x28e   :  { %v2809_v6 = vand.u32 4294901760, %v2808_v58 }
 0x28f   :  { %v1604_v20 = vmax.f32 %v1578_v56, 0.0  ;;  %2306 = vmatmul.f32.gmra.mxu3 %v1876_v61  ;;  %v1877_v17 = vsub.f32 %v1875_v59, %v1876_v61  ;;  %3143 = vmatpush.msrb.mxu2 %v5879_v54  ;;  %v5880_v59 = vand.u32 4294901760, %v4731_v14  ;;  %v2813_v54 = vand.u32 4294901760, %v5039_v29 }
 0x290   :  { %2804 = vmatpush.msra.mxu3 %v2803_v26  ;;  %v945_v14 = vadd.f32 %v4907_v38, %v4701_v32  ;;  %v1357_v26 = vpop.f32.mrf.mxu1 }
 0x291   :  { %v5050_v11 = vand.u32 4294901760, %v1604_v20  ;;  %v1878_v56 = vand.u32 4294901760, %v1877_v17  ;;  %3147 = vmatpush.msrb.mxu2 %v5880_v59  ;;  %v2814_v10 = vsub.f32 %v5039_v29, %v2813_v54  ;;  %v1230_v17 = vadd.f32 %v1229_v13, %v1102_v5 }
 0x292   :  { %v1484_v61 = vpop.f32.mrf.mxu2  ;;  %2810 = vmatpush.msra.mxu3 %v2809_v6  ;;  %v5885_v6 = vand.u32 4294901760, %v4872_v18  ;;  %v5887_v18 = vand.u32 4294901760, %v4920_v60 }
 0x293   :  { %v1485_v22 = vadd.f32 %v1484_v61, %v1352_v46  ;;  %1879 = vmatmul.f32.gmra.mxu0 %v1878_v56  ;;  %2060 = vmatmul.f32.gmra.mxu1 %v5050_v11  ;;  %v1883_v1 = vsub.f32 %v1604_v20, %v5050_v11  ;;  %v2815_v58 = vand.u32 4294901760, %v2814_v10  ;;  %v5882_v46 = vand.u32 4294901760, %v4791_v12 }
 0x294   :  { %3151 = vmatpush.msrb.mxu2 %v5881_v40  ;;  %v1624_v20 = vlaneseq  ;;  %v1106_v61 = vadd.f32 %v4676_v19, %v945_v14  ;;  %v1358_v38 = vadd.f32 %v1357_v26, %v1230_v17  ;;  %v5884_v12 = vand.u32 4294901760, %v4846_v23  ;;  %v5081_v23 = vpop.permute.xlu0 %1627 }
 0x295   :  { %v1582_v9 = vadd.f32 %v1581_v39, %v1485_v22  ;;  %2186 = vmatmul.f32.gmra.mxu2 %v1883_v1  ;;  %v1884_v28 = vand.u32 4294901760, %v1883_v1  ;;  %2816 = vmatpush.msra.mxu3 %v2815_v58  ;;  %v1585_v39 = vpop.f32.mrf.mxu3  ;;  %v1234_v19 = vpop.f32.mrf.mxu0  ;;  %v5886_v14 = vand.u32 4294901760, %v4893_v53 }
 0x296   :  { %3155 = vmatpush.msrb.mxu2 %v5882_v46  ;;  %v5074_v13 = vand.u32 127, %v1624_v20  ;;  %v1235_v40 = vadd.f32 %v1234_v19, %v1106_v61  ;;  %v5888_v20 = vand.u32 4294901760, %v4940_v45  ;;  %v5890_v45 = vand.u32 4294901760, %v4978_v24 }
 0x297   :  { %v1605_v56 = vmax.f32 %v1582_v9, 0.0  ;;  %2312 = vmatmul.f32.gmra.mxu3 %v1884_v28  ;;  %v1885_v59 = vsub.f32 %v1883_v1, %v1884_v28  ;;  %v5892_v24 = vand.u32 4294901760, %v5016_v44  ;;  %v5135_v44 = vpop.permute.xlu1 %1633 }
 0x298   :  { %3159 = vmatpush.msrb.mxu2 %v5883_v51  ;;  %3270 = vmatpush.msrb.mxu3 %v4678_v55  ;;  %vm1674_vm1 = vcmp.eq.s32.totalorder %v5081_v23, %v5074_v13  ;;  %v1363_v28 = vpop.f32.mrf.mxu1  ;;  %vm1676_vm3 = vcmp.eq.s32.totalorder %v5135_v44, %v5074_v13 }
 0x299   :  { %v5069_v32 = vand.u32 4294901760, %v1605_v56  ;;  %v1886_v22 = vand.u32 4294901760, %v1885_v59  ;;  %v1364_v26 = vadd.f32 %v1363_v28, %v1235_v40  ;;  %v5889_v59 = vand.u32 4294901760, %v4959_v30 }
 0x29a   :  { %v1488_v5 = vpop.f32.mrf.mxu2  ;;  %3163 = vmatpush.msrb.mxu2 %v5884_v12  ;;  %3272 = vmatpush.msrb.mxu3 %v4703_v63  ;;  %v5893_v12 = vand.u32 4294901760, %v5025_v62 }
 0x29b   :  { %v1489_v1 = vadd.f32 %v1488_v5, %v1358_v38  ;;  %1887 = vmatmul.f32.gmra.mxu0 %v1886_v22  ;;  %2064 = vmatmul.f32.gmra.mxu1 %v5069_v32  ;;  %v1891_v52 = vsub.f32 %v1605_v56, %v5069_v32 }
 0x29c   :  { %3167 = vmatpush.msrb.mxu2 %v5885_v6  ;;  %3274 = vmatpush.msrb.mxu3 %v4734_v34  ;;  %v3679_v34 = vmov 0.0  }
 0x29d   :  { %v1586_v55 = vadd.f32 %v1585_v39, %v1489_v1  ;;  %2191 = vmatmul.f32.gmra.mxu2 %v1891_v52  ;;  %v1892_v10 = vand.u32 4294901760, %v1891_v52  ;;  %v3422_v53 = vsel %vm1674_vm1, 1.0, %v3679_v34  ;;  %v1589_v56 = vpop.f32.mrf.mxu3  ;;  %v5110_v39 = vpop.permute.xlu0 %1630 }
 0x29e   :  { %3171 = vmatpush.msrb.mxu2 %v5886_v14  ;;  %3276 = vmatpush.msrb.mxu3 %v4768_v7  ;;  %v5105_v51 = vsub.f32 %v3422_v53, %v3422_v53  ;;  %vm1675_vm2 = vcmp.eq.s32.totalorder %v5110_v39, %v5074_v13 }
 0x29f   :  { %v1606_v9 = vmax.f32 %v1586_v55, 0.0  ;;  %2318 = vmatmul.f32.gmra.mxu3 %v1892_v10  ;;  %v1893_v63 = vsub.f32 %v1891_v52, %v1892_v10  ;;  %v3680_v55 = vmov 1.0  }
 0x2a0   :  { %3175 = vmatpush.msrb.mxu2 %v5887_v18  ;;  %3278 = vmatpush.msrb.mxu3 %v4794_v33  ;;  %v5811_v30 = vand.u32 4294901760, %v5105_v51 }
 0x2a1   :  { %v5091_v17 = vand.u32 4294901760, %v1606_v9  ;;  %v1894_v58 = vand.u32 4294901760, %v1893_v63 }
 0x2a2   :  { %v1492_v46 = vpop.f32.mrf.mxu2  ;;  %3179 = vmatpush.msrb.mxu2 %v5888_v20  ;;  %3280 = vmatpush.msrb.mxu3 %v4823_v48  ;;  %v5891_v48 = vand.u32 4294901760, %v4997_v15  ;;  %v3423_v15 = vsel %vm1675_vm2, 1.0, %v3679_v34 }
 0x2a3   :  { %v1493_v7 = vadd.f32 %v1492_v46, %v1364_v26  ;;  %1895 = vmatmul.f32.gmra.mxu0 %v1894_v58  ;;  %2068 = vmatmul.f32.gmra.mxu1 %v5091_v17  ;;  %v1899_v60 = vsub.f32 %v1606_v9, %v5091_v17  ;;  %v5140_v52 = vsub.f32 %v3423_v15, %v3423_v15 }
 0x2a4   :  { %3183 = vmatpush.msrb.mxu2 %v5889_v59  ;;  %3282 = vmatpush.msrb.mxu3 %v4848_v0 }
 0x2a5   :  { %v1590_v61 = vadd.f32 %v1589_v56, %v1493_v7  ;;  %2196 = vmatmul.f32.gmra.mxu2 %v1899_v60  ;;  %v1900_v33 = vand.u32 4294901760, %v1899_v60  ;;  %v5808_v29 = vand.u32 4294901760, %v5140_v52 }
 0x2a6   :  { %3187 = vmatpush.msrb.mxu2 %v5890_v45  ;;  %3284 = vmatpush.msrb.mxu3 %v4874_v37 }
 0x2a7   :  { %v1607_v38 = vmax.f32 %v1590_v61, 0.0  ;;  %2324 = vmatmul.f32.gmra.mxu3 %v1900_v33  ;;  %v1901_v22 = vsub.f32 %v1899_v60, %v1900_v33 }
 0x2a8   :  { %3191 = vmatpush.msrb.mxu2 %v5891_v48  ;;  %3286 = vmatpush.msrb.mxu3 %v4895_v25  ;;  %v2595_v25 = vsub.f32 %v5105_v51, %v5811_v30 }
 0x2a9   :  { %v5118_v5 = vand.u32 4294901760, %v1607_v38  ;;  %v1902_v0 = vand.u32 4294901760, %v1901_v22 }
 0x2aa   :  { %3195 = vmatpush.msrb.mxu2 %v5892_v24  ;;  %3288 = vmatpush.msrb.mxu3 %v4922_v43  ;;  %v2596_v19 = vand.u32 4294901760, %v2595_v25 }
 0x2ab   :  { %1903 = vmatmul.f32.gmra.mxu0 %v1902_v0  ;;  %2072 = vmatmul.f32.gmra.mxu1 %v5118_v5  ;;  %v1907_v37 = vsub.f32 %v1607_v38, %v5118_v5 }
 0x2ac   :  { %3199 = vmatpush.msrb.mxu2 %v5893_v12  ;;  %3290 = vmatpush.msrb.mxu3 %v4942_v47  ;;  %v3424_v47 = vsel %vm1676_vm3, 1.0, %v3679_v34 }
 0x2ad   :  { %2201 = vmatmul.f32.gmra.mxu2 %v1907_v37  ;;  %v1908_v1 = vand.u32 4294901760, %v1907_v37 }
 0x2ae   :  { %3203 = vmatpush.msrb.mxu2 %v2813_v54  ;;  %3292 = vmatpush.msrb.mxu3 %v4961_v2  ;;  %v5153_v54 = vsub.f32 %v3424_v47, %v3424_v47  ;;  %v5156_v2 = vpop.permute.xlu1 %1636 }
 0x2af   :  { %2330 = vmatmul.f32.gmra.mxu3 %v1908_v1  ;;  %v1909_v43 = vsub.f32 %v1907_v37, %v1908_v1  ;;  %vm1677_vm4 = vcmp.eq.s32.totalorder %v5156_v2, %v5074_v13 }
 0x2b0   :  { %v2013_v62 = vpop.f32.mrf.mxu1  ;;  %3294 = vmatpush.msrb.mxu3 %v4980_v57  ;;  %v2603_v57 = vsub.f32 %v5140_v52, %v5808_v29  ;;  %v5807_v14 = vand.u32 4294901760, %v5153_v54  ;;  %v3425_v18 = vsel %vm1677_vm4, 1.0, %v3679_v34 }
 0x2b1   :  { %v1910_v6 = vand.u32 4294901760, %v1909_v43  ;;  %v5182_v53 = vsub.f32 %v3425_v18, %v3425_v18 }
 0x2b2   :  { %3296 = vmatpush.msrb.mxu3 %v4999_v36  ;;  %v2604_v28 = vand.u32 4294901760, %v2603_v57  ;;  %v2611_v58 = vsub.f32 %v5153_v54, %v5807_v14 }
 0x2b3   :  { %1911 = vmatmul.f32.gmra.mxu0 %v1910_v6  ;;  %2496 = vmatmul.f32.vlgmr.msra.gmra.mxu1 %v4761_v41  ;;  %v5805_v33 = vand.u32 4294901760, %v5182_v53  ;;  %v5224_v6 = vpop.permute.xlu0 %1645 }
 0x2b4   :  { %3298 = vmatpush.msrb.mxu3 %v5018_v35  ;;  %v2612_v60 = vand.u32 4294901760, %v2611_v58  ;;  %vm1680_vm7 = vcmp.eq.s32.totalorder %v5224_v6, %v5074_v13 }
 0x2b5   :  { %2597 = vmatmul.f32.vlgmr.msra.gmra.mxu2 %v2596_v19 }
 0x2b6   :  { %3300 = vmatpush.msrb.mxu3 %v5027_v3  ;;  %v5175_v3 = vpop.permute.xlu2 %1639 }
 0x2b7   :  { %3438 = vmatmul.msk.f32.vlgmr.msra.gmra.mxu3 %vm1674_vm1, %v3680_v55  ;;  %vm1678_vm5 = vcmp.eq.s32.totalorder %v5175_v3, %v5074_v13 }
 0x2b8   :  { %v1792_v10 = vpop.f32.mrf.mxu0  ;;  %v2017_v40 = vpop.f32.mrf.mxu1  ;;  %v3426_v56 = vsel %vm1678_vm5, 1.0, %v3679_v34 }
 0x2b9   :  { %v2014_v36 = vadd.f32 %v2013_v62, %v1792_v10  ;;  %v2127_v35 = vpop.f32.mrf.mxu2  ;;  %v5197_v45 = vsub.f32 %v3426_v56, %v3426_v56 }
 0x2ba   :  { %v2241_v9 = vpop.f32.mrf.mxu3 }
 0x2bb   :  { %v2128_v63 = vadd.f32 %v2127_v35, %v2014_v36  ;;  %2399 = vmatmul.f32.vlgmr.msra.gmra.mxu0 %v4761_v41  ;;  %2500 = vmatmul.f32.gmra.mxu1 %v4788_v49  ;;  %v5804_v15 = vand.u32 4294901760, %v5197_v45 }
 0x2bd   :  { %v5177_v26 = vadd.f32 %v2241_v9, %v2128_v63  ;;  %2605 = vmatmul.f32.gmra.mxu2 %v2604_v28  ;;  %v2627_v19 = vsub.f32 %v5197_v45, %v5804_v15  ;;  %v3428_v28 = vsel %vm1680_vm7, 1.0, %v3679_v34 }
 0x2be   :  { %v5201_v22 = vpop.permute.xlu2 %1642  ;;  %v5243_v58 = vsub.f32 %v3428_v28, %v3428_v28 }
 0x2bf   :  { %3439 = vmatmul.msk.f32.gmra.mxu3 %vm1675_vm2, %v3680_v55  ;;  %vm1679_vm6 = vcmp.eq.s32.totalorder %v5201_v22, %v5074_v13  ;;  %v2628_v36 = vand.u32 4294901760, %v2627_v19 }
 0x2c0   :  { %v1800_v41 = vpop.f32.mrf.mxu0  ;;  %v2021_v46 = vpop.f32.mrf.mxu1  ;;  %v3427_v43 = vsel %vm1679_vm6, 1.0, %v3679_v34 }
 0x2c1   :  { %v2018_v20 = vadd.f32 %v2017_v40, %v1800_v41  ;;  %v2132_v7 = vpop.f32.mrf.mxu2  ;;  %v5226_v47 = vsub.f32 %v3427_v43, %v3427_v43  ;;  %v5245_v41 = vpop.permute.xlu1 %1648 }
 0x2c2   :  { %v2247_v59 = vpop.f32.mrf.mxu3  ;;  %vm1681_vm8 = vcmp.eq.s32.totalorder %v5245_v41, %v5074_v13 }
 0x2c3   :  { %v2133_v61 = vadd.f32 %v2132_v7, %v2018_v20  ;;  %2403 = vmatmul.f32.gmra.mxu0 %v4788_v49  ;;  %2504 = vmatmul.f32.gmra.mxu1 %v4817_v8  ;;  %v2619_v49 = vsub.f32 %v5182_v53, %v5805_v33  ;;  %v5802_v63 = vand.u32 4294901760, %v5226_v47 }
 0x2c5   :  { %v5199_v38 = vadd.f32 %v2247_v59, %v2133_v61  ;;  %2613 = vmatmul.f32.gmra.mxu2 %v2612_v60  ;;  %v2620_v1 = vand.u32 4294901760, %v2619_v49  ;;  %v5801_v49 = vand.u32 4294901760, %v5243_v58 }
 0x2c7   :  { %3440 = vmatmul.msk.f32.gmra.mxu3 %vm1676_vm3, %v3680_v55 }
 0x2c8   :  { %v1808_v48 = vpop.f32.mrf.mxu0  ;;  %v2025_v0 = vpop.f32.mrf.mxu1 }
 0x2c9   :  { %v2022_v24 = vadd.f32 %v2021_v46, %v1808_v48  ;;  %v2137_v37 = vpop.f32.mrf.mxu2  ;;  %v3429_v48 = vsel %vm1681_vm8, 1.0, %v3679_v34 }
 0x2ca   :  { %v2253_v12 = vpop.f32.mrf.mxu3 }
 0x2cb   :  { %v2138_v25 = vadd.f32 %v2137_v37, %v2022_v24  ;;  %2407 = vmatmul.f32.gmra.mxu0 %v4817_v8  ;;  %2508 = vmatmul.f32.gmra.mxu1 %v4843_v16  ;;  %v5265_v24 = vsub.f32 %v3429_v48, %v3429_v48  ;;  %v5267_v37 = vpop.permute.xlu2 %1651 }
 0x2cc   :  { %vm1682_vm9 = vcmp.eq.s32.totalorder %v5267_v37, %v5074_v13 }
 0x2cd   :  { %v5219_v62 = vadd.f32 %v2253_v12, %v2138_v25  ;;  %2621 = vmatmul.f32.gmra.mxu2 %v2620_v1 }
 0x2cf   :  { %3441 = vmatmul.msk.f32.gmra.mxu3 %vm1677_vm4, %v3680_v55 }
 0x2d0   :  { %v1816_v8 = vpop.f32.mrf.mxu0  ;;  %v2029_v57 = vpop.f32.mrf.mxu1 }
 0x2d1   :  { %v2026_v10 = vadd.f32 %v2025_v0, %v1816_v8  ;;  %v2142_v40 = vpop.f32.mrf.mxu2 }
 0x2d2   :  { %v2259_v35 = vpop.f32.mrf.mxu3 }
 0x2d3   :  { %v2143_v9 = vadd.f32 %v2142_v40, %v2026_v10  ;;  %2411 = vmatmul.f32.gmra.mxu0 %v4843_v16  ;;  %2512 = vmatmul.f32.gmra.mxu1 %v4869_v21  ;;  %v2635_v16 = vsub.f32 %v5226_v47, %v5802_v63  ;;  %v5799_v10 = vand.u32 4294901760, %v5265_v24  ;;  %v3430_v40 = vsel %vm1682_vm9, 1.0, %v3679_v34 }
 0x2d5   :  { %v5241_v18 = vadd.f32 %v2259_v35, %v2143_v9  ;;  %2629 = vmatmul.f32.gmra.mxu2 %v2628_v36  ;;  %v2636_v61 = vand.u32 4294901760, %v2635_v16  ;;  %v5287_v35 = vpop.permute.xlu0 %1654  ;;  %v5289_v9 = vsub.f32 %v3430_v40, %v3430_v40 }
 0x2d6   :  { %vm1683_vm10 = vcmp.eq.s32.totalorder %v5287_v35, %v5074_v13 }
 0x2d7   :  { %3442 = vmatmul.msk.f32.gmra.mxu3 %vm1678_vm5, %v3680_v55 }
 0x2d8   :  { %v1824_v46 = vpop.f32.mrf.mxu0  ;;  %v2033_v20 = vpop.f32.mrf.mxu1 }
 0x2d9   :  { %v2030_v7 = vadd.f32 %v2029_v57, %v1824_v46  ;;  %v2147_v60 = vpop.f32.mrf.mxu2 }
 0x2da   :  { %v2265_v56 = vpop.f32.mrf.mxu3 }
 0x2db   :  { %v2148_v59 = vadd.f32 %v2147_v60, %v2030_v7  ;;  %2415 = vmatmul.f32.gmra.mxu0 %v4869_v21  ;;  %2516 = vmatmul.f32.gmra.mxu1 %v4889_v50  ;;  %v2643_v21 = vsub.f32 %v5243_v58, %v5801_v49 }
 0x2dd   :  { %v5263_v0 = vadd.f32 %v2265_v56, %v2148_v59  ;;  %2637 = vmatmul.f32.gmra.mxu2 %v2636_v61  ;;  %v2644_v57 = vand.u32 4294901760, %v2643_v21  ;;  %v5798_v59 = vand.u32 4294901760, %v5289_v9  ;;  %v3431_v61 = vsel %vm1683_vm10, 1.0, %v3679_v34 }
 0x2de   :  { %v5309_v21 = vsub.f32 %v3431_v61, %v3431_v61 }
 0x2df   :  { %3443 = vmatmul.msk.f32.gmra.mxu3 %vm1679_vm6, %v3680_v55 }
 0x2e0   :  { %v1832_v12 = vpop.f32.mrf.mxu0  ;;  %v2037_v25 = vpop.f32.mrf.mxu1 }
 0x2e1   :  { %v2034_v1 = vadd.f32 %v2033_v20, %v1832_v12  ;;  %v2152_v43 = vpop.f32.mrf.mxu2  ;;  %v5311_v12 = vpop.permute.xlu1 %1657 }
 0x2e2   :  { %v2271_v19 = vpop.f32.mrf.mxu3  ;;  %vm1684_vm11 = vcmp.eq.s32.totalorder %v5311_v12, %v5074_v13 }
 0x2e3   :  { %v2153_v8 = vadd.f32 %v2152_v43, %v2034_v1  ;;  %2419 = vmatmul.f32.gmra.mxu0 %v4889_v50  ;;  %2520 = vmatmul.f32.gmra.mxu1 %v4917_v27  ;;  %v2651_v50 = vsub.f32 %v5265_v24, %v5799_v10 }
 0x2e5   :  { %v5285_v36 = vadd.f32 %v2271_v19, %v2153_v8  ;;  %2645 = vmatmul.f32.gmra.mxu2 %v2644_v57  ;;  %v2652_v56 = vand.u32 4294901760, %v2651_v50  ;;  %v5796_v50 = vand.u32 4294901760, %v5309_v21 }
 0x2e7   :  { %3444 = vmatmul.msk.f32.gmra.mxu3 %vm1680_vm7, %v3680_v55 }
 0x2e8   :  { %v1840_v28 = vpop.f32.mrf.mxu0  ;;  %v2041_v16 = vpop.f32.mrf.mxu1 }
 0x2e9   :  { %v2038_v46 = vadd.f32 %v2037_v25, %v1840_v28  ;;  %v2157_v20 = vpop.f32.mrf.mxu2  ;;  %v3432_v28 = vsel %vm1684_vm11, 1.0, %v3679_v34  ;;  %v5375_v10 = vpop.permute.xlu1 %1666 }
 0x2ea   :  { %v2277_v7 = vpop.f32.mrf.mxu3  ;;  %vm1687_vm14 = vcmp.eq.s32.totalorder %v5375_v10, %v5074_v13 }
 0x2eb   :  { %v2158_v60 = vadd.f32 %v2157_v20, %v2038_v46  ;;  %2423 = vmatmul.f32.gmra.mxu0 %v4917_v27  ;;  %2524 = vmatmul.f32.gmra.mxu1 %v4937_v31  ;;  %v2659_v27 = vsub.f32 %v5289_v9, %v5798_v59  ;;  %v5331_v20 = vsub.f32 %v3432_v28, %v3432_v28  ;;  %v5353_v28 = vpop.permute.xlu0 %1663 }
 0x2ec   :  { %vm1686_vm13 = vcmp.eq.s32.totalorder %v5353_v28, %v5074_v13 }
 0x2ed   :  { %v5307_v48 = vadd.f32 %v2277_v7, %v2158_v60  ;;  %2653 = vmatmul.f32.gmra.mxu2 %v2652_v56  ;;  %v2660_v40 = vand.u32 4294901760, %v2659_v27 }
 0x2ef   :  { %3445 = vmatmul.msk.f32.gmra.mxu3 %vm1681_vm8, %v3680_v55 }
 0x2f0   :  { %v1848_v25 = vpop.f32.mrf.mxu0  ;;  %v2045_v1 = vpop.f32.mrf.mxu1 }
 0x2f1   :  { %v2042_v43 = vadd.f32 %v2041_v16, %v1848_v25  ;;  %v2162_v19 = vpop.f32.mrf.mxu2  ;;  %v5333_v16 = vpop.permute.xlu2 %1660 }
 0x2f2   :  { %v2283_v8 = vpop.f32.mrf.mxu3  ;;  %vm1685_vm12 = vcmp.eq.s32.totalorder %v5333_v16, %v5074_v13 }
 0x2f3   :  { %v2163_v57 = vadd.f32 %v2162_v19, %v2042_v43  ;;  %2427 = vmatmul.f32.gmra.mxu0 %v4937_v31  ;;  %2528 = vmatmul.f32.gmra.mxu1 %v4956_v4  ;;  %v2667_v31 = vsub.f32 %v5309_v21, %v5796_v50  ;;  %v5894_v43 = vld [vmem:[#allocation18_spill] sm:$0xff]  ;;  %v5419_v33 = vpop.permute.xlu0 %1672 }
 0x2f4   :  { %vm1689_vm0 = vcmp.eq.s32.totalorder %v5419_v33, %v5074_v13  ;;  %v5701_v33 = vld [vmem:[%s5746_s6] ss:$0 sm:$0xff]  ;;  %s3681_s6 = smov [#allocation7]  }
 0x2f5   :  { %v5329_v46 = vadd.f32 %v2283_v8, %v2163_v57  ;;  %2661 = vmatmul.f32.gmra.mxu2 %v2660_v40  ;;  %v2668_v19 = vand.u32 4294901760, %v2667_v31  ;;  %v5797_v8 = vand.u32 4294901760, %v5331_v20  ;;  %v3433_v57 = vsel %vm1685_vm12, 1.0, %v3679_v34  ;;  %s3406_s17 = sshll.u32 %s3681_s6, 4  ;;  %s3407_s17 = int_to_ptr.vmem [resolvable:$true] %s3406_s17 }
 0x2f7   :  { %3446 = vmatmul.msk.f32.gmra.mxu3 %vm1682_vm9, %v3680_v55 }
 0x2f8   :  { %v1856_v7 = vpop.f32.mrf.mxu0  ;;  %v2049_v60 = vpop.f32.mrf.mxu1 }
 0x2f9   :  { %v2046_v56 = vadd.f32 %v2045_v1, %v1856_v7  ;;  %v2167_v61 = vpop.f32.mrf.mxu2  ;;  %v5355_v1 = vsub.f32 %v3433_v57, %v3433_v57  ;;  %v5397_v63 = vpop.permute.xlu2 %1669 }
 0x2fa   :  { %v2289_v27 = vpop.f32.mrf.mxu3  ;;  %vm1688_vm15 = vcmp.eq.s32.totalorder %v5397_v63, %v5074_v13 }
 0x2fb   :  { %v2168_v25 = vadd.f32 %v2167_v61, %v2046_v56  ;;  %2431 = vmatmul.f32.gmra.mxu0 %v4956_v4  ;;  %2532 = vmatmul.f32.gmra.mxu1 %v5894_v43  ;;  %v2675_v4 = vsub.f32 %v5331_v20, %v5797_v8  ;;  %v5800_v50 = vand.u32 4294901760, %v5355_v1  ;;  %v3434_v8 = vsel %vm1686_vm13, 1.0, %v3679_v34 }
 0x2fd   :  { %v5351_v40 = vadd.f32 %v2289_v27, %v2168_v25  ;;  %2669 = vmatmul.f32.gmra.mxu2 %v2668_v19  ;;  %v5895_v19 = vld [vmem:[#allocation19_spill] sm:$0xff]  ;;  %v2676_v57 = vand.u32 4294901760, %v2675_v4 }
 0x2ff   :  { %3447 = vmatmul.msk.f32.gmra.mxu3 %vm1683_vm10, %v3680_v55 }
 0x300   :  { %v1864_v31 = vpop.f32.mrf.mxu0  ;;  %v2053_v7 = vpop.f32.mrf.mxu1 }
 0x301   :  { %v2050_v56 = vadd.f32 %v2049_v60, %v1864_v31  ;;  %v2172_v61 = vpop.f32.mrf.mxu2  ;;  %v5377_v60 = vsub.f32 %v3434_v8, %v3434_v8 }
 0x302   :  { %v2295_v27 = vpop.f32.mrf.mxu3 }
 0x303   :  { %v2173_v25 = vadd.f32 %v2172_v61, %v2050_v56  ;;  %2435 = vmatmul.f32.gmra.mxu0 %v5894_v43  ;;  %2536 = vmatmul.f32.gmra.mxu1 %v5895_v19  ;;  %v2683_v43 = vsub.f32 %v5355_v1, %v5800_v50  ;;  %v3435_v50 = vsel %vm1687_vm14, 1.0, %v3679_v34 }
 0x305   :  { %v5373_v59 = vadd.f32 %v2295_v27, %v2173_v25  ;;  %2677 = vmatmul.f32.gmra.mxu2 %v2676_v57  ;;  %v2684_v8 = vand.u32 4294901760, %v2683_v43  ;;  %v5803_v57 = vand.u32 4294901760, %v5377_v60 }
 0x307   :  { %3448 = vmatmul.msk.f32.gmra.mxu3 %vm1684_vm11, %v3680_v55 }
 0x308   :  { %v1872_v4 = vpop.f32.mrf.mxu0  ;;  %v2057_v31 = vpop.f32.mrf.mxu1 }
 0x309   :  { %v2054_v56 = vadd.f32 %v2053_v7, %v1872_v4  ;;  %v2177_v61 = vpop.f32.mrf.mxu2  ;;  %v5399_v7 = vsub.f32 %v3435_v50, %v3435_v50 }
 0x30a   :  { %v2301_v27 = vpop.f32.mrf.mxu3 }
 0x30b   :  { %v2178_v25 = vadd.f32 %v2177_v61, %v2054_v56  ;;  %2439 = vmatmul.f32.gmra.mxu0 %v5895_v19  ;;  %2540 = vmatmul.f32.gmra.mxu1 %v5013_v42  ;;  %v2691_v19 = vsub.f32 %v5377_v60, %v5803_v57  ;;  %v3436_v57 = vsel %vm1688_vm15, 1.0, %v3679_v34 }
 0x30d   :  { %v5395_v49 = vadd.f32 %v2301_v27, %v2178_v25  ;;  %2685 = vmatmul.f32.gmra.mxu2 %v2684_v8  ;;  %v2692_v50 = vand.u32 4294901760, %v2691_v19  ;;  %v5806_v8 = vand.u32 4294901760, %v5399_v7 }
 0x30f   :  { %3449 = vmatmul.msk.f32.gmra.mxu3 %vm1685_vm12, %v3680_v55 }
 0x310   :  { %v1880_v43 = vpop.f32.mrf.mxu0  ;;  %v2061_v4 = vpop.f32.mrf.mxu1 }
 0x311   :  { %v2058_v56 = vadd.f32 %v2057_v31, %v1880_v43  ;;  %v2182_v61 = vpop.f32.mrf.mxu2  ;;  %v5421_v31 = vsub.f32 %v3436_v57, %v3436_v57 }
 0x312   :  { %v2307_v27 = vpop.f32.mrf.mxu3 }
 0x313   :  { %v2183_v25 = vadd.f32 %v2182_v61, %v2058_v56  ;;  %2443 = vmatmul.f32.gmra.mxu0 %v5013_v42  ;;  %2544 = vmatmul.f32.gmra.mxu1 %v5050_v11  ;;  %v2699_v42 = vsub.f32 %v5399_v7, %v5806_v8  ;;  %v3437_v8 = vsel %vm1689_vm0, 1.0, %v3679_v34 }
 0x314   :  { %v5441_v29 = vsub.f32 %v3437_v8, %v3437_v8 }
 0x315   :  { %v5417_v15 = vadd.f32 %v2307_v27, %v2183_v25  ;;  %2693 = vmatmul.f32.gmra.mxu2 %v2692_v50  ;;  %v2700_v57 = vand.u32 4294901760, %v2699_v42  ;;  %v5810_v50 = vand.u32 4294901760, %v5421_v31 }
 0x317   :  { %3450 = vmatmul.msk.f32.gmra.mxu3 %vm1686_vm13, %v3680_v55 }
 0x318   :  { %v1888_v19 = vpop.f32.mrf.mxu0  ;;  %v2065_v43 = vpop.f32.mrf.mxu1 }
 0x319   :  { %v2062_v56 = vadd.f32 %v2061_v4, %v1888_v19  ;;  %v2187_v61 = vpop.f32.mrf.mxu2 }
 0x31a   :  { %v2313_v27 = vpop.f32.mrf.mxu3 }
 0x31b   :  { %v2188_v25 = vadd.f32 %v2187_v61, %v2062_v56  ;;  %2447 = vmatmul.f32.gmra.mxu0 %v5050_v11  ;;  %2548 = vmatmul.f32.gmra.mxu1 %v5069_v32  ;;  %v2707_v11 = vsub.f32 %v5421_v31, %v5810_v50 }
 0x31d   :  { %v5439_v14 = vadd.f32 %v2313_v27, %v2188_v25  ;;  %2701 = vmatmul.f32.gmra.mxu2 %v2700_v57  ;;  %v2708_v8 = vand.u32 4294901760, %v2707_v11  ;;  %v5809_v27 = vand.u32 4294901760, %v5441_v29 }
 0x31f   :  { %3451 = vmatmul.msk.f32.gmra.mxu3 %vm1687_vm14, %v3680_v55 }
 0x320   :  { %v1896_v4 = vpop.f32.mrf.mxu0  ;;  %v2069_v42 = vpop.f32.mrf.mxu1 }
 0x321   :  { %v2066_v19 = vadd.f32 %v2065_v43, %v1896_v4  ;;  %v2192_v56 = vpop.f32.mrf.mxu2  ;;  %v2715_v43 = vsub.f32 %v5441_v29, %v5809_v27 }
 0x322   :  { %v2319_v61 = vpop.f32.mrf.mxu3 }
 0x323   :  { %v2193_v34 = vadd.f32 %v2192_v56, %v2066_v19  ;;  %2451 = vmatmul.f32.gmra.mxu0 %v5069_v32  ;;  %2552 = vmatmul.f32.gmra.mxu1 %v5091_v17 }
 0x325   :  { %v5453_v25 = vadd.f32 %v2319_v61, %v2193_v34  ;;  %2709 = vmatmul.f32.gmra.mxu2 %v2708_v8  ;;  %v2716_v61 = vand.u32 4294901760, %v2715_v43 }
 0x327   :  { %3452 = vmatmul.msk.f32.gmra.mxu3 %vm1688_vm15, %v3680_v55 }
 0x328   :  { %v1904_v57 = vpop.f32.mrf.mxu0  ;;  %v2073_v4 = vpop.f32.mrf.mxu1 }
 0x329   :  { %v2070_v32 = vadd.f32 %v2069_v42, %v1904_v57  ;;  %v2197_v19 = vpop.f32.mrf.mxu2 }
 0x32a   :  { %v2325_v56 = vpop.f32.mrf.mxu3 }
 0x32b   :  { %v2198_v11 = vadd.f32 %v2197_v19, %v2070_v32  ;;  %2455 = vmatmul.f32.gmra.mxu0 %v5091_v17  ;;  %2556 = vmatmul.f32.gmra.mxu1 %v5118_v5  ;;  %v5896_v17 = vand.u32 4294901760, %v5105_v51 }
 0x32d   :  { %v5464_v34 = vadd.f32 %v2325_v56, %v2198_v11  ;;  %2717 = vmatmul.f32.gmra.mxu2 %v2716_v61 }
 0x32f   :  { %3453 = vmatmul.msk.f32.gmra.mxu3 %vm1689_vm0, %v3680_v55 }
 0x330   :  { %v1912_v8 = vpop.f32.mrf.mxu0  ;;  %v2497_v27 = vpop.f32.mrf.mxu1 }
 0x331   :  { %v2074_v50 = vadd.f32 %v2073_v4, %v1912_v8  ;;  %v2202_v42 = vpop.f32.mrf.mxu2 }
 0x332   :  { %v2331_v57 = vpop.f32.mrf.mxu3 }
 0x333   :  { %v2203_v30 = vadd.f32 %v2202_v42, %v2074_v50  ;;  %2459 = vmatmul.f32.gmra.mxu0 %v5118_v5  ;;  %3046 = vmatmul.f32.vlgmr.msrb.gmra.mxu1 %v5896_v17 }
 0x335   :  { %v5473_v43 = vadd.f32 %v2331_v57, %v2203_v30  ;;  %3454 = vmatmul.msk.f32.vlgmr.msrb.gmra.mxu2 %vm1674_vm1, %v3680_v55  ;;  %v5897_v30 = vand.u32 4294901760, %v5140_v52  ;;  %v5898_v57 = vand.u32 4294901760, %v5153_v54 }
 0x337   :  { %3470 = vmatmul.msk.f32.vlgmr.msrb.gmra.mxu3 %vm1674_vm1, %v3680_v55 }
 0x338   :  { %v2400_v4 = vpop.f32.mrf.mxu0  ;;  %v2501_v32 = vpop.f32.mrf.mxu1 }
 0x339   :  { %v2401_v50 = vadd.f32 %v2400_v4, %v5177_v26  ;;  %v2598_v5 = vpop.f32.mrf.mxu2 }
 0x33a   :  { %v2819_v19 = vpop.f32.mrf.mxu3 }
 0x33b   :  { %v2498_v56 = vadd.f32 %v2497_v27, %v2401_v50  ;;  %2932 = vmatmul.f32.vlgmr.msrb.gmra.mxu0 %v5105_v51  ;;  %3052 = vmatmul.f32.gmra.mxu1 %v5897_v30 }
 0x33d   :  { %v2599_v11 = vadd.f32 %v2598_v5, %v2498_v56  ;;  %3455 = vmatmul.msk.f32.gmra.mxu2 %vm1675_vm2, %v3680_v55 }
 0x33f   :  { %v5491_v23 = vadd.f32 %v2819_v19, %v2599_v11  ;;  %3471 = vmatmul.msk.f32.gmra.mxu3 %vm1675_vm2, %v3680_v55  ;;  %v5899_v19 = vand.u32 4294901760, %v5182_v53 }
 0x340   :  { %v2404_v26 = vpop.f32.mrf.mxu0  ;;  %v2505_v27 = vpop.f32.mrf.mxu1 }
 0x341   :  { %v2405_v51 = vadd.f32 %v2404_v26, %v5199_v38  ;;  %v2606_v61 = vpop.f32.mrf.mxu2 }
 0x342   :  { %v2823_v8 = vpop.f32.mrf.mxu3 }
 0x343   :  { %v2502_v42 = vadd.f32 %v2501_v32, %v2405_v51  ;;  %2937 = vmatmul.f32.gmra.mxu0 %v5140_v52  ;;  %3058 = vmatmul.f32.gmra.mxu1 %v5898_v57  ;;  %v5900_v51 = vand.u32 4294901760, %v5197_v45 }
 0x345   :  { %v2607_v17 = vadd.f32 %v2606_v61, %v2502_v42  ;;  %3456 = vmatmul.msk.f32.gmra.mxu2 %vm1676_vm3, %v3680_v55 }
 0x347   :  { %v5505_v39 = vadd.f32 %v2823_v8, %v2607_v17  ;;  %3472 = vmatmul.msk.f32.gmra.mxu3 %vm1676_vm3, %v3680_v55 }
 0x348   :  { %v2408_v38 = vpop.f32.mrf.mxu0  ;;  %v2509_v4 = vpop.f32.mrf.mxu1 }
 0x349   :  { %v2409_v52 = vadd.f32 %v2408_v38, %v5219_v62  ;;  %v2614_v32 = vpop.f32.mrf.mxu2  ;;  %v5901_v38 = vand.u32 4294901760, %v5226_v47 }
 0x34a   :  { %v2827_v50 = vpop.f32.mrf.mxu3 }
 0x34b   :  { %v2506_v5 = vadd.f32 %v2505_v27, %v2409_v52  ;;  %2942 = vmatmul.f32.gmra.mxu0 %v5153_v54  ;;  %3064 = vmatmul.f32.gmra.mxu1 %v5899_v19  ;;  %v5902_v19 = vand.u32 4294901760, %v5243_v58 }
 0x34d   :  { %v2615_v56 = vadd.f32 %v2614_v32, %v2506_v5  ;;  %3457 = vmatmul.msk.f32.gmra.mxu2 %vm1677_vm4, %v3680_v55 }
 0x34f   :  { %v5519_v44 = vadd.f32 %v2827_v50, %v2615_v56  ;;  %3473 = vmatmul.msk.f32.gmra.mxu3 %vm1677_vm4, %v3680_v55 }
 0x350   :  { %v2412_v62 = vpop.f32.mrf.mxu0  ;;  %v2513_v30 = vpop.f32.mrf.mxu1 }
 0x351   :  { %v2413_v54 = vadd.f32 %v2412_v62, %v5241_v18  ;;  %v2622_v11 = vpop.f32.mrf.mxu2 }
 0x352   :  { %v2831_v26 = vpop.f32.mrf.mxu3 }
 0x353   :  { %v2510_v27 = vadd.f32 %v2509_v4, %v2413_v54  ;;  %2947 = vmatmul.f32.gmra.mxu0 %v5182_v53  ;;  %3070 = vmatmul.f32.gmra.mxu1 %v5900_v51 }
 0x355   :  { %v2623_v61 = vadd.f32 %v2622_v11, %v2510_v27  ;;  %3458 = vmatmul.msk.f32.gmra.mxu2 %vm1678_vm5, %v3680_v55 }
 0x357   :  { %v5533_v2 = vadd.f32 %v2831_v26, %v2623_v61  ;;  %3474 = vmatmul.msk.f32.gmra.mxu3 %vm1678_vm5, %v3680_v55  ;;  %v5903_v26 = vand.u32 4294901760, %v5265_v24 }
 0x358   :  { %v2416_v18 = vpop.f32.mrf.mxu0  ;;  %v2517_v8 = vpop.f32.mrf.mxu1 }
 0x359   :  { %v2417_v53 = vadd.f32 %v2416_v18, %v5263_v0  ;;  %v2630_v42 = vpop.f32.mrf.mxu2 }
 0x35a   :  { %v2835_v57 = vpop.f32.mrf.mxu3 }
 0x35b   :  { %v2514_v17 = vadd.f32 %v2513_v30, %v2417_v53  ;;  %2952 = vmatmul.f32.gmra.mxu0 %v5197_v45  ;;  %3076 = vmatmul.f32.gmra.mxu1 %v5901_v38  ;;  %v5904_v53 = vand.u32 4294901760, %v5289_v9 }
 0x35d   :  { %v2631_v4 = vadd.f32 %v2630_v42, %v2514_v17  ;;  %3459 = vmatmul.msk.f32.gmra.mxu2 %vm1679_vm6, %v3680_v55 }
 0x35f   :  { %v5547_v3 = vadd.f32 %v2835_v57, %v2631_v4  ;;  %3475 = vmatmul.msk.f32.gmra.mxu3 %vm1679_vm6, %v3680_v55 }
 0x360   :  { %v2420_v0 = vpop.f32.mrf.mxu0  ;;  %v2521_v52 = vpop.f32.mrf.mxu1 }
 0x361   :  { %v2421_v45 = vadd.f32 %v2420_v0, %v5285_v36  ;;  %v2638_v32 = vpop.f32.mrf.mxu2  ;;  %v5905_v0 = vand.u32 4294901760, %v5309_v21 }
 0x362   :  { %v2839_v50 = vpop.f32.mrf.mxu3 }
 0x363   :  { %v2518_v5 = vadd.f32 %v2517_v8, %v2421_v45  ;;  %2957 = vmatmul.f32.gmra.mxu0 %v5226_v47  ;;  %3082 = vmatmul.f32.gmra.mxu1 %v5902_v19  ;;  %v5906_v19 = vand.u32 4294901760, %v5331_v20 }
 0x365   :  { %v2639_v56 = vadd.f32 %v2638_v32, %v2518_v5  ;;  %3460 = vmatmul.msk.f32.gmra.mxu2 %vm1680_vm7, %v3680_v55 }
 0x367   :  { %v5561_v22 = vadd.f32 %v2839_v50, %v2639_v56  ;;  %3476 = vmatmul.msk.f32.gmra.mxu3 %vm1680_vm7, %v3680_v55 }
 0x368   :  { %v2424_v36 = vpop.f32.mrf.mxu0  ;;  %v2525_v62 = vpop.f32.mrf.mxu1 }
 0x369   :  { %v2425_v47 = vadd.f32 %v2424_v36, %v5307_v48  ;;  %v2646_v30 = vpop.f32.mrf.mxu2 }
 0x36a   :  { %v2843_v54 = vpop.f32.mrf.mxu3 }
 0x36b   :  { %v2522_v11 = vadd.f32 %v2521_v52, %v2425_v47  ;;  %2962 = vmatmul.f32.gmra.mxu0 %v5243_v58  ;;  %3088 = vmatmul.f32.gmra.mxu1 %v5903_v26 }
 0x36d   :  { %v2647_v27 = vadd.f32 %v2646_v30, %v2522_v11  ;;  %3461 = vmatmul.msk.f32.gmra.mxu2 %vm1681_vm8, %v3680_v55 }
 0x36f   :  { %v5575_v6 = vadd.f32 %v2843_v54, %v2647_v27  ;;  %3477 = vmatmul.msk.f32.gmra.mxu3 %vm1681_vm8, %v3680_v55  ;;  %v5907_v54 = vand.u32 4294901760, %v5355_v1 }
 0x370   :  { %v2428_v48 = vpop.f32.mrf.mxu0  ;;  %v2529_v51 = vpop.f32.mrf.mxu1 }
 0x371   :  { %v2429_v58 = vadd.f32 %v2428_v48, %v5329_v46  ;;  %v2654_v61 = vpop.f32.mrf.mxu2 }
 0x372   :  { %v2847_v18 = vpop.f32.mrf.mxu3 }
 0x373   :  { %v2526_v8 = vadd.f32 %v2525_v62, %v2429_v58  ;;  %2967 = vmatmul.f32.gmra.mxu0 %v5265_v24  ;;  %3094 = vmatmul.f32.gmra.mxu1 %v5904_v53  ;;  %v5908_v58 = vand.u32 4294901760, %v5377_v60 }
 0x375   :  { %v2655_v42 = vadd.f32 %v2654_v61, %v2526_v8  ;;  %3462 = vmatmul.msk.f32.gmra.mxu2 %vm1682_vm9, %v3680_v55 }
 0x377   :  { %v5589_v41 = vadd.f32 %v2847_v18, %v2655_v42  ;;  %3478 = vmatmul.msk.f32.gmra.mxu3 %vm1682_vm9, %v3680_v55 }
 0x378   :  { %v2432_v46 = vpop.f32.mrf.mxu0  ;;  %v2533_v57 = vpop.f32.mrf.mxu1 }
 0x379   :  { %v2433_v24 = vadd.f32 %v2432_v46, %v5351_v40  ;;  %v2662_v17 = vpop.f32.mrf.mxu2  ;;  %v5909_v46 = vand.u32 4294901760, %v5399_v7 }
 0x37a   :  { %v2851_v38 = vpop.f32.mrf.mxu3 }
 0x37b   :  { %v2530_v4 = vadd.f32 %v2529_v51, %v2433_v24  ;;  %2972 = vmatmul.f32.gmra.mxu0 %v5289_v9  ;;  %3100 = vmatmul.f32.gmra.mxu1 %v5905_v0  ;;  %v5910_v0 = vand.u32 4294901760, %v5421_v31 }
 0x37d   :  { %v2663_v52 = vadd.f32 %v2662_v17, %v2530_v4  ;;  %3463 = vmatmul.msk.f32.gmra.mxu2 %vm1683_vm10, %v3680_v55 }
 0x37f   :  { %v5603_v37 = vadd.f32 %v2851_v38, %v2663_v52  ;;  %3479 = vmatmul.msk.f32.gmra.mxu3 %vm1683_vm10, %v3680_v55 }
 0x380   :  { %v2436_v40 = vpop.f32.mrf.mxu0  ;;  %v2537_v45 = vpop.f32.mrf.mxu1 }
 0x381   :  { %v2437_v9 = vadd.f32 %v2436_v40, %v5373_v59  ;;  %v2670_v32 = vpop.f32.mrf.mxu2 }
 0x382   :  { %v2855_v50 = vpop.f32.mrf.mxu3 }
 0x383   :  { %v2534_v5 = vadd.f32 %v2533_v57, %v2437_v9  ;;  %2977 = vmatmul.f32.gmra.mxu0 %v5309_v21  ;;  %3106 = vmatmul.f32.gmra.mxu1 %v5906_v19 }
 0x385   :  { %v2671_v56 = vadd.f32 %v2670_v32, %v2534_v5  ;;  %3464 = vmatmul.msk.f32.gmra.mxu2 %vm1684_vm11, %v3680_v55 }
 0x387   :  { %v5617_v35 = vadd.f32 %v2855_v50, %v2671_v56  ;;  %3480 = vmatmul.msk.f32.gmra.mxu3 %vm1684_vm11, %v3680_v55  ;;  %v5911_v50 = vand.u32 4294901760, %v5441_v29 }
 0x388   :  { %v2440_v59 = vpop.f32.mrf.mxu0  ;;  %v2541_v36 = vpop.f32.mrf.mxu1 }
 0x389   :  { %v2441_v21 = vadd.f32 %v2440_v59, %v5395_v49  ;;  %v2678_v62 = vpop.f32.mrf.mxu2 }
 0x38a   :  { %v2859_v47 = vpop.f32.mrf.mxu3 }
 0x38b   :  { %v2538_v30 = vadd.f32 %v2537_v45, %v2441_v21  ;;  %2982 = vmatmul.f32.gmra.mxu0 %v5331_v20  ;;  %3112 = vmatmul.f32.gmra.mxu1 %v5907_v54 }
 0x38d   :  { %v2679_v11 = vadd.f32 %v2678_v62, %v2538_v30  ;;  %3465 = vmatmul.msk.f32.gmra.mxu2 %vm1685_vm12, %v3680_v55 }
 0x38f   :  { %v5631_v12 = vadd.f32 %v2859_v47, %v2679_v11  ;;  %3481 = vmatmul.msk.f32.gmra.mxu3 %vm1685_vm12, %v3680_v55 }
 0x390   :  { %v2444_v49 = vpop.f32.mrf.mxu0  ;;  %v2545_v26 = vpop.f32.mrf.mxu1 }
 0x391   :  { %v2445_v20 = vadd.f32 %v2444_v49, %v5417_v15  ;;  %v2686_v27 = vpop.f32.mrf.mxu2 }
 0x392   :  { %v2863_v48 = vpop.f32.mrf.mxu3 }
 0x393   :  { %v2542_v51 = vadd.f32 %v2541_v36, %v2445_v20  ;;  %2987 = vmatmul.f32.gmra.mxu0 %v5355_v1  ;;  %3118 = vmatmul.f32.gmra.mxu1 %v5908_v58 }
 0x395   :  { %v2687_v61 = vadd.f32 %v2686_v27, %v2542_v51  ;;  %3466 = vmatmul.msk.f32.gmra.mxu2 %vm1686_vm13, %v3680_v55 }
 0x397   :  { %v5645_v16 = vadd.f32 %v2863_v48, %v2687_v61  ;;  %3482 = vmatmul.msk.f32.gmra.mxu3 %vm1686_vm13, %v3680_v55 }
 0x398   :  { %v2448_v15 = vpop.f32.mrf.mxu0  ;;  %v2549_v18 = vpop.f32.mrf.mxu1 }
 0x399   :  { %v2449_v1 = vadd.f32 %v2448_v15, %v5439_v14  ;;  %v2694_v8 = vpop.f32.mrf.mxu2 }
 0x39a   :  { %v2867_v53 = vpop.f32.mrf.mxu3 }
 0x39b   :  { %v2546_v42 = vadd.f32 %v2545_v26, %v2449_v1  ;;  %2992 = vmatmul.f32.gmra.mxu0 %v5377_v60  ;;  %3124 = vmatmul.f32.gmra.mxu1 %v5909_v46 }
 0x39d   :  { %v2695_v57 = vadd.f32 %v2694_v8, %v2546_v42  ;;  %3467 = vmatmul.msk.f32.gmra.mxu2 %vm1687_vm14, %v3680_v55 }
 0x39f   :  { %v5659_v28 = vadd.f32 %v2867_v53, %v2695_v57  ;;  %3483 = vmatmul.msk.f32.gmra.mxu3 %vm1687_vm14, %v3680_v55 }
 0x3a0   :  { %v2452_v14 = vpop.f32.mrf.mxu0  ;;  %v2553_v24 = vpop.f32.mrf.mxu1 }
 0x3a1   :  { %v2453_v60 = vadd.f32 %v2452_v14, %v5453_v25  ;;  %v2702_v17 = vpop.f32.mrf.mxu2 }
 0x3a2   :  { %v2871_v38 = vpop.f32.mrf.mxu3 }
 0x3a3   :  { %v2550_v4 = vadd.f32 %v2549_v18, %v2453_v60  ;;  %2997 = vmatmul.f32.gmra.mxu0 %v5399_v7  ;;  %3130 = vmatmul.f32.gmra.mxu1 %v5910_v0 }
 0x3a5   :  { %v2703_v52 = vadd.f32 %v2702_v17, %v2550_v4  ;;  %3468 = vmatmul.msk.f32.gmra.mxu2 %vm1688_vm15, %v3680_v55 }
 0x3a7   :  { %v5673_v10 = vadd.f32 %v2871_v38, %v2703_v52  ;;  %3484 = vmatmul.msk.f32.gmra.mxu3 %vm1688_vm15, %v3680_v55 }
 0x3a8   :  { %v2456_v25 = vpop.f32.mrf.mxu0  ;;  %v2557_v40 = vpop.f32.mrf.mxu1 }
 0x3a9   :  { %v2457_v7 = vadd.f32 %v2456_v25, %v5464_v34  ;;  %v2710_v45 = vpop.f32.mrf.mxu2 }
 0x3aa   :  { %v2875_v9 = vpop.f32.mrf.mxu3 }
 0x3ab   :  { %v2554_v32 = vadd.f32 %v2553_v24, %v2457_v7  ;;  %3002 = vmatmul.f32.gmra.mxu0 %v5421_v31  ;;  %3136 = vmatmul.f32.gmra.mxu1 %v5911_v50 }
 0x3ad   :  { %v2711_v5 = vadd.f32 %v2710_v45, %v2554_v32  ;;  %3469 = vmatmul.msk.f32.gmra.mxu2 %vm1689_vm0, %v3680_v55 }
 0x3af   :  { %v5687_v63 = vadd.f32 %v2875_v9, %v2711_v5  ;;  %3485 = vmatmul.msk.f32.gmra.mxu3 %vm1689_vm0, %v3680_v55 }
 0x3b0   :  { %v2460_v34 = vpop.f32.mrf.mxu0  ;;  %v3047_v19 = vpop.f32.mrf.mxu1 }
 0x3b1   :  { %v2461_v31 = vadd.f32 %v2460_v34, %v5473_v43  ;;  %v2718_v56 = vpop.f32.mrf.mxu2 }
 0x3b2   :  { %v2879_v59 = vpop.f32.mrf.mxu3 }
 0x3b3   :  { %v2558_v36 = vadd.f32 %v2557_v40, %v2461_v31  ;;  %3007 = vmatmul.f32.gmra.mxu0 %v5441_v29 }
 0x3b5   :  { %v2719_v21 = vadd.f32 %v2718_v56, %v2558_v36 }
 0x3b7   :  { %v5695_v62 = vadd.f32 %v2879_v59, %v2719_v21 }
 0x3b8   :  { %v2933_v47 = vpop.f32.mrf.mxu0  ;;  %v3053_v30 = vpop.f32.mrf.mxu1 }
 0x3b9   :  { %v2934_v54 = vadd.f32 %v2933_v47, %v5491_v23  ;;  %v3206_v11 = vpop.f32.mrf.mxu2 }
 0x3ba   :  { %v3303_v49 = vpop.f32.mrf.mxu3 }
 0x3bb   :  { %v3048_v13 = vadd.f32 %v3047_v19, %v2934_v54 }
 0x3bd   :  { %v3207_v55 = vadd.f32 %v3206_v11, %v3048_v13 }
 0x3bf   :  { %v3304_v43 = vadd.f32 %v3303_v49, %v3207_v55 }
 0x3c0   :  { %v2938_v26 = vpop.f32.mrf.mxu0  ;;  %v3059_v20 = vpop.f32.mrf.mxu1 }
 0x3c1   :  { %v3370_v29 = vadd.f32 %v5701_v33, %v3304_v43  ;;  %v2939_v27 = vadd.f32 %v2938_v26, %v5505_v39  ;;  %v3210_v48 = vpop.f32.mrf.mxu2 }
 0x3c2   :  { %v3307_v51 = vpop.f32.mrf.mxu3 }
 0x3c3   :  { %3386 = vst [vmem:[#allocation7] sm:$0xff] %v3370_v29  ;;  %v3054_v23 = vadd.f32 %v3053_v30, %v2939_v27 }
 0x3c5   :  { %v3211_v58 = vadd.f32 %v3210_v48, %v3054_v23 }
 0x3c7   :  { %v3308_v61 = vadd.f32 %v3307_v51, %v3211_v58 }
 0x3c8   :  { %v2943_v15 = vpop.f32.mrf.mxu0  ;;  %v3065_v18 = vpop.f32.mrf.mxu1 }
 0x3c9   :  { %v3371_v1 = vadd.f32 %v5701_v33, %v3308_v61  ;;  %v2944_v8 = vadd.f32 %v2943_v15, %v5519_v44  ;;  %v3214_v53 = vpop.f32.mrf.mxu2 }
 0x3ca   :  { %v3311_v42 = vpop.f32.mrf.mxu3 }
 0x3cb   :  { %3387 = vst [vmem:[#allocation7 + $0x8] sm:$0xff] %v3371_v1  ;;  %v3060_v46 = vadd.f32 %v3059_v20, %v2944_v8 }
 0x3cd   :  { %v3215_v57 = vadd.f32 %v3214_v53, %v3060_v46 }
 0x3cf   :  { %v3312_v14 = vadd.f32 %v3311_v42, %v3215_v57 }
 0x3d0   :  { %v2948_v24 = vpop.f32.mrf.mxu0  ;;  %v3071_v39 = vpop.f32.mrf.mxu1 }
 0x3d1   :  { %v3372_v60 = vadd.f32 %v5701_v33, %v3312_v14  ;;  %v2949_v17 = vadd.f32 %v2948_v24, %v5533_v2  ;;  %v3218_v38 = vpop.f32.mrf.mxu2 }
 0x3d2   :  { %v3315_v4 = vpop.f32.mrf.mxu3 }
 0x3d3   :  { %3388 = vst [vmem:[#allocation7 + $0x10] sm:$0xff] %v3372_v60  ;;  %v3066_v0 = vadd.f32 %v3065_v18, %v2949_v17 }
 0x3d5   :  { %v3219_v52 = vadd.f32 %v3218_v38, %v3066_v0 }
 0x3d7   :  { %v3316_v25 = vadd.f32 %v3315_v4, %v3219_v52 }
 0x3d8   :  { %v2953_v40 = vpop.f32.mrf.mxu0  ;;  %v3077_v44 = vpop.f32.mrf.mxu1 }
 0x3d9   :  { %v3373_v7 = vadd.f32 %v5701_v33, %v3316_v25  ;;  %v2954_v45 = vadd.f32 %v2953_v40, %v5547_v3  ;;  %v3222_v9 = vpop.f32.mrf.mxu2 }
 0x3da   :  { %v3319_v32 = vpop.f32.mrf.mxu3 }
 0x3db   :  { %3389 = vst [vmem:[#allocation7 + $0x18] sm:$0xff] %v3373_v7  ;;  %v3072_v50 = vadd.f32 %v3071_v39, %v2954_v45 }
 0x3dd   :  { %v3223_v5 = vadd.f32 %v3222_v9, %v3072_v50 }
 0x3df   :  { %v3320_v34 = vadd.f32 %v3319_v32, %v3223_v5 }
 0x3e0   :  { %v2958_v19 = vpop.f32.mrf.mxu0  ;;  %v3083_v2 = vpop.f32.mrf.mxu1 }
 0x3e1   :  { %v3374_v31 = vadd.f32 %v5701_v33, %v3320_v34  ;;  %v2959_v56 = vadd.f32 %v2958_v19, %v5561_v22  ;;  %v3226_v59 = vpop.f32.mrf.mxu2 }
 0x3e2   :  { %v3323_v36 = vpop.f32.mrf.mxu3 }
 0x3e3   :  { %3390 = vst [vmem:[#allocation7 + $0x20] sm:$0xff] %v3374_v31  ;;  %v3078_v21 = vadd.f32 %v3077_v44, %v2959_v56 }
 0x3e5   :  { %v3227_v47 = vadd.f32 %v3226_v59, %v3078_v21 }
 0x3e7   :  { %v3324_v30 = vadd.f32 %v3323_v36, %v3227_v47 }
 0x3e8   :  { %v2963_v54 = vpop.f32.mrf.mxu0  ;;  %v3089_v3 = vpop.f32.mrf.mxu1 }
 0x3e9   :  { %v3375_v11 = vadd.f32 %v5701_v33, %v3324_v30  ;;  %v2964_v49 = vadd.f32 %v2963_v54, %v5575_v6  ;;  %v3230_v13 = vpop.f32.mrf.mxu2 }
 0x3ea   :  { %v3327_v55 = vpop.f32.mrf.mxu3 }
 0x3eb   :  { %3391 = vst [vmem:[#allocation7 + $0x28] sm:$0xff] %v3375_v11  ;;  %v3084_v43 = vadd.f32 %v3083_v2, %v2964_v49 }
 0x3ed   :  { %v3231_v26 = vadd.f32 %v3230_v13, %v3084_v43 }
 0x3ef   :  { %v3328_v20 = vadd.f32 %v3327_v55, %v3231_v26 }
 0x3f0   :  { %v2968_v29 = vpop.f32.mrf.mxu0  ;;  %v3095_v22 = vpop.f32.mrf.mxu1 }
 0x3f1   :  { %v3376_v27 = vadd.f32 %v5701_v33, %v3328_v20  ;;  %v2969_v48 = vadd.f32 %v2968_v29, %v5589_v41  ;;  %v3234_v51 = vpop.f32.mrf.mxu2 }
 0x3f2   :  { %v3331_v23 = vpop.f32.mrf.mxu3 }
 0x3f3   :  { %3392 = vst [vmem:[#allocation7 + $0x30] sm:$0xff] %v3376_v27  ;;  %v3090_v58 = vadd.f32 %v3089_v3, %v2969_v48 }
 0x3f5   :  { %v3235_v61 = vadd.f32 %v3234_v51, %v3090_v58 }
 0x3f7   :  { %v3332_v15 = vadd.f32 %v3331_v23, %v3235_v61 }
 0x3f8   :  { %v2973_v18 = vpop.f32.mrf.mxu0  ;;  %v3101_v6 = vpop.f32.mrf.mxu1 }
 0x3f9   :  { %v3377_v1 = vadd.f32 %v5701_v33, %v3332_v15  ;;  %v2974_v8 = vadd.f32 %v2973_v18, %v5603_v37  ;;  %v3238_v53 = vpop.f32.mrf.mxu2 }
 0x3fa   :  { %v3335_v42 = vpop.f32.mrf.mxu3 }
 0x3fb   :  { %3393 = vst [vmem:[#allocation7 + $0x38] sm:$0xff] %v3377_v1  ;;  %v3096_v46 = vadd.f32 %v3095_v22, %v2974_v8 }
 0x3fd   :  { %v3239_v57 = vadd.f32 %v3238_v53, %v3096_v46 }
 0x3ff   :  { %v3336_v14 = vadd.f32 %v3335_v42, %v3239_v57 }
 0x400   :  { %v2978_v24 = vpop.f32.mrf.mxu0  ;;  %v3107_v41 = vpop.f32.mrf.mxu1 }
 0x401   :  { %v3378_v39 = vadd.f32 %v5701_v33, %v3336_v14  ;;  %v2979_v60 = vadd.f32 %v2978_v24, %v5617_v35  ;;  %v3242_v17 = vpop.f32.mrf.mxu2 }
 0x402   :  { %v3339_v38 = vpop.f32.mrf.mxu3 }
 0x403   :  { %3394 = vst [vmem:[#allocation7 + $0x40] sm:$0xff] %v3378_v39  ;;  %v3102_v4 = vadd.f32 %v3101_v6, %v2979_v60 }
 0x405   :  { %v3243_v0 = vadd.f32 %v3242_v17, %v3102_v4 }
 0x407   :  { %v3340_v52 = vadd.f32 %v3339_v38, %v3243_v0 }
 0x408   :  { %v2983_v25 = vpop.f32.mrf.mxu0  ;;  %v3113_v7 = vpop.f32.mrf.mxu1 }
 0x409   :  { %v3379_v37 = vadd.f32 %v5701_v33, %v3340_v52  ;;  %v2984_v40 = vadd.f32 %v2983_v25, %v5631_v12  ;;  %v3246_v44 = vpop.f32.mrf.mxu2 }
 0x40a   :  { %v3343_v45 = vpop.f32.mrf.mxu3 }
 0x40b   :  { %3395 = vst [vmem:[#allocation7 + $0x48] sm:$0xff] %v3379_v37  ;;  %v3108_v9 = vadd.f32 %v3107_v41, %v2984_v40 }
 0x40d   :  { %v3247_v32 = vadd.f32 %v3246_v44, %v3108_v9 }
 0x40f   :  { %v3344_v50 = vadd.f32 %v3343_v45, %v3247_v32 }
 0x410   :  { %v2988_v5 = vpop.f32.mrf.mxu0  ;;  %v3119_v56 = vpop.f32.mrf.mxu1 }
 0x411   :  { %v3380_v35 = vadd.f32 %v5701_v33, %v3344_v50  ;;  %v2989_v34 = vadd.f32 %v2988_v5, %v5645_v16  ;;  %v3250_v19 = vpop.f32.mrf.mxu2 }
 0x412   :  { %v3347_v2 = vpop.f32.mrf.mxu3 }
 0x413   :  { %3396 = vst [vmem:[#allocation7 + $0x50] sm:$0xff] %v3380_v35  ;;  %v3114_v31 = vadd.f32 %v3113_v7, %v2989_v34 }
 0x415   :  { %v3251_v59 = vadd.f32 %v3250_v19, %v3114_v31 }
 0x417   :  { %v3348_v36 = vadd.f32 %v3347_v2, %v3251_v59 }
 0x418   :  { %v2993_v12 = vpop.f32.mrf.mxu0  ;;  %v3125_v49 = vpop.f32.mrf.mxu1 }
 0x419   :  { %v3381_v21 = vadd.f32 %v5701_v33, %v3348_v36  ;;  %v2994_v47 = vadd.f32 %v2993_v12, %v5659_v28  ;;  %v3254_v30 = vpop.f32.mrf.mxu2 }
 0x41a   :  { %v3351_v54 = vpop.f32.mrf.mxu3 }
 0x41b   :  { %3397 = vst [vmem:[#allocation7 + $0x58] sm:$0xff] %v3381_v21  ;;  %v3120_v3 = vadd.f32 %v3119_v56, %v2994_v47 }
 0x41d   :  { %v3255_v11 = vadd.f32 %v3254_v30, %v3120_v3 }
 0x41f   :  { %v3352_v13 = vadd.f32 %v3351_v54, %v3255_v11 }
 0x420   :  { %v2998_v16 = vpop.f32.mrf.mxu0  ;;  %v3131_v48 = vpop.f32.mrf.mxu1 }
 0x421   :  { %v3382_v55 = vadd.f32 %v5701_v33, %v3352_v13  ;;  %v2999_v43 = vadd.f32 %v2998_v16, %v5673_v10  ;;  %v3258_v26 = vpop.f32.mrf.mxu2 }
 0x422   :  { %v3355_v20 = vpop.f32.mrf.mxu3 }
 0x423   :  { %3398 = vst [vmem:[#allocation7 + $0x60] sm:$0xff] %v3382_v55  ;;  %v3126_v29 = vadd.f32 %v3125_v49, %v2999_v43 }
 0x425   :  { %v3259_v22 = vadd.f32 %v3258_v26, %v3126_v29 }
 0x427   :  { %v3356_v27 = vadd.f32 %v3355_v20, %v3259_v22 }
 0x428   :  { %v3003_v28 = vpop.f32.mrf.mxu0  ;;  %v3137_v53 = vpop.f32.mrf.mxu1 }
 0x429   :  { %v3383_v51 = vadd.f32 %v5701_v33, %v3356_v27  ;;  %v3004_v23 = vadd.f32 %v3003_v28, %v5687_v63  ;;  %v3262_v58 = vpop.f32.mrf.mxu2 }
 0x42a   :  { %v3359_v15 = vpop.f32.mrf.mxu3 }
 0x42b   :  { %3399 = vst [vmem:[#allocation7 + $0x68] sm:$0xff] %v3383_v51  ;;  %v3132_v61 = vadd.f32 %v3131_v48, %v3004_v23 }
 0x42d   :  { %v3263_v18 = vadd.f32 %v3262_v58, %v3132_v61 }
 0x42f   :  { %v3360_v6 = vadd.f32 %v3359_v15, %v3263_v18 }
 0x430   :  { %v3008_v1 = vpop.f32.mrf.mxu0 }
 0x431   :  { %v3384_v10 = vadd.f32 %v5701_v33, %v3360_v6  ;;  %v3009_v8 = vadd.f32 %v3008_v1, %v5695_v62  ;;  %v3266_v46 = vpop.f32.mrf.mxu2 }
 0x432   :  { %v3363_v14 = vpop.f32.mrf.mxu3 }
 0x433   :  { %3400 = vst [vmem:[#allocation7 + $0x70] sm:$0xff] %v3384_v10  ;;  %v3138_v42 = vadd.f32 %v3137_v53, %v3009_v8 }
 0x435   :  { %v3267_v57 = vadd.f32 %v3266_v46, %v3138_v42 }
 0x437   :  { %v3364_v63 = vadd.f32 %v3363_v14, %v3267_v57 }
 0x439   :  { %v3385_v24 = vadd.f32 %v5701_v33, %v3364_v63 }
 0x43b   :  { %3401 = vst [vmem:[#allocation7 + $0x78] sm:$0xff] %v3385_v24 }
 0x43c   :  { %3414 = dma.vmem_to_hbm [thread:$0]  %s3407_s17, 2048, %s3409_s20, [#allocation4], %s3675_s9, %s3675_s9, %s3676_s10  }
 0x43d   :  { %3672 = dma.done.wait [#allocation4], 2048  }
 0x43e   :  { %3673 = vsyncadd [#allocation4], 4294965248 }
 0x43f   :  { %3419 = vsyncpa [#allocation3], 1 }
 0x440   :  { %3420 = vsyncpa [#allocation6], 1 }
 0x441   :  { %3421 = vsyncpa [#allocation4], 1 }

</bundles_post_ra>
